<compile_context>
chip_gen: v7x
topology: tpu7x:2x2x1
jax: 0.10.0
libtpu: 0.0.40
codegen_flags: <defaults>
</compile_context>

<pallas_src>
import functools
import math

import jax
import jax.numpy as jnp
from jax.experimental import pallas as pl
from jax.experimental.pallas import tpu as pltpu

# ---------------- model config (small, synthetic BERT) ----------------
VOCAB = 100
TYPE_VOCAB = 2
MAX_POS = 64
HIDDEN = 128
N_HEADS = 4
HEAD_DIM = HIDDEN // N_HEADS
FFN = 256
N_LAYERS = 2
NUM_LABELS = 4
CLF_PAD = 128            # lane-dense padded classifier output width
LN_EPS = 1e-12
MXU_DTYPE = jnp.bfloat16  # matmul operand dtype; accumulation & epilogues stay f32


# ---------------- in-kernel helpers ----------------
def _mdot(a, b):
    """MXU matmul: bf16 operands, f32 accumulation."""
    return jnp.dot(a.astype(MXU_DTYPE), b.astype(MXU_DTYPE),
                   preferred_element_type=jnp.float32)


def _ln(x, g, b):
    """LayerNorm over the last axis (f32 epilogue)."""
    mean = jnp.mean(x, axis=-1, keepdims=True)
    var = jnp.mean((x - mean) ** 2, axis=-1, keepdims=True)
    return (x - mean) * jax.lax.rsqrt(var + LN_EPS) * g + b


def _full_spec(shape):
    """Full-array BlockSpec for a grid=(1,) kernel."""
    return pl.BlockSpec(shape, lambda *_: (0,) * len(shape))


# ---------------- single fused forward kernel ----------------
def _bert_fwd_kernel(x_ref, mask_ref, embln_ref,
                     wqkv_ref, wo_ref, w1_ref, w2_ref,
                     bqkv_ref, b1_ref, vecs_ref,
                     poolw_ref, poolb_ref, clfw_ref, clfb_ref,
                     o_ref, *, batch, seq, n_layers, n_heads, head_dim):
    hidden = n_heads * head_dim

    # --- embedding LayerNorm (embedding gathers are done in the wrapper) ---
    x = _ln(x_ref[...], embln_ref[0:1, :], embln_ref[1:2, :])   # [B*S, H] f32

    # combined additive mask [B*S, B*S]: block-diagonal across batch + key pad
    mask = mask_ref[...]
    scale = 1.0 / math.sqrt(head_dim)

    for l in range(n_layers):                       # L=2, static unroll
        vec = vecs_ref[l]                           # [6, H]: bo,ln1g,ln1b,b2,ln2g,ln2b

        # --- fused QKV projection: one [B*S,128] @ [128,384] MXU pass ---
        qkv = _mdot(x, wqkv_ref[l]) + bqkv_ref[l]   # [B*S, 3H] f32
        q = qkv[:, :hidden] * scale
        k = qkv[:, hidden:2 * hidden]
        v = qkv[:, 2 * hidden:]

        # --- stacked-heads batched attention (no sublane/lane transposes):
        #     heads become a new LEADING axis; batch separation is handled by
        #     the block-diagonal additive mask, so the whole batch shares one
        #     [B*S, B*S] score tile per head (fills sublanes, 1 matmul seq). ---
        qs = jnp.stack([q[:, h * head_dim:(h + 1) * head_dim]
                        for h in range(n_heads)], axis=0)        # [NH, B*S, D]
        ks = jnp.stack([k[:, h * head_dim:(h + 1) * head_dim]
                        for h in range(n_heads)], axis=0)
        vs = jnp.stack([v[:, h * head_dim:(h + 1) * head_dim]
                        for h in range(n_heads)], axis=0)

        s = jnp.einsum('hqd,hkd->hqk',
                       qs.astype(MXU_DTYPE), ks.astype(MXU_DTYPE),
                       preferred_element_type=jnp.float32)       # [NH, B*S, B*S]
        s = s + mask                                             # f32 mask add
        s = s - jnp.max(s, axis=-1, keepdims=True)
        p = jnp.exp(s)
        p = p * pl.reciprocal(jnp.sum(p, axis=-1, keepdims=True), approx=True)

        ctx = jnp.einsum('hqk,hkd->hqd',
                         p.astype(MXU_DTYPE), vs.astype(MXU_DTYPE),
                         preferred_element_type=jnp.float32)     # [NH, B*S, D]
        # lane-dense head merge, kept in registers (no scratch store/reload)
        ctx = jnp.concatenate([ctx[h] for h in range(n_heads)], axis=-1)  # [B*S, H]

        # --- attention output projection + residual + LN1 ---
        attn = _mdot(ctx, wo_ref[l]) + vec[0:1]
        x = _ln(x + attn, vec[1:2], vec[2:3])

        # --- FFN + residual + LN2 ---
        # TODO(synk): HF/PyTorch BERT default GELU is the exact erf form; tanh
        # approximation used here (small numerical drift).
        ff = _mdot(x, w1_ref[l]) + b1_ref[l]
        ff = jax.nn.gelu(ff, approximate=True)
        ff = _mdot(ff, w2_ref[l]) + vec[3:4]
        x = _ln(x + ff, vec[4:5], vec[5:6])

    # --- pooler on [CLS] rows (selected in-kernel) + classifier ---
    x_cls = jnp.concatenate([x[b * seq:b * seq + 1, :] for b in range(batch)],
                            axis=0)                              # [B, H]
    pooled = jnp.tanh(_mdot(x_cls, poolw_ref[...]) + poolb_ref[...])
    # TODO(synk): nn.Dropout is identity at inference time; no dropout applied.
    o_ref[...] = (_mdot(pooled, clfw_ref[...]) + clfb_ref[...]).astype(o_ref.dtype)


def bert_fused_forward(x, amask, params, batch, seq):
    M = batch * seq
    kernel = functools.partial(_bert_fwd_kernel, batch=batch, seq=seq,
                               n_layers=N_LAYERS, n_heads=N_HEADS,
                               head_dim=HEAD_DIM)
    return pl.pallas_call(
        kernel,
        out_shape=jax.ShapeDtypeStruct((batch, CLF_PAD), jnp.float32),
        grid=(1,),
        in_specs=[
            _full_spec((M, HIDDEN)),                     # x (summed embeddings)
            _full_spec((M, M)),                          # additive mask
            _full_spec((2, HIDDEN)),                     # emb LN gamma/beta
            _full_spec((N_LAYERS, HIDDEN, 3 * HIDDEN)),  # wqkv (bf16)
            _full_spec((N_LAYERS, HIDDEN, HIDDEN)),      # wo   (bf16)
            _full_spec((N_LAYERS, HIDDEN, FFN)),         # w1   (bf16)
            _full_spec((N_LAYERS, FFN, HIDDEN)),         # w2   (bf16)
            _full_spec((N_LAYERS, 1, 3 * HIDDEN)),       # bqkv (f32)
            _full_spec((N_LAYERS, 1, FFN)),              # b1   (f32)
            _full_spec((N_LAYERS, 6, HIDDEN)),           # packed 1xH vectors
            _full_spec((HIDDEN, HIDDEN)),                # pool_w (bf16)
            _full_spec((1, HIDDEN)),                     # pool_b
            _full_spec((HIDDEN, CLF_PAD)),               # clf_w (bf16, padded)
            _full_spec((1, CLF_PAD)),                    # clf_b (padded)
        ],
        out_specs=_full_spec((batch, CLF_PAD)),          # lane-dense output slab
        compiler_params=pltpu.CompilerParams(dimension_semantics=("arbitrary",)),
    )(x, amask, params["emb_ln"], params["wqkv"], params["wo"], params["w1"],
      params["w2"], params["bqkv"], params["b1"], params["vecs"],
      params["pool_w"], params["pool_b"], params["clf_w"], params["clf_b"])


# ---------------- deterministic parameter construction ----------------
def init_params(key):
    keys = iter(jax.random.split(key, 64))

    def nrm(shape):
        return 0.02 * jax.random.normal(next(keys), shape, jnp.float32)

    wqkv, wo, w1, w2, bqkv, b1, vecs = [], [], [], [], [], [], []
    for _ in range(N_LAYERS):
        wqkv.append(nrm((HIDDEN, 3 * HIDDEN)).astype(MXU_DTYPE))
        wo.append(nrm((HIDDEN, HIDDEN)).astype(MXU_DTYPE))
        w1.append(nrm((HIDDEN, FFN)).astype(MXU_DTYPE))
        w2.append(nrm((FFN, HIDDEN)).astype(MXU_DTYPE))
        bqkv.append(jnp.zeros((1, 3 * HIDDEN), jnp.float32))
        b1.append(jnp.zeros((1, FFN), jnp.float32))
        vecs.append(jnp.stack([
            jnp.zeros((HIDDEN,), jnp.float32),   # bo
            jnp.ones((HIDDEN,), jnp.float32),    # ln1_g
            jnp.zeros((HIDDEN,), jnp.float32),   # ln1_b
            jnp.zeros((HIDDEN,), jnp.float32),   # b2
            jnp.ones((HIDDEN,), jnp.float32),    # ln2_g
            jnp.zeros((HIDDEN,), jnp.float32),   # ln2_b
        ], axis=0))                              # [6, H]

    clf_w = (jnp.zeros((HIDDEN, CLF_PAD), jnp.float32)
             .at[:, :NUM_LABELS].set(nrm((HIDDEN, NUM_LABELS))))

    return {
        "word_emb": nrm((VOCAB, HIDDEN)),
        "pos_emb": nrm((MAX_POS, HIDDEN)),
        "type_emb": nrm((TYPE_VOCAB, HIDDEN)),
        "emb_ln": jnp.stack([jnp.ones((HIDDEN,), jnp.float32),
                             jnp.zeros((HIDDEN,), jnp.float32)], axis=0),
        "wqkv": jnp.stack(wqkv), "wo": jnp.stack(wo),
        "w1": jnp.stack(w1), "w2": jnp.stack(w2),
        "bqkv": jnp.stack(bqkv), "b1": jnp.stack(b1), "vecs": jnp.stack(vecs),
        "pool_w": nrm((HIDDEN, HIDDEN)).astype(MXU_DTYPE),
        "pool_b": jnp.zeros((1, HIDDEN), jnp.float32),
        "clf_w": clf_w.astype(MXU_DTYPE),               # lane-dense padded slab
        "clf_b": jnp.zeros((1, CLF_PAD), jnp.float32),
    }


# ---------------- forward pass (mirrors BERTSentClf.forward) ----------------
def bert_sent_clf_forward(params, input_ids, attention_mask, token_type_ids=None):
    B, S = input_ids.shape
    if token_type_ids is None:
        token_type_ids = jnp.zeros_like(input_ids)

    # Embedding-table gathers stay in XLA (no clean Pallas equivalent at this
    # size); everything downstream runs inside one fused Pallas kernel.
    x = (params["word_emb"][input_ids]
         + params["pos_emb"][:S][None, :, :]
         + params["type_emb"][token_type_ids])
    x = x.reshape(B * S, HIDDEN).astype(jnp.float32)

    # Combined additive attention mask [B*S, B*S], f32 (added post-matmul):
    # block-diagonal over batch (kills cross-batch attention) AND key padding.
    row_batch = jnp.repeat(jnp.arange(B, dtype=jnp.int32), S)
    key_valid = attention_mask.reshape(-1).astype(bool)
    allowed = (row_batch[:, None] == row_batch[None, :]) & key_valid[None, :]
    amask = jnp.where(allowed, 0.0, -1e9).astype(jnp.float32)

    logits_pad = bert_fused_forward(x, amask, params, B, S)
    return logits_pad[:, :NUM_LABELS]


# ---------------- driver ----------------
if __name__ == "__main__":
    B, S = 2, 16
    key = jax.random.PRNGKey(0)
    k_param, k_ids = jax.random.split(key)

    params = init_params(k_param)

    input_ids = jax.random.randint(k_ids, (B, S), 0, VOCAB, dtype=jnp.int32)
    attention_mask = jnp.ones((B, S), jnp.int32).at[1, S - 3:].set(0)  # pad tail of ex. 1
    token_type_ids = jnp.zeros((B, S), jnp.int32).at[:, S // 2:].set(1)

    forward = jax.jit(bert_sent_clf_forward)
    logits = forward(params, input_ids, attention_mask, token_type_ids)
    logits = jax.block_until_ready(logits)

    assert logits.shape == (B, NUM_LABELS)
    assert logits.dtype == jnp.float32
    assert bool(jnp.all(jnp.isfinite(logits)))
    print("KERNEL_OK")
</pallas_src>

<mosaic_0001>
module attributes {stable_mosaic.version = 11 : i64} {
  func.func @_bert_fwd_kernel(%arg0: i32, %arg1: memref<32x128xf32, #tpu.memory_space<vmem>>, %arg2: memref<32x32xf32, #tpu.memory_space<vmem>>, %arg3: memref<2x128xf32, #tpu.memory_space<vmem>>, %arg4: memref<2x128x384xbf16, #tpu.memory_space<vmem>>, %arg5: memref<2x128x128xbf16, #tpu.memory_space<vmem>>, %arg6: memref<2x128x256xbf16, #tpu.memory_space<vmem>>, %arg7: memref<2x256x128xbf16, #tpu.memory_space<vmem>>, %arg8: memref<2x1x384xf32, #tpu.memory_space<vmem>>, %arg9: memref<2x1x256xf32, #tpu.memory_space<vmem>>, %arg10: memref<2x6x128xf32, #tpu.memory_space<vmem>>, %arg11: memref<128x128xbf16, #tpu.memory_space<vmem>>, %arg12: memref<1x128xf32, #tpu.memory_space<vmem>>, %arg13: memref<128x128xbf16, #tpu.memory_space<vmem>>, %arg14: memref<1x128xf32, #tpu.memory_space<vmem>>, %arg15: memref<2x128xf32, #tpu.memory_space<vmem>>) attributes {dimension_semantics = [#tpu.dimension_semantics<arbitrary>], iteration_bounds = array<i64: 1>, scalar_prefetch = 0 : i64, scratch_operands = 0 : i64, tpu.core_type = #tpu.core_type<tc>, window_params = [{pipeline_mode = #tpu.pipeline_mode<synchronous>, transform_indices = @transform_0, window_bounds = array<i64: 32, 128>}, {pipeline_mode = #tpu.pipeline_mode<synchronous>, transform_indices = @transform_1, window_bounds = array<i64: 32, 32>}, {pipeline_mode = #tpu.pipeline_mode<synchronous>, transform_indices = @transform_2, window_bounds = array<i64: 2, 128>}, {pipeline_mode = #tpu.pipeline_mode<synchronous>, transform_indices = @transform_3, window_bounds = array<i64: 2, 128, 384>}, {pipeline_mode = #tpu.pipeline_mode<synchronous>, transform_indices = @transform_4, window_bounds = array<i64: 2, 128, 128>}, {pipeline_mode = #tpu.pipeline_mode<synchronous>, transform_indices = @transform_5, window_bounds = array<i64: 2, 128, 256>}, {pipeline_mode = #tpu.pipeline_mode<synchronous>, transform_indices = @transform_6, window_bounds = array<i64: 2, 256, 128>}, {pipeline_mode = #tpu.pipeline_mode<synchronous>, transform_indices = @transform_7, window_bounds = array<i64: 2, 1, 384>}, {pipeline_mode = #tpu.pipeline_mode<synchronous>, transform_indices = @transform_8, window_bounds = array<i64: 2, 1, 256>}, {pipeline_mode = #tpu.pipeline_mode<synchronous>, transform_indices = @transform_9, window_bounds = array<i64: 2, 6, 128>}, {pipeline_mode = #tpu.pipeline_mode<synchronous>, transform_indices = @transform_10, window_bounds = array<i64: 128, 128>}, {pipeline_mode = #tpu.pipeline_mode<synchronous>, transform_indices = @transform_11, window_bounds = array<i64: 1, 128>}, {pipeline_mode = #tpu.pipeline_mode<synchronous>, transform_indices = @transform_12, window_bounds = array<i64: 128, 128>}, {pipeline_mode = #tpu.pipeline_mode<synchronous>, transform_indices = @transform_13, window_bounds = array<i64: 1, 128>}, {pipeline_mode = #tpu.pipeline_mode<synchronous>, transform_indices = @transform_14, window_bounds = array<i64: 2, 128>}]} {
    %c0 = arith.constant 0 : index
    %c0_0 = arith.constant 0 : index
    %0 = vector.load %arg1[%c0, %c0_0] : memref<32x128xf32, #tpu.memory_space<vmem>>, vector<32x128xf32>
    %c0_1 = arith.constant 0 : index
    %c0_2 = arith.constant 0 : index
    %1 = vector.load %arg3[%c0_1, %c0_2] : memref<2x128xf32, #tpu.memory_space<vmem>>, vector<1x128xf32>
    %c1 = arith.constant 1 : index
    %c0_3 = arith.constant 0 : index
    %2 = vector.load %arg3[%c1, %c0_3] : memref<2x128xf32, #tpu.memory_space<vmem>>, vector<1x128xf32>
    %cst = arith.constant dense<0.000000e+00> : vector<32xf32>
    %3 = vector.multi_reduction <add>, %0, %cst [1] : vector<32x128xf32> to vector<32xf32>
    %4 = vector.shape_cast %3 : vector<32xf32> to vector<32x1xf32>
    %cst_4 = arith.constant 1.280000e+02 : f32
    %5 = vector.broadcast %cst_4 : f32 to vector<32x1xf32>
    %6 = arith.divf %4, %5 : vector<32x1xf32>
    %7 = vector.broadcast %6 : vector<32x1xf32> to vector<32x128xf32>
    %8 = arith.subf %0, %7 : vector<32x128xf32>
    %9 = arith.mulf %8, %8 : vector<32x128xf32>
    %cst_5 = arith.constant dense<0.000000e+00> : vector<32xf32>
    %10 = vector.multi_reduction <add>, %9, %cst_5 [1] : vector<32x128xf32> to vector<32xf32>
    %11 = vector.shape_cast %10 : vector<32xf32> to vector<32x1xf32>
    %cst_6 = arith.constant 1.280000e+02 : f32
    %12 = vector.broadcast %cst_6 : f32 to vector<32x1xf32>
    %13 = arith.divf %11, %12 : vector<32x1xf32>
    %14 = vector.broadcast %6 : vector<32x1xf32> to vector<32x128xf32>
    %15 = arith.subf %0, %14 : vector<32x128xf32>
    %cst_7 = arith.constant 9.99999996E-13 : f32
    %16 = vector.broadcast %cst_7 : f32 to vector<32x1xf32>
    %17 = arith.addf %13, %16 : vector<32x1xf32>
    %18 = math.rsqrt %17 : vector<32x1xf32>
    %19 = vector.broadcast %18 : vector<32x1xf32> to vector<32x128xf32>
    %20 = arith.mulf %15, %19 : vector<32x128xf32>
    %21 = vector.broadcast %1 : vector<1x128xf32> to vector<32x128xf32>
    %22 = arith.mulf %20, %21 : vector<32x128xf32>
    %23 = vector.broadcast %2 : vector<1x128xf32> to vector<32x128xf32>
    %24 = arith.addf %22, %23 : vector<32x128xf32>
    %c0_8 = arith.constant 0 : index
    %c0_9 = arith.constant 0 : index
    %25 = vector.load %arg2[%c0_8, %c0_9] : memref<32x32xf32, #tpu.memory_space<vmem>>, vector<32x32xf32>
    %c0_10 = arith.constant 0 : index
    %c0_11 = arith.constant 0 : index
    %c0_12 = arith.constant 0 : index
    %26 = vector.load %arg10[%c0_10, %c0_11, %c0_12] : memref<2x6x128xf32, #tpu.memory_space<vmem>>, vector<1x6x128xf32>
    %27 = vector.shape_cast %26 : vector<1x6x128xf32> to vector<6x128xf32>
    %c0_13 = arith.constant 0 : index
    %c0_14 = arith.constant 0 : index
    %c0_15 = arith.constant 0 : index
    %28 = vector.load %arg4[%c0_13, %c0_14, %c0_15] : memref<2x128x384xbf16, #tpu.memory_space<vmem>>, vector<1x128x384xbf16>
    %29 = vector.shape_cast %28 : vector<1x128x384xbf16> to vector<128x384xbf16>
    %30 = arith.truncf %24 : vector<32x128xf32> to vector<32x128xbf16>
    %cst_16 = arith.constant dense<0.000000e+00> : vector<32x384xf32>
    %31 = tpu.matmul %30, %29, %cst_16 {dimension_numbers = #tpu.dot_dimension_numbers<[1], [0], [0], [1], [0, 0, 1, 1], [], []>} : vector<32x128xbf16>, vector<128x384xbf16>, vector<32x384xf32> -> vector<32x384xf32>
    %c0_17 = arith.constant 0 : index
    %c0_18 = arith.constant 0 : index
    %c0_19 = arith.constant 0 : index
    %32 = vector.load %arg8[%c0_17, %c0_18, %c0_19] : memref<2x1x384xf32, #tpu.memory_space<vmem>>, vector<1x1x384xf32>
    %33 = vector.shape_cast %32 : vector<1x1x384xf32> to vector<1x384xf32>
    %34 = vector.broadcast %33 : vector<1x384xf32> to vector<32x384xf32>
    %35 = arith.addf %31, %34 : vector<32x384xf32>
    %36 = vector.extract_strided_slice %35 {offsets = [0, 0], sizes = [32, 128], strides = [1, 1]} : vector<32x384xf32> to vector<32x128xf32>
    %cst_20 = arith.constant 0.176776692 : f32
    %37 = vector.broadcast %cst_20 : f32 to vector<32x128xf32>
    %38 = arith.mulf %36, %37 : vector<32x128xf32>
    %39 = vector.extract_strided_slice %35 {offsets = [0, 128], sizes = [32, 128], strides = [1, 1]} : vector<32x384xf32> to vector<32x128xf32>
    %40 = vector.extract_strided_slice %35 {offsets = [0, 256], sizes = [32, 128], strides = [1, 1]} : vector<32x384xf32> to vector<32x128xf32>
    %41 = vector.extract_strided_slice %38 {offsets = [0, 0], sizes = [32, 32], strides = [1, 1]} : vector<32x128xf32> to vector<32x32xf32>
    %42 = vector.extract_strided_slice %38 {offsets = [0, 32], sizes = [32, 32], strides = [1, 1]} : vector<32x128xf32> to vector<32x32xf32>
    %43 = vector.extract_strided_slice %38 {offsets = [0, 64], sizes = [32, 32], strides = [1, 1]} : vector<32x128xf32> to vector<32x32xf32>
    %44 = vector.extract_strided_slice %38 {offsets = [0, 96], sizes = [32, 32], strides = [1, 1]} : vector<32x128xf32> to vector<32x32xf32>
    %45 = vector.shape_cast %41 : vector<32x32xf32> to vector<1x32x32xf32>
    %46 = vector.shape_cast %42 : vector<32x32xf32> to vector<1x32x32xf32>
    %47 = vector.shape_cast %43 : vector<32x32xf32> to vector<1x32x32xf32>
    %48 = vector.shape_cast %44 : vector<32x32xf32> to vector<1x32x32xf32>
    %49 = tpu.concatenate %45, %46, %47, %48 in 0 : vector<1x32x32xf32>, vector<1x32x32xf32>, vector<1x32x32xf32>, vector<1x32x32xf32> -> vector<4x32x32xf32>
    %50 = vector.extract_strided_slice %39 {offsets = [0, 0], sizes = [32, 32], strides = [1, 1]} : vector<32x128xf32> to vector<32x32xf32>
    %51 = vector.extract_strided_slice %39 {offsets = [0, 32], sizes = [32, 32], strides = [1, 1]} : vector<32x128xf32> to vector<32x32xf32>
    %52 = vector.extract_strided_slice %39 {offsets = [0, 64], sizes = [32, 32], strides = [1, 1]} : vector<32x128xf32> to vector<32x32xf32>
    %53 = vector.extract_strided_slice %39 {offsets = [0, 96], sizes = [32, 32], strides = [1, 1]} : vector<32x128xf32> to vector<32x32xf32>
    %54 = vector.shape_cast %50 : vector<32x32xf32> to vector<1x32x32xf32>
    %55 = vector.shape_cast %51 : vector<32x32xf32> to vector<1x32x32xf32>
    %56 = vector.shape_cast %52 : vector<32x32xf32> to vector<1x32x32xf32>
    %57 = vector.shape_cast %53 : vector<32x32xf32> to vector<1x32x32xf32>
    %58 = tpu.concatenate %54, %55, %56, %57 in 0 : vector<1x32x32xf32>, vector<1x32x32xf32>, vector<1x32x32xf32>, vector<1x32x32xf32> -> vector<4x32x32xf32>
    %59 = vector.extract_strided_slice %40 {offsets = [0, 0], sizes = [32, 32], strides = [1, 1]} : vector<32x128xf32> to vector<32x32xf32>
    %60 = vector.extract_strided_slice %40 {offsets = [0, 32], sizes = [32, 32], strides = [1, 1]} : vector<32x128xf32> to vector<32x32xf32>
    %61 = vector.extract_strided_slice %40 {offsets = [0, 64], sizes = [32, 32], strides = [1, 1]} : vector<32x128xf32> to vector<32x32xf32>
    %62 = vector.extract_strided_slice %40 {offsets = [0, 96], sizes = [32, 32], strides = [1, 1]} : vector<32x128xf32> to vector<32x32xf32>
    %63 = vector.shape_cast %59 : vector<32x32xf32> to vector<1x32x32xf32>
    %64 = vector.shape_cast %60 : vector<32x32xf32> to vector<1x32x32xf32>
    %65 = vector.shape_cast %61 : vector<32x32xf32> to vector<1x32x32xf32>
    %66 = vector.shape_cast %62 : vector<32x32xf32> to vector<1x32x32xf32>
    %67 = tpu.concatenate %63, %64, %65, %66 in 0 : vector<1x32x32xf32>, vector<1x32x32xf32>, vector<1x32x32xf32>, vector<1x32x32xf32> -> vector<4x32x32xf32>
    %68 = arith.truncf %49 : vector<4x32x32xf32> to vector<4x32x32xbf16>
    %69 = arith.truncf %58 : vector<4x32x32xf32> to vector<4x32x32xbf16>
    "tpu.trace_start"() <{level = 10 : i32, message = "hqd,hkd->hqk"}> : () -> ()
    %cst_21 = arith.constant dense<0.000000e+00> : vector<4x32x32xf32>
    %70 = tpu.matmul %68, %69, %cst_21 {dimension_numbers = #tpu.dot_dimension_numbers<[2], [2], [1], [1], [0, 0, 0, 1, 1, 1], [0], [0]>} : vector<4x32x32xbf16>, vector<4x32x32xbf16>, vector<4x32x32xf32> -> vector<4x32x32xf32>
    "tpu.trace_stop"() : () -> ()
    %71 = vector.shape_cast %25 : vector<32x32xf32> to vector<1x32x32xf32>
    %72 = vector.broadcast %71 : vector<1x32x32xf32> to vector<4x32x32xf32>
    %73 = arith.addf %70, %72 : vector<4x32x32xf32>
    %cst_22 = arith.constant dense<0xFF800000> : vector<4x32xf32>
    %74 = vector.multi_reduction <maximumf>, %73, %cst_22 [2] : vector<4x32x32xf32> to vector<4x32xf32>
    %75 = vector.shape_cast %74 : vector<4x32xf32> to vector<4x32x1xf32>
    %76 = vector.broadcast %75 : vector<4x32x1xf32> to vector<4x32x32xf32>
    %77 = arith.subf %73, %76 : vector<4x32x32xf32>
    %78 = math.exp %77 : vector<4x32x32xf32>
    %cst_23 = arith.constant dense<0.000000e+00> : vector<4x32xf32>
    %79 = vector.multi_reduction <add>, %78, %cst_23 [2] : vector<4x32x32xf32> to vector<4x32xf32>
    %80 = vector.shape_cast %79 : vector<4x32xf32> to vector<4x32x1xf32>
    %81 = tpu.reciprocal %80 {approx = true} : vector<4x32x1xf32> -> vector<4x32x1xf32>
    %82 = vector.broadcast %81 : vector<4x32x1xf32> to vector<4x32x32xf32>
    %83 = arith.mulf %78, %82 : vector<4x32x32xf32>
    %84 = arith.truncf %83 : vector<4x32x32xf32> to vector<4x32x32xbf16>
    %85 = arith.truncf %67 : vector<4x32x32xf32> to vector<4x32x32xbf16>
    "tpu.trace_start"() <{level = 10 : i32, message = "hqk,hkd->hqd"}> : () -> ()
    %cst_24 = arith.constant dense<0.000000e+00> : vector<4x32x32xf32>
    %86 = tpu.matmul %84, %85, %cst_24 {dimension_numbers = #tpu.dot_dimension_numbers<[2], [1], [1], [2], [0, 0, 0, 1, 1, 2], [0], [0]>} : vector<4x32x32xbf16>, vector<4x32x32xbf16>, vector<4x32x32xf32> -> vector<4x32x32xf32>
    "tpu.trace_stop"() : () -> ()
    %87 = vector.extract_strided_slice %86 {offsets = [0, 0, 0], sizes = [1, 32, 32], strides = [1, 1, 1]} : vector<4x32x32xf32> to vector<1x32x32xf32>
    %88 = vector.shape_cast %87 : vector<1x32x32xf32> to vector<32x32xf32>
    %89 = vector.extract_strided_slice %86 {offsets = [1, 0, 0], sizes = [1, 32, 32], strides = [1, 1, 1]} : vector<4x32x32xf32> to vector<1x32x32xf32>
    %90 = vector.shape_cast %89 : vector<1x32x32xf32> to vector<32x32xf32>
    %91 = vector.extract_strided_slice %86 {offsets = [2, 0, 0], sizes = [1, 32, 32], strides = [1, 1, 1]} : vector<4x32x32xf32> to vector<1x32x32xf32>
    %92 = vector.shape_cast %91 : vector<1x32x32xf32> to vector<32x32xf32>
    %93 = vector.extract_strided_slice %86 {offsets = [3, 0, 0], sizes = [1, 32, 32], strides = [1, 1, 1]} : vector<4x32x32xf32> to vector<1x32x32xf32>
    %94 = vector.shape_cast %93 : vector<1x32x32xf32> to vector<32x32xf32>
    %95 = tpu.concatenate %88, %90, %92, %94 in 1 : vector<32x32xf32>, vector<32x32xf32>, vector<32x32xf32>, vector<32x32xf32> -> vector<32x128xf32>
    %c0_25 = arith.constant 0 : index
    %c0_26 = arith.constant 0 : index
    %c0_27 = arith.constant 0 : index
    %96 = vector.load %arg5[%c0_25, %c0_26, %c0_27] : memref<2x128x128xbf16, #tpu.memory_space<vmem>>, vector<1x128x128xbf16>
    %97 = vector.shape_cast %96 : vector<1x128x128xbf16> to vector<128x128xbf16>
    %98 = arith.truncf %95 : vector<32x128xf32> to vector<32x128xbf16>
    %cst_28 = arith.constant dense<0.000000e+00> : vector<32x128xf32>
    %99 = tpu.matmul %98, %97, %cst_28 {dimension_numbers = #tpu.dot_dimension_numbers<[1], [0], [0], [1], [0, 0, 1, 1], [], []>} : vector<32x128xbf16>, vector<128x128xbf16>, vector<32x128xf32> -> vector<32x128xf32>
    %100 = vector.extract_strided_slice %27 {offsets = [0, 0], sizes = [1, 128], strides = [1, 1]} : vector<6x128xf32> to vector<1x128xf32>
    %101 = vector.broadcast %100 : vector<1x128xf32> to vector<32x128xf32>
    %102 = arith.addf %99, %101 : vector<32x128xf32>
    %103 = arith.addf %24, %102 : vector<32x128xf32>
    %104 = vector.extract_strided_slice %27 {offsets = [1, 0], sizes = [1, 128], strides = [1, 1]} : vector<6x128xf32> to vector<1x128xf32>
    %105 = vector.extract_strided_slice %27 {offsets = [2, 0], sizes = [1, 128], strides = [1, 1]} : vector<6x128xf32> to vector<1x128xf32>
    %cst_29 = arith.constant dense<0.000000e+00> : vector<32xf32>
    %106 = vector.multi_reduction <add>, %103, %cst_29 [1] : vector<32x128xf32> to vector<32xf32>
    %107 = vector.shape_cast %106 : vector<32xf32> to vector<32x1xf32>
    %cst_30 = arith.constant 1.280000e+02 : f32
    %108 = vector.broadcast %cst_30 : f32 to vector<32x1xf32>
    %109 = arith.divf %107, %108 : vector<32x1xf32>
    %110 = vector.broadcast %109 : vector<32x1xf32> to vector<32x128xf32>
    %111 = arith.subf %103, %110 : vector<32x128xf32>
    %112 = arith.mulf %111, %111 : vector<32x128xf32>
    %cst_31 = arith.constant dense<0.000000e+00> : vector<32xf32>
    %113 = vector.multi_reduction <add>, %112, %cst_31 [1] : vector<32x128xf32> to vector<32xf32>
    %114 = vector.shape_cast %113 : vector<32xf32> to vector<32x1xf32>
    %cst_32 = arith.constant 1.280000e+02 : f32
    %115 = vector.broadcast %cst_32 : f32 to vector<32x1xf32>
    %116 = arith.divf %114, %115 : vector<32x1xf32>
    %117 = vector.broadcast %109 : vector<32x1xf32> to vector<32x128xf32>
    %118 = arith.subf %103, %117 : vector<32x128xf32>
    %cst_33 = arith.constant 9.99999996E-13 : f32
    %119 = vector.broadcast %cst_33 : f32 to vector<32x1xf32>
    %120 = arith.addf %116, %119 : vector<32x1xf32>
    %121 = math.rsqrt %120 : vector<32x1xf32>
    %122 = vector.broadcast %121 : vector<32x1xf32> to vector<32x128xf32>
    %123 = arith.mulf %118, %122 : vector<32x128xf32>
    %124 = vector.broadcast %104 : vector<1x128xf32> to vector<32x128xf32>
    %125 = arith.mulf %123, %124 : vector<32x128xf32>
    %126 = vector.broadcast %105 : vector<1x128xf32> to vector<32x128xf32>
    %127 = arith.addf %125, %126 : vector<32x128xf32>
    %c0_34 = arith.constant 0 : index
    %c0_35 = arith.constant 0 : index
    %c0_36 = arith.constant 0 : index
    %128 = vector.load %arg6[%c0_34, %c0_35, %c0_36] : memref<2x128x256xbf16, #tpu.memory_space<vmem>>, vector<1x128x256xbf16>
    %129 = vector.shape_cast %128 : vector<1x128x256xbf16> to vector<128x256xbf16>
    %130 = arith.truncf %127 : vector<32x128xf32> to vector<32x128xbf16>
    %cst_37 = arith.constant dense<0.000000e+00> : vector<32x256xf32>
    %131 = tpu.matmul %130, %129, %cst_37 {dimension_numbers = #tpu.dot_dimension_numbers<[1], [0], [0], [1], [0, 0, 1, 1], [], []>} : vector<32x128xbf16>, vector<128x256xbf16>, vector<32x256xf32> -> vector<32x256xf32>
    %c0_38 = arith.constant 0 : index
    %c0_39 = arith.constant 0 : index
    %c0_40 = arith.constant 0 : index
    %132 = vector.load %arg9[%c0_38, %c0_39, %c0_40] : memref<2x1x256xf32, #tpu.memory_space<vmem>>, vector<1x1x256xf32>
    %133 = vector.shape_cast %132 : vector<1x1x256xf32> to vector<1x256xf32>
    %134 = vector.broadcast %133 : vector<1x256xf32> to vector<32x256xf32>
    %135 = arith.addf %131, %134 : vector<32x256xf32>
    %136 = arith.mulf %135, %135 : vector<32x256xf32>
    %137 = arith.mulf %135, %136 : vector<32x256xf32>
    %cst_41 = arith.constant 4.471500e-02 : f32
    %138 = vector.broadcast %cst_41 : f32 to vector<32x256xf32>
    %139 = arith.mulf %138, %137 : vector<32x256xf32>
    %140 = arith.addf %135, %139 : vector<32x256xf32>
    %cst_42 = arith.constant 0.797884583 : f32
    %141 = vector.broadcast %cst_42 : f32 to vector<32x256xf32>
    %142 = arith.mulf %141, %140 : vector<32x256xf32>
    %143 = math.tanh %142 : vector<32x256xf32>
    %cst_43 = arith.constant 1.000000e+00 : f32
    %144 = vector.broadcast %cst_43 : f32 to vector<32x256xf32>
    %145 = arith.addf %144, %143 : vector<32x256xf32>
    %cst_44 = arith.constant 5.000000e-01 : f32
    %146 = vector.broadcast %cst_44 : f32 to vector<32x256xf32>
    %147 = arith.mulf %146, %145 : vector<32x256xf32>
    %148 = arith.mulf %135, %147 : vector<32x256xf32>
    %c0_45 = arith.constant 0 : index
    %c0_46 = arith.constant 0 : index
    %c0_47 = arith.constant 0 : index
    %149 = vector.load %arg7[%c0_45, %c0_46, %c0_47] : memref<2x256x128xbf16, #tpu.memory_space<vmem>>, vector<1x256x128xbf16>
    %150 = vector.shape_cast %149 : vector<1x256x128xbf16> to vector<256x128xbf16>
    %151 = arith.truncf %148 : vector<32x256xf32> to vector<32x256xbf16>
    %cst_48 = arith.constant dense<0.000000e+00> : vector<32x128xf32>
    %152 = tpu.matmul %151, %150, %cst_48 {dimension_numbers = #tpu.dot_dimension_numbers<[1], [0], [0], [1], [0, 0, 1, 1], [], []>} : vector<32x256xbf16>, vector<256x128xbf16>, vector<32x128xf32> -> vector<32x128xf32>
    %153 = vector.extract_strided_slice %27 {offsets = [3, 0], sizes = [1, 128], strides = [1, 1]} : vector<6x128xf32> to vector<1x128xf32>
    %154 = vector.broadcast %153 : vector<1x128xf32> to vector<32x128xf32>
    %155 = arith.addf %152, %154 : vector<32x128xf32>
    %156 = arith.addf %127, %155 : vector<32x128xf32>
    %157 = vector.extract_strided_slice %27 {offsets = [4, 0], sizes = [1, 128], strides = [1, 1]} : vector<6x128xf32> to vector<1x128xf32>
    %158 = vector.extract_strided_slice %27 {offsets = [5, 0], sizes = [1, 128], strides = [1, 1]} : vector<6x128xf32> to vector<1x128xf32>
    %cst_49 = arith.constant dense<0.000000e+00> : vector<32xf32>
    %159 = vector.multi_reduction <add>, %156, %cst_49 [1] : vector<32x128xf32> to vector<32xf32>
    %160 = vector.shape_cast %159 : vector<32xf32> to vector<32x1xf32>
    %cst_50 = arith.constant 1.280000e+02 : f32
    %161 = vector.broadcast %cst_50 : f32 to vector<32x1xf32>
    %162 = arith.divf %160, %161 : vector<32x1xf32>
    %163 = vector.broadcast %162 : vector<32x1xf32> to vector<32x128xf32>
    %164 = arith.subf %156, %163 : vector<32x128xf32>
    %165 = arith.mulf %164, %164 : vector<32x128xf32>
    %cst_51 = arith.constant dense<0.000000e+00> : vector<32xf32>
    %166 = vector.multi_reduction <add>, %165, %cst_51 [1] : vector<32x128xf32> to vector<32xf32>
    %167 = vector.shape_cast %166 : vector<32xf32> to vector<32x1xf32>
    %cst_52 = arith.constant 1.280000e+02 : f32
    %168 = vector.broadcast %cst_52 : f32 to vector<32x1xf32>
    %169 = arith.divf %167, %168 : vector<32x1xf32>
    %170 = vector.broadcast %162 : vector<32x1xf32> to vector<32x128xf32>
    %171 = arith.subf %156, %170 : vector<32x128xf32>
    %cst_53 = arith.constant 9.99999996E-13 : f32
    %172 = vector.broadcast %cst_53 : f32 to vector<32x1xf32>
    %173 = arith.addf %169, %172 : vector<32x1xf32>
    %174 = math.rsqrt %173 : vector<32x1xf32>
    %175 = vector.broadcast %174 : vector<32x1xf32> to vector<32x128xf32>
    %176 = arith.mulf %171, %175 : vector<32x128xf32>
    %177 = vector.broadcast %157 : vector<1x128xf32> to vector<32x128xf32>
    %178 = arith.mulf %176, %177 : vector<32x128xf32>
    %179 = vector.broadcast %158 : vector<1x128xf32> to vector<32x128xf32>
    %180 = arith.addf %178, %179 : vector<32x128xf32>
    %c1_54 = arith.constant 1 : index
    %c0_55 = arith.constant 0 : index
    %c0_56 = arith.constant 0 : index
    %181 = vector.load %arg10[%c1_54, %c0_55, %c0_56] : memref<2x6x128xf32, #tpu.memory_space<vmem>>, vector<1x6x128xf32>
    %182 = vector.shape_cast %181 : vector<1x6x128xf32> to vector<6x128xf32>
    %c1_57 = arith.constant 1 : index
    %c0_58 = arith.constant 0 : index
    %c0_59 = arith.constant 0 : index
    %183 = vector.load %arg4[%c1_57, %c0_58, %c0_59] : memref<2x128x384xbf16, #tpu.memory_space<vmem>>, vector<1x128x384xbf16>
    %184 = vector.shape_cast %183 : vector<1x128x384xbf16> to vector<128x384xbf16>
    %185 = arith.truncf %180 : vector<32x128xf32> to vector<32x128xbf16>
    %cst_60 = arith.constant dense<0.000000e+00> : vector<32x384xf32>
    %186 = tpu.matmul %185, %184, %cst_60 {dimension_numbers = #tpu.dot_dimension_numbers<[1], [0], [0], [1], [0, 0, 1, 1], [], []>} : vector<32x128xbf16>, vector<128x384xbf16>, vector<32x384xf32> -> vector<32x384xf32>
    %c1_61 = arith.constant 1 : index
    %c0_62 = arith.constant 0 : index
    %c0_63 = arith.constant 0 : index
    %187 = vector.load %arg8[%c1_61, %c0_62, %c0_63] : memref<2x1x384xf32, #tpu.memory_space<vmem>>, vector<1x1x384xf32>
    %188 = vector.shape_cast %187 : vector<1x1x384xf32> to vector<1x384xf32>
    %189 = vector.broadcast %188 : vector<1x384xf32> to vector<32x384xf32>
    %190 = arith.addf %186, %189 : vector<32x384xf32>
    %191 = vector.extract_strided_slice %190 {offsets = [0, 0], sizes = [32, 128], strides = [1, 1]} : vector<32x384xf32> to vector<32x128xf32>
    %cst_64 = arith.constant 0.176776692 : f32
    %192 = vector.broadcast %cst_64 : f32 to vector<32x128xf32>
    %193 = arith.mulf %191, %192 : vector<32x128xf32>
    %194 = vector.extract_strided_slice %190 {offsets = [0, 128], sizes = [32, 128], strides = [1, 1]} : vector<32x384xf32> to vector<32x128xf32>
    %195 = vector.extract_strided_slice %190 {offsets = [0, 256], sizes = [32, 128], strides = [1, 1]} : vector<32x384xf32> to vector<32x128xf32>
    %196 = vector.extract_strided_slice %193 {offsets = [0, 0], sizes = [32, 32], strides = [1, 1]} : vector<32x128xf32> to vector<32x32xf32>
    %197 = vector.extract_strided_slice %193 {offsets = [0, 32], sizes = [32, 32], strides = [1, 1]} : vector<32x128xf32> to vector<32x32xf32>
    %198 = vector.extract_strided_slice %193 {offsets = [0, 64], sizes = [32, 32], strides = [1, 1]} : vector<32x128xf32> to vector<32x32xf32>
    %199 = vector.extract_strided_slice %193 {offsets = [0, 96], sizes = [32, 32], strides = [1, 1]} : vector<32x128xf32> to vector<32x32xf32>
    %200 = vector.shape_cast %196 : vector<32x32xf32> to vector<1x32x32xf32>
    %201 = vector.shape_cast %197 : vector<32x32xf32> to vector<1x32x32xf32>
    %202 = vector.shape_cast %198 : vector<32x32xf32> to vector<1x32x32xf32>
    %203 = vector.shape_cast %199 : vector<32x32xf32> to vector<1x32x32xf32>
    %204 = tpu.concatenate %200, %201, %202, %203 in 0 : vector<1x32x32xf32>, vector<1x32x32xf32>, vector<1x32x32xf32>, vector<1x32x32xf32> -> vector<4x32x32xf32>
    %205 = vector.extract_strided_slice %194 {offsets = [0, 0], sizes = [32, 32], strides = [1, 1]} : vector<32x128xf32> to vector<32x32xf32>
    %206 = vector.extract_strided_slice %194 {offsets = [0, 32], sizes = [32, 32], strides = [1, 1]} : vector<32x128xf32> to vector<32x32xf32>
    %207 = vector.extract_strided_slice %194 {offsets = [0, 64], sizes = [32, 32], strides = [1, 1]} : vector<32x128xf32> to vector<32x32xf32>
    %208 = vector.extract_strided_slice %194 {offsets = [0, 96], sizes = [32, 32], strides = [1, 1]} : vector<32x128xf32> to vector<32x32xf32>
    %209 = vector.shape_cast %205 : vector<32x32xf32> to vector<1x32x32xf32>
    %210 = vector.shape_cast %206 : vector<32x32xf32> to vector<1x32x32xf32>
    %211 = vector.shape_cast %207 : vector<32x32xf32> to vector<1x32x32xf32>
    %212 = vector.shape_cast %208 : vector<32x32xf32> to vector<1x32x32xf32>
    %213 = tpu.concatenate %209, %210, %211, %212 in 0 : vector<1x32x32xf32>, vector<1x32x32xf32>, vector<1x32x32xf32>, vector<1x32x32xf32> -> vector<4x32x32xf32>
    %214 = vector.extract_strided_slice %195 {offsets = [0, 0], sizes = [32, 32], strides = [1, 1]} : vector<32x128xf32> to vector<32x32xf32>
    %215 = vector.extract_strided_slice %195 {offsets = [0, 32], sizes = [32, 32], strides = [1, 1]} : vector<32x128xf32> to vector<32x32xf32>
    %216 = vector.extract_strided_slice %195 {offsets = [0, 64], sizes = [32, 32], strides = [1, 1]} : vector<32x128xf32> to vector<32x32xf32>
    %217 = vector.extract_strided_slice %195 {offsets = [0, 96], sizes = [32, 32], strides = [1, 1]} : vector<32x128xf32> to vector<32x32xf32>
    %218 = vector.shape_cast %214 : vector<32x32xf32> to vector<1x32x32xf32>
    %219 = vector.shape_cast %215 : vector<32x32xf32> to vector<1x32x32xf32>
    %220 = vector.shape_cast %216 : vector<32x32xf32> to vector<1x32x32xf32>
    %221 = vector.shape_cast %217 : vector<32x32xf32> to vector<1x32x32xf32>
    %222 = tpu.concatenate %218, %219, %220, %221 in 0 : vector<1x32x32xf32>, vector<1x32x32xf32>, vector<1x32x32xf32>, vector<1x32x32xf32> -> vector<4x32x32xf32>
    %223 = arith.truncf %204 : vector<4x32x32xf32> to vector<4x32x32xbf16>
    %224 = arith.truncf %213 : vector<4x32x32xf32> to vector<4x32x32xbf16>
    "tpu.trace_start"() <{level = 10 : i32, message = "hqd,hkd->hqk"}> : () -> ()
    %cst_65 = arith.constant dense<0.000000e+00> : vector<4x32x32xf32>
    %225 = tpu.matmul %223, %224, %cst_65 {dimension_numbers = #tpu.dot_dimension_numbers<[2], [2], [1], [1], [0, 0, 0, 1, 1, 1], [0], [0]>} : vector<4x32x32xbf16>, vector<4x32x32xbf16>, vector<4x32x32xf32> -> vector<4x32x32xf32>
    "tpu.trace_stop"() : () -> ()
    %226 = vector.shape_cast %25 : vector<32x32xf32> to vector<1x32x32xf32>
    %227 = vector.broadcast %226 : vector<1x32x32xf32> to vector<4x32x32xf32>
    %228 = arith.addf %225, %227 : vector<4x32x32xf32>
    %cst_66 = arith.constant dense<0xFF800000> : vector<4x32xf32>
    %229 = vector.multi_reduction <maximumf>, %228, %cst_66 [2] : vector<4x32x32xf32> to vector<4x32xf32>
    %230 = vector.shape_cast %229 : vector<4x32xf32> to vector<4x32x1xf32>
    %231 = vector.broadcast %230 : vector<4x32x1xf32> to vector<4x32x32xf32>
    %232 = arith.subf %228, %231 : vector<4x32x32xf32>
    %233 = math.exp %232 : vector<4x32x32xf32>
    %cst_67 = arith.constant dense<0.000000e+00> : vector<4x32xf32>
    %234 = vector.multi_reduction <add>, %233, %cst_67 [2] : vector<4x32x32xf32> to vector<4x32xf32>
    %235 = vector.shape_cast %234 : vector<4x32xf32> to vector<4x32x1xf32>
    %236 = tpu.reciprocal %235 {approx = true} : vector<4x32x1xf32> -> vector<4x32x1xf32>
    %237 = vector.broadcast %236 : vector<4x32x1xf32> to vector<4x32x32xf32>
    %238 = arith.mulf %233, %237 : vector<4x32x32xf32>
    %239 = arith.truncf %238 : vector<4x32x32xf32> to vector<4x32x32xbf16>
    %240 = arith.truncf %222 : vector<4x32x32xf32> to vector<4x32x32xbf16>
    "tpu.trace_start"() <{level = 10 : i32, message = "hqk,hkd->hqd"}> : () -> ()
    %cst_68 = arith.constant dense<0.000000e+00> : vector<4x32x32xf32>
    %241 = tpu.matmul %239, %240, %cst_68 {dimension_numbers = #tpu.dot_dimension_numbers<[2], [1], [1], [2], [0, 0, 0, 1, 1, 2], [0], [0]>} : vector<4x32x32xbf16>, vector<4x32x32xbf16>, vector<4x32x32xf32> -> vector<4x32x32xf32>
    "tpu.trace_stop"() : () -> ()
    %242 = vector.extract_strided_slice %241 {offsets = [0, 0, 0], sizes = [1, 32, 32], strides = [1, 1, 1]} : vector<4x32x32xf32> to vector<1x32x32xf32>
    %243 = vector.shape_cast %242 : vector<1x32x32xf32> to vector<32x32xf32>
    %244 = vector.extract_strided_slice %241 {offsets = [1, 0, 0], sizes = [1, 32, 32], strides = [1, 1, 1]} : vector<4x32x32xf32> to vector<1x32x32xf32>
    %245 = vector.shape_cast %244 : vector<1x32x32xf32> to vector<32x32xf32>
    %246 = vector.extract_strided_slice %241 {offsets = [2, 0, 0], sizes = [1, 32, 32], strides = [1, 1, 1]} : vector<4x32x32xf32> to vector<1x32x32xf32>
    %247 = vector.shape_cast %246 : vector<1x32x32xf32> to vector<32x32xf32>
    %248 = vector.extract_strided_slice %241 {offsets = [3, 0, 0], sizes = [1, 32, 32], strides = [1, 1, 1]} : vector<4x32x32xf32> to vector<1x32x32xf32>
    %249 = vector.shape_cast %248 : vector<1x32x32xf32> to vector<32x32xf32>
    %250 = tpu.concatenate %243, %245, %247, %249 in 1 : vector<32x32xf32>, vector<32x32xf32>, vector<32x32xf32>, vector<32x32xf32> -> vector<32x128xf32>
    %c1_69 = arith.constant 1 : index
    %c0_70 = arith.constant 0 : index
    %c0_71 = arith.constant 0 : index
    %251 = vector.load %arg5[%c1_69, %c0_70, %c0_71] : memref<2x128x128xbf16, #tpu.memory_space<vmem>>, vector<1x128x128xbf16>
    %252 = vector.shape_cast %251 : vector<1x128x128xbf16> to vector<128x128xbf16>
    %253 = arith.truncf %250 : vector<32x128xf32> to vector<32x128xbf16>
    %cst_72 = arith.constant dense<0.000000e+00> : vector<32x128xf32>
    %254 = tpu.matmul %253, %252, %cst_72 {dimension_numbers = #tpu.dot_dimension_numbers<[1], [0], [0], [1], [0, 0, 1, 1], [], []>} : vector<32x128xbf16>, vector<128x128xbf16>, vector<32x128xf32> -> vector<32x128xf32>
    %255 = vector.extract_strided_slice %182 {offsets = [0, 0], sizes = [1, 128], strides = [1, 1]} : vector<6x128xf32> to vector<1x128xf32>
    %256 = vector.broadcast %255 : vector<1x128xf32> to vector<32x128xf32>
    %257 = arith.addf %254, %256 : vector<32x128xf32>
    %258 = arith.addf %180, %257 : vector<32x128xf32>
    %259 = vector.extract_strided_slice %182 {offsets = [1, 0], sizes = [1, 128], strides = [1, 1]} : vector<6x128xf32> to vector<1x128xf32>
    %260 = vector.extract_strided_slice %182 {offsets = [2, 0], sizes = [1, 128], strides = [1, 1]} : vector<6x128xf32> to vector<1x128xf32>
    %cst_73 = arith.constant dense<0.000000e+00> : vector<32xf32>
    %261 = vector.multi_reduction <add>, %258, %cst_73 [1] : vector<32x128xf32> to vector<32xf32>
    %262 = vector.shape_cast %261 : vector<32xf32> to vector<32x1xf32>
    %cst_74 = arith.constant 1.280000e+02 : f32
    %263 = vector.broadcast %cst_74 : f32 to vector<32x1xf32>
    %264 = arith.divf %262, %263 : vector<32x1xf32>
    %265 = vector.broadcast %264 : vector<32x1xf32> to vector<32x128xf32>
    %266 = arith.subf %258, %265 : vector<32x128xf32>
    %267 = arith.mulf %266, %266 : vector<32x128xf32>
    %cst_75 = arith.constant dense<0.000000e+00> : vector<32xf32>
    %268 = vector.multi_reduction <add>, %267, %cst_75 [1] : vector<32x128xf32> to vector<32xf32>
    %269 = vector.shape_cast %268 : vector<32xf32> to vector<32x1xf32>
    %cst_76 = arith.constant 1.280000e+02 : f32
    %270 = vector.broadcast %cst_76 : f32 to vector<32x1xf32>
    %271 = arith.divf %269, %270 : vector<32x1xf32>
    %272 = vector.broadcast %264 : vector<32x1xf32> to vector<32x128xf32>
    %273 = arith.subf %258, %272 : vector<32x128xf32>
    %cst_77 = arith.constant 9.99999996E-13 : f32
    %274 = vector.broadcast %cst_77 : f32 to vector<32x1xf32>
    %275 = arith.addf %271, %274 : vector<32x1xf32>
    %276 = math.rsqrt %275 : vector<32x1xf32>
    %277 = vector.broadcast %276 : vector<32x1xf32> to vector<32x128xf32>
    %278 = arith.mulf %273, %277 : vector<32x128xf32>
    %279 = vector.broadcast %259 : vector<1x128xf32> to vector<32x128xf32>
    %280 = arith.mulf %278, %279 : vector<32x128xf32>
    %281 = vector.broadcast %260 : vector<1x128xf32> to vector<32x128xf32>
    %282 = arith.addf %280, %281 : vector<32x128xf32>
    %c1_78 = arith.constant 1 : index
    %c0_79 = arith.constant 0 : index
    %c0_80 = arith.constant 0 : index
    %283 = vector.load %arg6[%c1_78, %c0_79, %c0_80] : memref<2x128x256xbf16, #tpu.memory_space<vmem>>, vector<1x128x256xbf16>
    %284 = vector.shape_cast %283 : vector<1x128x256xbf16> to vector<128x256xbf16>
    %285 = arith.truncf %282 : vector<32x128xf32> to vector<32x128xbf16>
    %cst_81 = arith.constant dense<0.000000e+00> : vector<32x256xf32>
    %286 = tpu.matmul %285, %284, %cst_81 {dimension_numbers = #tpu.dot_dimension_numbers<[1], [0], [0], [1], [0, 0, 1, 1], [], []>} : vector<32x128xbf16>, vector<128x256xbf16>, vector<32x256xf32> -> vector<32x256xf32>
    %c1_82 = arith.constant 1 : index
    %c0_83 = arith.constant 0 : index
    %c0_84 = arith.constant 0 : index
    %287 = vector.load %arg9[%c1_82, %c0_83, %c0_84] : memref<2x1x256xf32, #tpu.memory_space<vmem>>, vector<1x1x256xf32>
    %288 = vector.shape_cast %287 : vector<1x1x256xf32> to vector<1x256xf32>
    %289 = vector.broadcast %288 : vector<1x256xf32> to vector<32x256xf32>
    %290 = arith.addf %286, %289 : vector<32x256xf32>
    %291 = arith.mulf %290, %290 : vector<32x256xf32>
    %292 = arith.mulf %290, %291 : vector<32x256xf32>
    %cst_85 = arith.constant 4.471500e-02 : f32
    %293 = vector.broadcast %cst_85 : f32 to vector<32x256xf32>
    %294 = arith.mulf %293, %292 : vector<32x256xf32>
    %295 = arith.addf %290, %294 : vector<32x256xf32>
    %cst_86 = arith.constant 0.797884583 : f32
    %296 = vector.broadcast %cst_86 : f32 to vector<32x256xf32>
    %297 = arith.mulf %296, %295 : vector<32x256xf32>
    %298 = math.tanh %297 : vector<32x256xf32>
    %cst_87 = arith.constant 1.000000e+00 : f32
    %299 = vector.broadcast %cst_87 : f32 to vector<32x256xf32>
    %300 = arith.addf %299, %298 : vector<32x256xf32>
    %cst_88 = arith.constant 5.000000e-01 : f32
    %301 = vector.broadcast %cst_88 : f32 to vector<32x256xf32>
    %302 = arith.mulf %301, %300 : vector<32x256xf32>
    %303 = arith.mulf %290, %302 : vector<32x256xf32>
    %c1_89 = arith.constant 1 : index
    %c0_90 = arith.constant 0 : index
    %c0_91 = arith.constant 0 : index
    %304 = vector.load %arg7[%c1_89, %c0_90, %c0_91] : memref<2x256x128xbf16, #tpu.memory_space<vmem>>, vector<1x256x128xbf16>
    %305 = vector.shape_cast %304 : vector<1x256x128xbf16> to vector<256x128xbf16>
    %306 = arith.truncf %303 : vector<32x256xf32> to vector<32x256xbf16>
    %cst_92 = arith.constant dense<0.000000e+00> : vector<32x128xf32>
    %307 = tpu.matmul %306, %305, %cst_92 {dimension_numbers = #tpu.dot_dimension_numbers<[1], [0], [0], [1], [0, 0, 1, 1], [], []>} : vector<32x256xbf16>, vector<256x128xbf16>, vector<32x128xf32> -> vector<32x128xf32>
    %308 = vector.extract_strided_slice %182 {offsets = [3, 0], sizes = [1, 128], strides = [1, 1]} : vector<6x128xf32> to vector<1x128xf32>
    %309 = vector.broadcast %308 : vector<1x128xf32> to vector<32x128xf32>
    %310 = arith.addf %307, %309 : vector<32x128xf32>
    %311 = arith.addf %282, %310 : vector<32x128xf32>
    %312 = vector.extract_strided_slice %182 {offsets = [4, 0], sizes = [1, 128], strides = [1, 1]} : vector<6x128xf32> to vector<1x128xf32>
    %313 = vector.extract_strided_slice %182 {offsets = [5, 0], sizes = [1, 128], strides = [1, 1]} : vector<6x128xf32> to vector<1x128xf32>
    %cst_93 = arith.constant dense<0.000000e+00> : vector<32xf32>
    %314 = vector.multi_reduction <add>, %311, %cst_93 [1] : vector<32x128xf32> to vector<32xf32>
    %315 = vector.shape_cast %314 : vector<32xf32> to vector<32x1xf32>
    %cst_94 = arith.constant 1.280000e+02 : f32
    %316 = vector.broadcast %cst_94 : f32 to vector<32x1xf32>
    %317 = arith.divf %315, %316 : vector<32x1xf32>
    %318 = vector.broadcast %317 : vector<32x1xf32> to vector<32x128xf32>
    %319 = arith.subf %311, %318 : vector<32x128xf32>
    %320 = arith.mulf %319, %319 : vector<32x128xf32>
    %cst_95 = arith.constant dense<0.000000e+00> : vector<32xf32>
    %321 = vector.multi_reduction <add>, %320, %cst_95 [1] : vector<32x128xf32> to vector<32xf32>
    %322 = vector.shape_cast %321 : vector<32xf32> to vector<32x1xf32>
    %cst_96 = arith.constant 1.280000e+02 : f32
    %323 = vector.broadcast %cst_96 : f32 to vector<32x1xf32>
    %324 = arith.divf %322, %323 : vector<32x1xf32>
    %325 = vector.broadcast %317 : vector<32x1xf32> to vector<32x128xf32>
    %326 = arith.subf %311, %325 : vector<32x128xf32>
    %cst_97 = arith.constant 9.99999996E-13 : f32
    %327 = vector.broadcast %cst_97 : f32 to vector<32x1xf32>
    %328 = arith.addf %324, %327 : vector<32x1xf32>
    %329 = math.rsqrt %328 : vector<32x1xf32>
    %330 = vector.broadcast %329 : vector<32x1xf32> to vector<32x128xf32>
    %331 = arith.mulf %326, %330 : vector<32x128xf32>
    %332 = vector.broadcast %312 : vector<1x128xf32> to vector<32x128xf32>
    %333 = arith.mulf %331, %332 : vector<32x128xf32>
    %334 = vector.broadcast %313 : vector<1x128xf32> to vector<32x128xf32>
    %335 = arith.addf %333, %334 : vector<32x128xf32>
    %336 = vector.extract_strided_slice %335 {offsets = [0, 0], sizes = [1, 128], strides = [1, 1]} : vector<32x128xf32> to vector<1x128xf32>
    %337 = vector.extract_strided_slice %335 {offsets = [16, 0], sizes = [1, 128], strides = [1, 1]} : vector<32x128xf32> to vector<1x128xf32>
    %338 = tpu.concatenate %336, %337 in 0 : vector<1x128xf32>, vector<1x128xf32> -> vector<2x128xf32>
    %c0_98 = arith.constant 0 : index
    %c0_99 = arith.constant 0 : index
    %339 = vector.load %arg11[%c0_98, %c0_99] : memref<128x128xbf16, #tpu.memory_space<vmem>>, vector<128x128xbf16>
    %340 = arith.truncf %338 : vector<2x128xf32> to vector<2x128xbf16>
    %cst_100 = arith.constant dense<0.000000e+00> : vector<2x128xf32>
    %341 = tpu.matmul %340, %339, %cst_100 {dimension_numbers = #tpu.dot_dimension_numbers<[1], [0], [0], [1], [0, 0, 1, 1], [], []>} : vector<2x128xbf16>, vector<128x128xbf16>, vector<2x128xf32> -> vector<2x128xf32>
    %c0_101 = arith.constant 0 : index
    %c0_102 = arith.constant 0 : index
    %342 = vector.load %arg12[%c0_101, %c0_102] : memref<1x128xf32, #tpu.memory_space<vmem>>, vector<1x128xf32>
    %343 = vector.broadcast %342 : vector<1x128xf32> to vector<2x128xf32>
    %344 = arith.addf %341, %343 : vector<2x128xf32>
    %345 = math.tanh %344 : vector<2x128xf32>
    %c0_103 = arith.constant 0 : index
    %c0_104 = arith.constant 0 : index
    %346 = vector.load %arg13[%c0_103, %c0_104] : memref<128x128xbf16, #tpu.memory_space<vmem>>, vector<128x128xbf16>
    %347 = arith.truncf %345 : vector<2x128xf32> to vector<2x128xbf16>
    %cst_105 = arith.constant dense<0.000000e+00> : vector<2x128xf32>
    %348 = tpu.matmul %347, %346, %cst_105 {dimension_numbers = #tpu.dot_dimension_numbers<[1], [0], [0], [1], [0, 0, 1, 1], [], []>} : vector<2x128xbf16>, vector<128x128xbf16>, vector<2x128xf32> -> vector<2x128xf32>
    %c0_106 = arith.constant 0 : index
    %c0_107 = arith.constant 0 : index
    %349 = vector.load %arg14[%c0_106, %c0_107] : memref<1x128xf32, #tpu.memory_space<vmem>>, vector<1x128xf32>
    %350 = vector.broadcast %349 : vector<1x128xf32> to vector<2x128xf32>
    %351 = arith.addf %348, %350 : vector<2x128xf32>
    %c0_108 = arith.constant 0 : index
    %c0_109 = arith.constant 0 : index
    %352 = vector.load %arg15[%c0_108, %c0_109] : memref<2x128xf32, #tpu.memory_space<vmem>>, vector<2x128xf32>
    tpu.vector_store %arg15[%c0_108, %c0_109], %351 {strides = array<i32>} : memref<2x128xf32, #tpu.memory_space<vmem>>, vector<2x128xf32>,
    return
  }
  func.func @transform_0(%arg0: i32) -> (i32, i32) {
    %c0_i32 = arith.constant 0 : i32
    %c0_i32_0 = arith.constant 0 : i32
    %c0_i32_1 = arith.constant 0 : i32
    return %c0_i32, %c0_i32_0 : i32, i32
  }
  func.func @transform_1(%arg0: i32) -> (i32, i32) {
    %c0_i32 = arith.constant 0 : i32
    %c0_i32_0 = arith.constant 0 : i32
    %c0_i32_1 = arith.constant 0 : i32
    return %c0_i32, %c0_i32_0 : i32, i32
  }
  func.func @transform_2(%arg0: i32) -> (i32, i32) {
    %c0_i32 = arith.constant 0 : i32
    %c0_i32_0 = arith.constant 0 : i32
    %c0_i32_1 = arith.constant 0 : i32
    return %c0_i32, %c0_i32_0 : i32, i32
  }
  func.func @transform_3(%arg0: i32) -> (i32, i32, i32) {
    %c0_i32 = arith.constant 0 : i32
    %c0_i32_0 = arith.constant 0 : i32
    %c0_i32_1 = arith.constant 0 : i32
    %c0_i32_2 = arith.constant 0 : i32
    return %c0_i32, %c0_i32_0, %c0_i32_1 : i32, i32, i32
  }
  func.func @transform_4(%arg0: i32) -> (i32, i32, i32) {
    %c0_i32 = arith.constant 0 : i32
    %c0_i32_0 = arith.constant 0 : i32
    %c0_i32_1 = arith.constant 0 : i32
    %c0_i32_2 = arith.constant 0 : i32
    return %c0_i32, %c0_i32_0, %c0_i32_1 : i32, i32, i32
  }
  func.func @transform_5(%arg0: i32) -> (i32, i32, i32) {
    %c0_i32 = arith.constant 0 : i32
    %c0_i32_0 = arith.constant 0 : i32
    %c0_i32_1 = arith.constant 0 : i32
    %c0_i32_2 = arith.constant 0 : i32
    return %c0_i32, %c0_i32_0, %c0_i32_1 : i32, i32, i32
  }
  func.func @transform_6(%arg0: i32) -> (i32, i32, i32) {
    %c0_i32 = arith.constant 0 : i32
    %c0_i32_0 = arith.constant 0 : i32
    %c0_i32_1 = arith.constant 0 : i32
    %c0_i32_2 = arith.constant 0 : i32
    return %c0_i32, %c0_i32_0, %c0_i32_1 : i32, i32, i32
  }
  func.func @transform_7(%arg0: i32) -> (i32, i32, i32) {
    %c0_i32 = arith.constant 0 : i32
    %c0_i32_0 = arith.constant 0 : i32
    %c0_i32_1 = arith.constant 0 : i32
    %c0_i32_2 = arith.constant 0 : i32
    return %c0_i32, %c0_i32_0, %c0_i32_1 : i32, i32, i32
  }
  func.func @transform_8(%arg0: i32) -> (i32, i32, i32) {
    %c0_i32 = arith.constant 0 : i32
    %c0_i32_0 = arith.constant 0 : i32
    %c0_i32_1 = arith.constant 0 : i32
    %c0_i32_2 = arith.constant 0 : i32
    return %c0_i32, %c0_i32_0, %c0_i32_1 : i32, i32, i32
  }
  func.func @transform_9(%arg0: i32) -> (i32, i32, i32) {
    %c0_i32 = arith.constant 0 : i32
    %c0_i32_0 = arith.constant 0 : i32
    %c0_i32_1 = arith.constant 0 : i32
    %c0_i32_2 = arith.constant 0 : i32
    return %c0_i32, %c0_i32_0, %c0_i32_1 : i32, i32, i32
  }
  func.func @transform_10(%arg0: i32) -> (i32, i32) {
    %c0_i32 = arith.constant 0 : i32
    %c0_i32_0 = arith.constant 0 : i32
    %c0_i32_1 = arith.constant 0 : i32
    return %c0_i32, %c0_i32_0 : i32, i32
  }
  func.func @transform_11(%arg0: i32) -> (i32, i32) {
    %c0_i32 = arith.constant 0 : i32
    %c0_i32_0 = arith.constant 0 : i32
    %c0_i32_1 = arith.constant 0 : i32
    return %c0_i32, %c0_i32_0 : i32, i32
  }
  func.func @transform_12(%arg0: i32) -> (i32, i32) {
    %c0_i32 = arith.constant 0 : i32
    %c0_i32_0 = arith.constant 0 : i32
    %c0_i32_1 = arith.constant 0 : i32
    return %c0_i32, %c0_i32_0 : i32, i32
  }
  func.func @transform_13(%arg0: i32) -> (i32, i32) {
    %c0_i32 = arith.constant 0 : i32
    %c0_i32_0 = arith.constant 0 : i32
    %c0_i32_1 = arith.constant 0 : i32
    return %c0_i32, %c0_i32_0 : i32, i32
  }
  func.func @transform_14(%arg0: i32) -> (i32, i32) {
    %c0_i32 = arith.constant 0 : i32
    %c0_i32_0 = arith.constant 0 : i32
    %c0_i32_1 = arith.constant 0 : i32
    return %c0_i32, %c0_i32_0 : i32, i32
  }
}

</mosaic_0001>

<bundles_post_ra>
// kernel: bert_sent_clf_forward.1
= control target key start
LH: loop header
LB: loop body
LE: loop exit
PB: predicated region body
PF: predicated region fallthrough
CT: control target
= control target key end

     0   :  { %19 = vsyncpa [#allocation3], 0  ;;  %s6810_s0 = inlined_call_operand.vmem [shape: f32[32,128], index: 0, kind: input, shape index: {}]   ;;  %s6811_s1 = inlined_call_operand.vmem [shape: f32[32,32], index: 1, kind: input, shape index: {}]   ;;  %s6812_s2 = inlined_call_operand.hbm [shape: f32[2,128], index: 2, kind: input, shape index: {}]   ;;  %s6813_s3 = inlined_call_operand.vmem [shape: bf16[2,128,384], index: 3, kind: input, shape index: {}]   ;;  %s6814_s4 = inlined_call_operand.vmem [shape: bf16[2,128,128], index: 4, kind: input, shape index: {}]   ;;  %s6815_s5 = inlined_call_operand.vmem [shape: bf16[2,128,256], index: 5, kind: input, shape index: {}]   ;;  %s6816_s6 = inlined_call_operand.hbm [shape: bf16[2,256,128], index: 6, kind: input, shape index: {}]   ;;  %s6817_s7 = inlined_call_operand.vmem [shape: f32[2,1,384], index: 7, kind: input, shape index: {}]   ;;  %s6818_s8 = inlined_call_operand.vmem [shape: f32[2,1,256], index: 8, kind: input, shape index: {}]   ;;  %s6819_s9 = inlined_call_operand.vmem [shape: f32[2,6,128], index: 9, kind: input, shape index: {}]   ;;  %s6820_s10 = inlined_call_operand.vmem [shape: bf16[128,128], index: 10, kind: input, shape index: {}]   ;;  %s6821_s11 = inlined_call_operand.hbm [shape: f32[1,128], index: 11, kind: input, shape index: {}]   ;;  %s6822_s12 = inlined_call_operand.hbm [shape: bf16[128,128], index: 12, kind: input, shape index: {}]   ;;  %s6823_s13 = inlined_call_operand.vmem [shape: f32[1,128], index: 13, kind: input, shape index: {}]   ;;  %s6824_s14 = inlined_call_operand.hbm [shape: f32[2,128], index: 14, kind: output, shape index: {}]  }
   0x1   :  { %20 = vsyncpa [#allocation6], 0 }
   0x2   :  { %21 = vsyncpa [#allocation9], 0 }
   0x3   :  { %22 = vsyncpa [#allocation4], 0  ;;  %s5446_s29 = smov [#allocation5]   ;;  %s5328_s17 = scalar_lea.hbm %s6816_s6, 4096 }
   0x4   :  { %s48_s30 = sshll.u32 %s5446_s29, 4  ;;  %p5329_p0 = scmp.ne.s32.totalorder %s6816_s6, %s5328_s17  ;;  %s49_s30 = int_to_ptr.vmem [resolvable:$true] %s48_s30 }
   0x5   :  { %p5332_p1 = scmp.lt.u32.totalorder %s5328_s17, %s6816_s6 }
   0x7   :  { %p5334_p2 = pnand %p5332_p1, %p5329_p0 }
   0x9   :  { %5337 = shalt.err (!%p5334_p2)
}
   0xa   :  { %s5338_s22 = scalar_lea.vmem %s49_s30, 4096  ;;  %p5343_p4 = scmp.lt.s32.totalorder %s49_s30, %s49_s30 }
   0xb   :  { %p5339_p3 = scmp.ne.s32.totalorder %s49_s30, %s5338_s22  ;;  %p5344_p5 = scmp.lt.s32.totalorder %s5338_s22, %s5338_s22 }
   0xd   :  { %p5345_p6 = por %p5344_p5, %p5343_p4 }
   0xf   :  { %p5346_p7 = pnand %p5345_p6, %p5339_p3 }
  0x11   :  { %5349 = shalt.err (!%p5346_p7)
}
  0x12   :  { %s5447_s23 = smov 64   ;;  %s5448_s24 = smov 4  }
  0x13   :  { %54 = dma.hbm_to_vmem [thread:$0]  %s6816_s6, 4096, %s49_s30, [#allocation6], %s5447_s23, %s5447_s23, %s5448_s24  }
  0x14   :  { %s5449_s27 = smov [#allocation2]   ;;  %s5450_s29 = smov [#allocation7]  }
  0x15   :  { %s33_s28 = sshll.u32 %s5449_s27, 4  ;;  %s69_s15 = sshll.u32 %s5450_s29, 4  ;;  %s34_s28 = int_to_ptr.vmem [resolvable:$true] %s33_s28  ;;  %s70_s15 = int_to_ptr.vmem [resolvable:$true] %s69_s15 }
  0x16   :  { %s5350_s18 = scalar_lea.hbm %s6812_s2, 32 }
  0x17   :  { %p5351_p8 = scmp.ne.s32.totalorder %s6812_s2, %s5350_s18  ;;  %p5354_p9 = scmp.lt.u32.totalorder %s5350_s18, %s6812_s2 }
  0x19   :  { %p5356_p10 = pnand %p5354_p9, %p5351_p8 }
  0x1b   :  { %5359 = shalt.err (!%p5356_p10)
}
  0x1c   :  { %s5360_s6 = scalar_lea.vmem %s34_s28, 32  ;;  %p5365_p12 = scmp.lt.s32.totalorder %s34_s28, %s34_s28 }
  0x1d   :  { %p5361_p11 = scmp.ne.s32.totalorder %s34_s28, %s5360_s6  ;;  %p5366_p13 = scmp.lt.s32.totalorder %s5360_s6, %s5360_s6 }
  0x1f   :  { %p5367_p0 = por %p5366_p13, %p5365_p12 }
  0x21   :  { %p5368_p1 = pnand %p5367_p0, %p5361_p11 }
  0x23   :  { %5371 = shalt.err (!%p5368_p1)
}
  0x24   :  { %36 = dma.hbm_to_vmem [thread:$0]  %s6812_s2, 32, %s34_s28, [#allocation3]  }
  0x25   :  { %s5372_s29 = scalar_lea.hbm %s6821_s11, 16 }
  0x26   :  { %p5373_p2 = scmp.ne.s32.totalorder %s6821_s11, %s5372_s29  ;;  %p5376_p3 = scmp.lt.u32.totalorder %s5372_s29, %s6821_s11 }
  0x28   :  { %p5378_p4 = pnand %p5376_p3, %p5373_p2 }
  0x2a   :  { %5381 = shalt.err (!%p5378_p4)
}
  0x2b   :  { %s5382_s20 = scalar_lea.vmem %s70_s15, 16  ;;  %s5386_s21 = scalar_lea.vmem %s70_s15, 32 }
  0x2c   :  { %p5383_p5 = scmp.ne.s32.totalorder %s70_s15, %s5382_s20  ;;  %p5387_p6 = scmp.lt.s32.totalorder %s70_s15, %s70_s15 }
  0x2d   :  { %p5388_p7 = scmp.lt.s32.totalorder %s5386_s21, %s5382_s20 }
  0x2f   :  { %p5389_p8 = por %p5388_p7, %p5387_p6 }
  0x31   :  { %p5390_p9 = pnand %p5389_p8, %p5383_p5 }
  0x33   :  { %5393 = shalt.err (!%p5390_p9)
}
  0x34   :  { %72 = dma.hbm_to_vmem [thread:$0]  %s6821_s11, 16, %s70_s15, [#allocation6]  }
  0x35   :  { %s5451_s22 = smov [#allocation8]   ;;  %s5394_s26 = scalar_lea.hbm %s6822_s12, 1024 }
  0x36   :  { %s78_s6 = sshll.u32 %s5451_s22, 4  ;;  %p5395_p10 = scmp.ne.s32.totalorder %s6822_s12, %s5394_s26  ;;  %s79_s6 = int_to_ptr.vmem [resolvable:$true] %s78_s6 }
  0x37   :  { %p5398_p11 = scmp.lt.u32.totalorder %s5394_s26, %s6822_s12 }
  0x39   :  { %p5400_p12 = pnand %p5398_p11, %p5395_p10 }
  0x3b   :  { %5403 = shalt.err (!%p5400_p12)
}
  0x3c   :  { %s5404_s18 = scalar_lea.vmem %s79_s6, 1024  ;;  %p5409_p0 = scmp.lt.s32.totalorder %s79_s6, %s79_s6 }
  0x3d   :  { %p5405_p13 = scmp.ne.s32.totalorder %s79_s6, %s5404_s18  ;;  %p5410_p1 = scmp.lt.s32.totalorder %s5404_s18, %s5404_s18 }
  0x3f   :  { %p5411_p2 = por %p5410_p1, %p5409_p0 }
  0x41   :  { %p5412_p3 = pnand %p5411_p2, %p5405_p13 }
  0x43   :  { %5415 = shalt.err (!%p5412_p3)
}
  0x44   :  { %84 = dma.hbm_to_vmem [thread:$0]  %s6822_s12, 1024, %s79_s6, [#allocation9], %s5447_s23, %s5447_s23, %s5448_s24  }
  0x45   :  { %5438 = dma.done.wait [#allocation3], 32  }
  0x46   :  { %5439 = vsyncadd [#allocation3], 4294967264 }
  0x47   :  { %5440 = dma.done.wait [#allocation6], 4112  }
  0x48   :  { %5441 = vsyncadd [#allocation6], 4294963184 }
  0x49   :  { %5442 = dma.done.wait [#allocation9], 1024  }
  0x4a   :  { %5443 = vsyncadd [#allocation9], 4294966272  ;;  %v100_v0 = vld [vmem:[%s6810_s0] sm:$0xff]  ;;  %v102_v1 = vld [vmem:[%s6810_s0 + $0x10] sm:$0xff]  ;;  %v5452_v39 = vmov 0   ;;  %vm593_vm0 = vcmask 261120  }
  0x4b   :  { %v101_v2 = vld [vmem:[%s6810_s0 + $0x8] sm:$0xff]  ;;  %106 = vadd.xlane.f32.xlu0 %v100_v0  ;;  %110 = vadd.xlane.f32.xlu1 %v102_v1  ;;  %v103_v3 = vld [vmem:[%s6810_s0 + $0x18] sm:$0xff]  ;;  %v4950_v4 = vld [vmem:[%s6813_s3 + $0x4] ss:$12 sps:$4 sm:$0xff]   ;;  %s5453_s11 = smov 96   ;;  %s5454_s15 = smov 32  }
  0x4c   :  { %v4952_v5 = vld [vmem:[%s6813_s3] ss:$12 sps:$4 sm:$0xff]   ;;  %v4953_v6 = vld [vmem:[%s6813_s3 + $0x1c] ss:$12 sps:$4 sm:$0xff]   ;;  %351 = vmatprep.subr.bf16.mxu0 %v4950_v4  ;;  %v4956_v24 = vld [vmem:[%s6813_s3 + $0x18] ss:$12 sps:$4 sm:$0xff]   ;;  %383 = vmatprep.mubr.bf16.mxu0 %v5452_v39 }
  0x4d   :  { %v4955_v7 = vld [vmem:[%s6813_s3 + $0x8] ss:$12 sps:$4 sm:$0xff]   ;;  %352 = vmatpush1.bf16.msra.mxu0 %v4952_v5  ;;  %v4959_v26 = vld [vmem:[%s6813_s3 + $0x20] ss:$12 sps:$4 sm:$0xff]   ;;  %v4960_v27 = vld [vmem:[%s6813_s3 + $0x30] ss:$12 sps:$4 sm:$0xff]  }
  0x4e   :  { %4434 = vmatprep.subr.bf16.mxu1 %v4955_v7  ;;  %353 = vmatprep.subr.bf16.mxu0 %v4953_v6  ;;  %v4957_v25 = vld [vmem:[%s6813_s3 + $0x34] ss:$12 sps:$4 sm:$0xff]   ;;  %v4961_v28 = vld [vmem:[%s6813_s3 + $0x4c] ss:$12 sps:$4 sm:$0xff]   ;;  %v4965_v31 = vld [vmem:[%s6813_s3 + $0x64] ss:$12 sps:$4 sm:$0xff]  }
  0x4f   :  { %108 = vadd.xlane.f32.xlu0 %v101_v2  ;;  %112 = vadd.xlane.f32.xlu1 %v103_v3  ;;  %v4963_v29 = vld [vmem:[%s6813_s3 + $0x38] ss:$12 sps:$4 sm:$0xff]   ;;  %v4964_v30 = vld [vmem:[%s6813_s3 + $0x48] ss:$12 sps:$4 sm:$0xff]   ;;  %v4967_v32 = vld [vmem:[%s6813_s3 + $0x50] ss:$12 sps:$4 sm:$0xff]  }
  0x50   :  { %4435 = vmatpush3.bf16.msra.mxu1 %v4955_v7  ;;  %v4968_v33 = vld [vmem:[%s6813_s3 + $0x60] ss:$12 sps:$4 sm:$0xff]   ;;  %v4969_v34 = vld [vmem:[%s6813_s3 + $0x7c] ss:$12 sps:$4 sm:$0xff]   ;;  %v4972_v36 = vld [vmem:[%s6813_s3 + $0x78] ss:$12 sps:$4 sm:$0xff]  }
  0x51   :  { %354 = vmatpush1.bf16.msra.mxu0 %v4956_v24  ;;  %4436 = vmatprep.subr.bf16.mxu1 %v4959_v26  ;;  %v4971_v35 = vld [vmem:[%s6813_s3 + $0x68] ss:$12 sps:$4 sm:$0xff]   ;;  %v4975_v38 = vld [vmem:[%s6813_s3 + $0x80] ss:$12 sps:$4 sm:$0xff]   ;;  %v4976_v40 = vld [vmem:[%s6813_s3 + $0x90] ss:$12 sps:$4 sm:$0xff]  }
  0x52   :  { %355 = vmatprep.subr.bf16.mxu0 %v4957_v25  ;;  %v4973_v37 = vld [vmem:[%s6813_s3 + $0x94] ss:$12 sps:$4 sm:$0xff]   ;;  %v4977_v41 = vld [vmem:[%s6813_s3 + $0xac] ss:$12 sps:$4 sm:$0xff]   ;;  %v4981_v44 = vld [vmem:[%s6813_s3 + $0xb0] ss:$12 sps:$4 sm:$0xff]  }
  0x53   :  { %v4979_v42 = vld [vmem:[%s6813_s3 + $0x98] ss:$12 sps:$4 sm:$0xff]   ;;  %v4980_v43 = vld [vmem:[%s6813_s3 + $0xa8] ss:$12 sps:$4 sm:$0xff]   ;;  %v4009_v59 = vld [vmem:[#allocation2] ss:$0 sm:$0xff] }
  0x54   :  { %4437 = vmatpush3.bf16.msra.mxu1 %v4959_v26  ;;  %vm1302_vm1 = vcmask 523264   ;;  %vm1307_vm2 = vcmask 785408   ;;  %vm5456_vm3 = vmmov 0   ;;  %vm3764_vm4 = vcmask 1040384  }
  0x55   :  { %356 = vmatpush1.bf16.msra.mxu0 %v4960_v27  ;;  %4438 = vmatprep.subr.bf16.mxu1 %v4963_v29 }
  0x56   :  { %357 = vmatprep.subr.bf16.mxu0 %v4961_v28 }
  0x58   :  { %4439 = vmatpush3.bf16.msra.mxu1 %v4963_v29 }
  0x59   :  { %358 = vmatpush1.bf16.msra.mxu0 %v4964_v30  ;;  %4440 = vmatprep.subr.bf16.mxu1 %v4967_v32 }
  0x5a   :  { %359 = vmatprep.subr.bf16.mxu0 %v4965_v31 }
  0x5c   :  { %4441 = vmatpush3.bf16.msra.mxu1 %v4967_v32 }
  0x5d   :  { %360 = vmatpush1.bf16.msra.mxu0 %v4968_v33  ;;  %4442 = vmatprep.subr.bf16.mxu1 %v4971_v35 }
  0x5e   :  { %361 = vmatprep.subr.bf16.mxu0 %v4969_v34 }
  0x60   :  { %4443 = vmatpush3.bf16.msra.mxu1 %v4971_v35 }
  0x61   :  { %362 = vmatpush1.bf16.msra.mxu0 %v4972_v36  ;;  %4444 = vmatprep.subr.bf16.mxu1 %v4975_v38 }
  0x62   :  { %363 = vmatprep.subr.bf16.mxu0 %v4973_v37 }
  0x64   :  { %4445 = vmatpush3.bf16.msra.mxu1 %v4975_v38 }
  0x65   :  { %364 = vmatpush1.bf16.msra.mxu0 %v4976_v40  ;;  %4446 = vmatprep.subr.bf16.mxu1 %v4979_v42 }
  0x66   :  { %365 = vmatprep.subr.bf16.mxu0 %v4977_v41 }
  0x68   :  { %4447 = vmatpush3.bf16.msra.mxu1 %v4979_v42 }
  0x69   :  { %366 = vmatpush1.bf16.msra.mxu0 %v4980_v43  ;;  %4448 = vmatprep.subr.bf16.mxu1 %v4981_v44 }
  0x6c   :  { %4449 = vmatpush3.bf16.msra.mxu1 %v4981_v44 }
  0xd8   :  { %v107_v8 = vpop.xlane.xlu0 %106  ;;  %v111_v9 = vpop.xlane.xlu1 %110 }
  0xd9   :  { %v115_v10 = vmul.f32 0.0078125, %v107_v8  ;;  %v117_v11 = vmul.f32 0.0078125, %v111_v9 }
  0xdb   :  { %v5611_v12 = vsub.f32 %v100_v0, %v115_v10  ;;  %v5613_v13 = vsub.f32 %v102_v1, %v117_v11  ;;  %v4010_v0 = vld [vmem:[#allocation2 + $0x1] ss:$0 sm:$0xff] }
  0xdc   :  { %v109_v14 = vpop.xlane.xlu0 %108  ;;  %v113_v15 = vpop.xlane.xlu1 %112 }
  0xdd   :  { %v116_v16 = vmul.f32 0.0078125, %v109_v14  ;;  %v123_v17 = vmul.f32 %v5611_v12, %v5611_v12  ;;  %v118_v18 = vmul.f32 0.0078125, %v113_v15  ;;  %v125_v19 = vmul.f32 %v5613_v13, %v5613_v13 }
  0xdf   :  { %127 = vadd.xlane.f32.xlu0 %v123_v17  ;;  %v5619_v20 = vsub.f32 %v101_v2, %v116_v16  ;;  %v5621_v21 = vsub.f32 %v103_v3, %v118_v18  ;;  %v206_v16 = vld [vmem:[%s6817_s7] sm:$0x7] }
  0xe1   :  { %v124_v22 = vmul.f32 %v5619_v20, %v5619_v20  ;;  %v126_v23 = vmul.f32 %v5621_v21, %v5621_v21 }
  0xe3   :  { %131 = vadd.xlane.f32.xlu0 %v125_v19  ;;  %129 = vadd.xlane.f32.xlu1 %v124_v22 }
  0xe7   :  { %133 = vadd.xlane.f32.xlu1 %v126_v23 }
 0x16c   :  { %v128_v45 = vpop.xlane.xlu0 %127 }
 0x16d   :  { %v135_v46 = vmul.f32 0.0078125, %v128_v45 }
 0x16f   :  { %v139_v47 = vadd.f32 1e-12, %v135_v46 }
 0x170   :  { %v130_v48 = vpop.xlane.xlu1 %129  ;;  %v132_v49 = vpop.xlane.xlu0 %131 }
 0x171   :  { %5126 = vrsqrt.f32 %v139_v47  ;;  %v136_v50 = vmul.f32 0.0078125, %v130_v48  ;;  %v137_v51 = vmul.f32 0.0078125, %v132_v49 }
 0x173   :  { %v140_v52 = vadd.f32 1e-12, %v136_v50  ;;  %v141_v53 = vadd.f32 1e-12, %v137_v51 }
 0x174   :  { %v134_v54 = vpop.xlane.xlu1 %133 }
 0x175   :  { %5128 = vrsqrt.f32 %v140_v52  ;;  %v138_v55 = vmul.f32 0.0078125, %v134_v54 }
 0x176   :  { %5130 = vrsqrt.f32 %v141_v53 }
 0x177   :  { %v142_v56 = vadd.f32 1e-12, %v138_v55 }
 0x179   :  { %5132 = vrsqrt.f32 %v142_v56 }
 0x17b   :  { %v5127_v57 = vpop.eup %5126 }
 0x17c   :  { %v147_v58 = vmul.f32 %v5127_v57, %v5611_v12 }
 0x17e   :  { %v155_v63 = vmul.f32 %v4009_v59, %v147_v58 }
 0x17f   :  { %v5129_v60 = vpop.eup %5128 }
 0x180   :  { %v5131_v61 = vpop.eup %5130  ;;  %v148_v62 = vmul.f32 %v5129_v60, %v5619_v20  ;;  %v5691_v4 = vadd.f32 %v4010_v0, %v155_v63 }
 0x181   :  { %v149_v1 = vmul.f32 %v5131_v61, %v5613_v13  ;;  %v208_v13 = vlaneseq }
 0x182   :  { %v156_v2 = vmul.f32 %v4009_v59, %v148_v62 }
 0x183   :  { %v5133_v3 = vpop.eup %5132  ;;  %v157_v7 = vmul.f32 %v4009_v59, %v149_v1  ;;  %v5705_v14 = vshrl.u32 %v208_v13, 7 }
 0x184   :  { %v5693_v5 = vadd.f32 %v4010_v0, %v156_v2  ;;  %v150_v6 = vmul.f32 %v5133_v3, %v5621_v21 }
 0x185   :  { %v5698_v10 = vadd.f32 %v4010_v0, %v157_v7  ;;  %v5708_v15 = vsub.s32 0, %v5705_v14  ;;  %v5714_v17 = vsub.s32 1, %v5705_v14  ;;  %v5718_v19 = vsub.s32 2, %v5705_v14 }
 0x186   :  { %v204_v8 = vpack.c.bf16 %v5693_v5, %v5691_v4  ;;  %v158_v9 = vmul.f32 %v4009_v59, %v150_v6 }
 0x187   :  { %v211_v18 = vrot.slane %v206_v16, %v5708_v15  ;;  %v215_v21 = vrot.slane %v206_v16, %v5714_v17  ;;  %v219_v24 = vrot.slane %v206_v16, %v5718_v19 }
 0x188   :  { %384 = vmatmul.mubr.bf16.vlgmr.msra.gmra.mrb[0].mxu0 %v204_v8  ;;  %4450 = vmatprep.mubr.bf16.mxu1 %v204_v8  ;;  %v5700_v11 = vadd.f32 %v4010_v0, %v158_v9 }
 0x189   :  { %393 = vmatprep.mubr.bf16.mxu0 %v5452_v39 }
 0x18a   :  { %v205_v12 = vpack.c.bf16 %v5700_v11, %v5698_v10 }
 0x18c   :  { %4451 = vmatmul.mubr.bf16.vlgmr.msra.gmra.mrb[0].mxu1 %v205_v12 }
 0x190   :  { %394 = vmatmul.mubr.bf16.gmra.mrb[4].mxu0 %v205_v12 }
 0x25b   :  { %v385_v20 = vpop.f32.mrb[0].mxu0 }
 0x25c   :  { %v386_v22 = vadd.f32 %v385_v20, %v211_v18  ;;  %v387_v23 = vpop.f32.mrb[1].mxu0 }
 0x25d   :  { %v389_v25 = vpop.f32.mrb[2].mxu0  ;;  %v388_v28 = vadd.f32 %v387_v23, %v215_v21 }
 0x25e   :  { %v390_v26 = vadd.f32 %v389_v25, %v211_v18  ;;  %v391_v27 = vpop.f32.mrb[3].mxu0  ;;  %v453_v31 = vmul.f32 0.17677669, %v386_v22 }
 0x25f   :  { %v392_v29 = vadd.f32 %v391_v27, %v215_v21  ;;  %v4452_v30 = vpop.f32.mrb[0].mxu1 }
 0x260   :  { %v454_v32 = vmul.f32 0.17677669, %v390_v26  ;;  %v447_v33 = vadd.f32 %v4452_v30, %v219_v24  ;;  %v438_v34 = vpop.f32.mrb[1].mxu1 }
 0x261   :  { %v439_v35 = vadd.f32 %v438_v34, %v219_v24  ;;  %v4453_v36 = vpop.f32.mrb[2].mxu1  ;;  %v4710_v37 = vpack.i.bf16 %v392_v29, %v388_v28  ;;  %v585_v38 = vpack.c.bf16 %v392_v29, %v388_v28 }
 0x262   :  { %v450_v40 = vadd.f32 %v4453_v36, %v219_v24  ;;  %v441_v41 = vpop.f32.mrb[3].mxu1  ;;  %v577_v42 = vpack.c.bf16 %v454_v32, %v453_v31  ;;  %v4750_v43 = vpack.i.bf16 %v454_v32, %v453_v31 }
 0x263   :  { %v442_v44 = vadd.f32 %v441_v41, %v219_v24  ;;  %4711 = vrot.lane.b32.xlu0 %v4710_v37, %s5453_s11  ;;  %v395_v45 = vpop.f32.mrb[4].mxu0  ;;  %4682 = vmatprep.subr.msk.bf16.mxu1 %vm593_vm0, %v585_v38  ;;  %v601_v46 = vsel %vm593_vm0, %v585_v38, 0 }
 0x264   :  { %v396_v47 = vadd.f32 %v395_v45, %v211_v18  ;;  %v397_v48 = vpop.f32.mrb[5].mxu0  ;;  %4455 = vmatpush3.bf16.xpose.msra.mxu1 %v601_v46  ;;  %4458 = vmatprep.mubr.msk.bf16.mxu1 %vm593_vm0, %v577_v42  ;;  %v5726_v49 = vpack.c.bf16 %v450_v40, %v447_v33  ;;  %v5728_v50 = vpack.i.bf16 %v450_v40, %v447_v33 }
 0x265   :  { %v399_v51 = vpop.f32.mrb[6].mxu0  ;;  %v5730_v52 = vpack.c.bf16 %v442_v44, %v439_v35  ;;  %v5732_v53 = vpack.i.bf16 %v442_v44, %v439_v35  ;;  %v398_v56 = vadd.f32 %v397_v48, %v215_v21 }
 0x266   :  { %v400_v54 = vadd.f32 %v399_v51, %v211_v18  ;;  %v401_v55 = vpop.f32.mrb[7].mxu0  ;;  %v455_v58 = vmul.f32 0.17677669, %v396_v47 }
 0x267   :  { %v402_v57 = vadd.f32 %v401_v55, %v215_v21  ;;  %4731 = vrot.lane.b32.xlu0 %v4710_v37, %s5454_s15 }
 0x268   :  { %v456_v59 = vmul.f32 0.17677669, %v400_v54 }
 0x269   :  { %v4740_v60 = vpack.i.bf16 %v402_v57, %v398_v56  ;;  %v586_v61 = vpack.c.bf16 %v402_v57, %v398_v56 }
 0x26a   :  { %v578_v62 = vpack.c.bf16 %v456_v59, %v455_v58  ;;  %v4735_v63 = vpack.i.bf16 %v456_v59, %v455_v58 }
 0x26b   :  { %4741 = vrot.lane.b32.xlu0 %v4740_v60, %s5447_s23  ;;  %4716 = vrot.lane.b32.xlu1 %v4740_v60, %s5453_s11  ;;  %v604_v0 = vsel %vm593_vm0, %v586_v61, 0 }
 0x26c   :  { %4683 = vmatprep.subr.msk.bf16.mxu1 %vm593_vm0, %v586_v61 }
 0x26d   :  { %4457 = vmatpush3.bf16.xpose.msra.mxu1 %v604_v0 }
 0x26f   :  { %4751 = vrot.lane.b32.xlu0 %v4750_v43, %s5447_s23  ;;  %4721 = vrot.lane.b32.xlu1 %v4710_v37, %s5447_s23 }
 0x273   :  { %4756 = vrot.lane.b32.xlu0 %v4750_v43, %s5454_s15  ;;  %4726 = vrot.lane.b32.xlu1 %v4750_v43, %s5453_s11 }
 0x274   :  { %4459 = vmatmul.mubr.msk.bf16.vlgmr.msra.gmra.mrb[4].mxu1 %vm593_vm0, %v578_v62 }
 0x277   :  { %4736 = vrot.lane.b32.xlu1 %v4735_v63, %s5453_s11 }
 0x27b   :  { %4746 = vrot.lane.b32.xlu1 %v4740_v60, %s5454_s15 }
 0x27f   :  { %4761 = vrot.lane.b32.xlu1 %v4735_v63, %s5447_s23 }
 0x283   :  { %4766 = vrot.lane.b32.xlu1 %v4735_v63, %s5454_s15 }
 0x2d5   :  { %v4712_v1 = vpop.permute.xlu0 %4711 }
 0x2d6   :  { %v4714_v2 = vunpack.i.h.bf16 %v4712_v1  ;;  %v4713_v3 = vunpack.i.l.bf16 %v4712_v1 }
 0x2d8   :  { %v587_v6 = vpack.c.bf16 %v4714_v2, %v4713_v3 }
 0x2d9   :  { %v4732_v7 = vpop.permute.xlu0 %4731 }
 0x2da   :  { %4684 = vmatprep.subr.msk.bf16.mxu1 %vm593_vm0, %v587_v6  ;;  %v662_v8 = vsel %vm593_vm0, %v587_v6, 0  ;;  %v4734_v18 = vunpack.i.h.bf16 %v4732_v7  ;;  %v4733_v20 = vunpack.i.l.bf16 %v4732_v7  ;;  %v169_v6 = vld [vmem:[%s6811_s1 + $0x10] sm:$0xff] }
 0x2db   :  { %4463 = vmatpush3.bf16.xpose.msra.mxu1 %v662_v8  ;;  %v167_v8 = vld [vmem:[%s6811_s1] sm:$0xff] }
 0x2dc   :  { %v591_v28 = vpack.c.bf16 %v4734_v18, %v4733_v20  ;;  %v5790_v20 = vld [vmem:[%s6811_s1 + $0x18] sm:$0xff] }
 0x2dd   :  { %v4717_v9 = vpop.permute.xlu1 %4716  ;;  %v4742_v12 = vpop.permute.xlu0 %4741 }
 0x2de   :  { %v4719_v13 = vunpack.i.h.bf16 %v4717_v9  ;;  %v4718_v16 = vunpack.i.l.bf16 %v4717_v9  ;;  %v4744_v29 = vunpack.i.h.bf16 %v4742_v12  ;;  %v4743_v30 = vunpack.i.l.bf16 %v4742_v12 }
 0x2df   :  { %v784_v56 = vsel %vm593_vm0, %v591_v28, 0 }
 0x2e0   :  { %v588_v21 = vpack.c.bf16 %v4719_v13, %v4718_v16  ;;  %v590_v38 = vpack.c.bf16 %v4744_v29, %v4743_v30 }
 0x2e1   :  { %v4722_v22 = vpop.permute.xlu1 %4721  ;;  %v4752_v23 = vpop.permute.xlu0 %4751 }
 0x2e2   :  { %v4724_v24 = vunpack.i.h.bf16 %v4722_v22  ;;  %v4723_v25 = vunpack.i.l.bf16 %v4722_v22  ;;  %v4754_v26 = vunpack.i.h.bf16 %v4752_v23  ;;  %v4753_v27 = vunpack.i.l.bf16 %v4752_v23  ;;  %4685 = vmatprep.subr.msk.bf16.mxu1 %vm593_vm0, %v588_v21 }
 0x2e3   :  { %v665_v31 = vsel %vm593_vm0, %v588_v21, 0  ;;  %v726_v57 = vsel %vm593_vm0, %v590_v38, 0 }
 0x2e4   :  { %v589_v32 = vpack.c.bf16 %v4724_v24, %v4723_v25  ;;  %v581_v33 = vpack.c.bf16 %v4754_v26, %v4753_v27  ;;  %4465 = vmatpush3.bf16.xpose.msra.mxu1 %v665_v31 }
 0x2e5   :  { %4688 = vmatprep.subr.msk.bf16.mxu1 %vm593_vm0, %v591_v28  ;;  %v4727_v34 = vpop.permute.xlu1 %4726  ;;  %v4757_v37 = vpop.permute.xlu0 %4756 }
 0x2e6   :  { %v4729_v35 = vunpack.i.h.bf16 %v4727_v34  ;;  %v4728_v36 = vunpack.i.l.bf16 %v4727_v34  ;;  %4686 = vmatprep.subr.msk.bf16.mxu0 %vm593_vm0, %v589_v32  ;;  %4474 = vmatprep.mubr.msk.bf16.mxu0 %vm593_vm0, %v581_v33  ;;  %v723_v40 = vsel %vm593_vm0, %v589_v32, 0  ;;  %v4759_v42 = vunpack.i.h.bf16 %v4757_v37 }
 0x2e7   :  { %4471 = vmatpush3.bf16.xpose.msra.mxu0 %v723_v40  ;;  %v4758_v43 = vunpack.i.l.bf16 %v4757_v37 }
 0x2e8   :  { %v579_v41 = vpack.c.bf16 %v4729_v35, %v4728_v36  ;;  %4687 = vmatprep.subr.msk.bf16.mxu0 %vm593_vm0, %v590_v38 }
 0x2e9   :  { %v4737_v44 = vpop.permute.xlu1 %4736  ;;  %v583_v48 = vpack.c.bf16 %v4759_v42, %v4758_v43 }
 0x2ea   :  { %v4739_v45 = vunpack.i.h.bf16 %v4737_v44  ;;  %v4738_v46 = vunpack.i.l.bf16 %v4737_v44  ;;  %4466 = vmatprep.mubr.msk.bf16.mxu1 %vm593_vm0, %v579_v41 }
 0x2ec   :  { %v580_v47 = vpack.c.bf16 %v4739_v45, %v4738_v46 }
 0x2ed   :  { %v4747_v51 = vpop.permute.xlu1 %4746 }
 0x2ee   :  { %v4749_v54 = vunpack.i.h.bf16 %v4747_v51  ;;  %v4748_v55 = vunpack.i.l.bf16 %v4747_v51  ;;  %4467 = vmatmul.mubr.msk.bf16.vlgmr.msra.gmra.mrb[8].mxu1 %vm593_vm0, %v580_v47 }
 0x2ef   :  { %4479 = vmatpush3.bf16.xpose.msra.mxu1 %v784_v56  ;;  %4482 = vmatprep.mubr.msk.bf16.mxu1 %vm593_vm0, %v583_v48 }
 0x2f0   :  { %v592_v58 = vpack.c.bf16 %v4749_v54, %v4748_v55  ;;  %4473 = vmatpush3.bf16.xpose.msra.mxu0 %v726_v57 }
 0x2f1   :  { %4486 = vmatprep.subr.bf16.mxu0 %v5730_v52  ;;  %v4762_v59 = vpop.permute.xlu1 %4761 }
 0x2f2   :  { %v4764_v60 = vunpack.i.h.bf16 %v4762_v59  ;;  %v4763_v61 = vunpack.i.l.bf16 %v4762_v59  ;;  %4689 = vmatprep.subr.msk.bf16.mxu1 %vm593_vm0, %v592_v58  ;;  %v787_v0 = vsel %vm593_vm0, %v592_v58, 0 }
 0x2f4   :  { %v582_v62 = vpack.c.bf16 %v4764_v60, %v4763_v61 }
 0x2f5   :  { %v4767_v63 = vpop.permute.xlu1 %4766 }
 0x2f6   :  { %v4769_v1 = vunpack.i.h.bf16 %v4767_v63  ;;  %v4768_v2 = vunpack.i.l.bf16 %v4767_v63 }
 0x2f7   :  { %4475 = vmatmul.mubr.msk.bf16.vlgmr.msra.gmra.mrb[8].mxu0 %vm593_vm0, %v582_v62  ;;  %4481 = vmatpush3.bf16.xpose.msra.mxu1 %v787_v0 }
 0x2f8   :  { %4487 = vmatpush3.bf16.msra.mxu0 %v5730_v52  ;;  %v584_v3 = vpack.c.bf16 %v4769_v1, %v4768_v2  ;;  %v5781_v52 = vld [vmem:[%s6811_s1 + $0x8] sm:$0xff] }
 0x2f9   :  { %4488 = vmatprep.subr.bf16.mxu0 %v5726_v49 }
 0x2fc   :  { %4489 = vmatpush3.bf16.msra.mxu0 %v5726_v49 }
 0x2fe   :  { %4483 = vmatmul.mubr.msk.bf16.vlgmr.msra.gmra.mrb[12].mxu1 %vm593_vm0, %v584_v3 }
 0x347   :  { %v4460_v7 = vpop.f32.mrb[4].mxu1 }
 0x348   :  { %v5776_v9 = vadd.f32 %v4460_v7, %v169_v6  ;;  %v640_v12 = vpop.f32.mrb[5].mxu1 }
 0x349   :  { %v4461_v49 = vpop.f32.mrb[6].mxu1  ;;  %v5783_v13 = vadd.f32 %v640_v12, %v167_v8 }
 0x34a   :  { %v643_v16 = vpop.f32.mrb[7].mxu1  ;;  %v844_v18 = vsel %vm593_vm0, %v5776_v9, -inf  ;;  %v5798_v23 = vadd.f32 %v4461_v49, %v5790_v20 }
 0x34b   :  { %v5793_v21 = vadd.f32 %v643_v16, %v5781_v52  ;;  %845 = vmax.xlane.f32.xlu0 %v844_v18  ;;  %v838_v24 = vsel %vm593_vm0, %v5783_v13, -inf }
 0x34c   :  { %v847_v25 = vsel %vm593_vm0, %v5798_v23, -inf }
 0x34d   :  { %v841_v22 = vsel %vm593_vm0, %v5793_v21, -inf }
 0x34e   :  { %842 = vmax.xlane.f32.xlu1 %v841_v22 }
 0x34f   :  { %839 = vmax.xlane.f32.xlu0 %v838_v24 }
 0x353   :  { %848 = vmax.xlane.f32.xlu0 %v847_v25 }
 0x3c1   :  { %v4468_v26 = vpop.f32.mrb[8].mxu1 }
 0x3c2   :  { %v5804_v27 = vadd.f32 %v4468_v26, %v169_v6  ;;  %v701_v28 = vpop.f32.mrb[9].mxu1 }
 0x3c3   :  { %v4469_v29 = vpop.f32.mrb[10].mxu1  ;;  %v5815_v38 = vadd.f32 %v701_v28, %v167_v8 }
 0x3c4   :  { %v5807_v30 = vadd.f32 %v4469_v29, %v5790_v20  ;;  %v704_v31 = vpop.f32.mrb[11].mxu1  ;;  %v856_v32 = vsel %vm593_vm0, %v5804_v27, -inf }
 0x3c5   :  { %857 = vmax.xlane.f32.xlu0 %v856_v32  ;;  %v5823_v43 = vadd.f32 %v704_v31, %v5781_v52  ;;  %v850_v47 = vsel %vm593_vm0, %v5815_v38, -inf }
 0x3c6   :  { %v859_v33 = vsel %vm593_vm0, %v5807_v30, -inf }
 0x3c7   :  { %860 = vmax.xlane.f32.xlu1 %v859_v33  ;;  %v853_v55 = vsel %vm593_vm0, %v5823_v43, -inf }
 0x3ca   :  { %v4476_v34 = vpop.f32.mrb[8].mxu0 }
 0x3cb   :  { %v5813_v35 = vadd.f32 %v4476_v34, %v169_v6  ;;  %v762_v36 = vpop.f32.mrb[9].mxu0 }
 0x3cc   :  { %v4477_v37 = vpop.f32.mrb[10].mxu0  ;;  %v5827_v45 = vadd.f32 %v762_v36, %v167_v8 }
 0x3cd   :  { %v5818_v40 = vadd.f32 %v4477_v37, %v5790_v20  ;;  %v765_v41 = vpop.f32.mrb[11].mxu0  ;;  %v868_v42 = vsel %vm593_vm0, %v5813_v35, -inf }
 0x3ce   :  { %869 = vmax.xlane.f32.xlu0 %v868_v42  ;;  %v5832_v51 = vadd.f32 %v765_v41, %v5781_v52  ;;  %v862_v58 = vsel %vm593_vm0, %v5827_v45, -inf }
 0x3cf   :  { %v871_v44 = vsel %vm593_vm0, %v5818_v40, -inf }
 0x3d0   :  { %872 = vmax.xlane.f32.xlu1 %v871_v44  ;;  %v865_v59 = vsel %vm593_vm0, %v5832_v51, -inf }
 0x3d1   :  { %v4484_v46 = vpop.f32.mrb[12].mxu1 }
 0x3d2   :  { %v823_v48 = vpop.f32.mrb[13].mxu1  ;;  %851 = vmax.xlane.f32.xlu0 %v850_v47  ;;  %v5836_v57 = vadd.f32 %v4484_v46, %v169_v6 }
 0x3d3   :  { %v4485_v54 = vpop.f32.mrb[14].mxu1  ;;  %v5842_v60 = vadd.f32 %v823_v48, %v167_v8 }
 0x3d4   :  { %v826_v56 = vpop.f32.mrb[15].mxu1  ;;  %854 = vmax.xlane.f32.xlu1 %v853_v55  ;;  %v880_v61 = vsel %vm593_vm0, %v5836_v57, -inf  ;;  %v5857_v7 = vadd.f32 %v4485_v54, %v5790_v20 }
 0x3d5   :  { %v874_v62 = vsel %vm593_vm0, %v5842_v60, -inf  ;;  %v5862_v12 = vadd.f32 %v826_v56, %v5781_v52 }
 0x3d6   :  { %863 = vmax.xlane.f32.xlu0 %v862_v58  ;;  %v883_v49 = vsel %vm593_vm0, %v5857_v7, -inf }
 0x3d8   :  { %866 = vmax.xlane.f32.xlu1 %v865_v59  ;;  %v846_v63 = vpop.xlane.xlu0 %845 }
 0x3d9   :  { %v888_v0 = vsub.f32 %v5776_v9, %v846_v63 }
 0x3da   :  { %881 = vmax.xlane.f32.xlu0 %v880_v61 }
 0x3db   :  { %v906_v2 = vmul.f32 1.442695, %v888_v0  ;;  %v843_v22 = vpop.xlane.xlu1 %842 }
 0x3dc   :  { %v840_v1 = vpop.xlane.xlu0 %839  ;;  %v887_v24 = vsub.f32 %v5793_v21, %v843_v22 }
 0x3dd   :  { %v886_v3 = vsub.f32 %v5783_v13, %v840_v1  ;;  %5134 = vpow2.f32 %v906_v2  ;;  %v877_v13 = vsel %vm593_vm0, %v5862_v12, -inf }
 0x3de   :  { %875 = vmax.xlane.f32.xlu0 %v874_v62  ;;  %v904_v26 = vmul.f32 1.442695, %v887_v24 }
 0x3df   :  { %v902_v6 = vmul.f32 1.442695, %v886_v3 }
 0x3e0   :  { %v849_v52 = vpop.xlane.xlu0 %848 }
 0x3e1   :  { %5136 = vpow2.f32 %v902_v6  ;;  %v889_v20 = vsub.f32 %v5798_v23, %v849_v52 }
 0x3e3   :  { %v908_v25 = vmul.f32 1.442695, %v889_v20 }
 0x3e5   :  { %5138 = vpow2.f32 %v908_v25 }
 0x3e6   :  { %5140 = vpow2.f32 %v904_v26 }
 0x3e7   :  { %v5859_v8 = vpop.eup %5134 }
 0x3e8   :  { %v940_v9 = vsel %vm593_vm0, %v5859_v8, 0.0 }
 0x3e9   :  { %4776 = vrot.lane.b32.xlu1 %v5728_v50, %s5453_s11 }
 0x3eb   :  { %v5868_v16 = vpop.eup %5136 }
 0x3ec   :  { %v934_v18 = vsel %vm593_vm0, %v5868_v16, 0.0 }
 0x3ed   :  { %4781 = vrot.lane.b32.xlu1 %v5732_v53, %s5447_s23 }
 0x3ef   :  { %v5878_v28 = vpop.eup %5138 }
 0x3f0   :  { %v943_v29 = vsel %vm593_vm0, %v5878_v28, 0.0  ;;  %v5882_v31 = vpop.eup %5140 }
 0x3f4   :  { %4771 = vrot.lane.b32.xlu0 %v5732_v53, %s5453_s11 }
 0x411   :  { %884 = vmax.xlane.f32.xlu1 %v883_v49 }
 0x413   :  { %941 = vadd.xlane.f32.xlu0 %v940_v9 }
 0x415   :  { %878 = vmax.xlane.f32.xlu1 %v877_v13 }
 0x417   :  { %935 = vadd.xlane.f32.xlu0 %v934_v18 }
 0x426   :  { %4786 = vrot.lane.b32.xlu1 %v5732_v53, %s5454_s15  ;;  %v937_v53 = vsel %vm593_vm0, %v5882_v31, 0.0 }
 0x44a   :  { %944 = vadd.xlane.f32.xlu1 %v943_v29 }
 0x44e   :  { %938 = vadd.xlane.f32.xlu1 %v937_v53 }
 0x452   :  { %v858_v23 = vpop.xlane.xlu0 %857 }
 0x453   :  { %v892_v32 = vsub.f32 %v5804_v27, %v858_v23 }
 0x454   :  { %v861_v21 = vpop.xlane.xlu1 %860 }
 0x455   :  { %v914_v33 = vmul.f32 1.442695, %v892_v32  ;;  %v893_v34 = vsub.f32 %v5807_v30, %v861_v21 }
 0x457   :  { %5142 = vpow2.f32 %v914_v33  ;;  %v916_v36 = vmul.f32 1.442695, %v893_v34 }
 0x459   :  { %5144 = vpow2.f32 %v916_v36 }
 0x45b   :  { %v870_v37 = vpop.xlane.xlu0 %869 }
 0x45c   :  { %v896_v41 = vsub.f32 %v5813_v35, %v870_v37 }
 0x45d   :  { %v873_v42 = vpop.xlane.xlu1 %872 }
 0x45e   :  { %v922_v44 = vmul.f32 1.442695, %v896_v41  ;;  %v897_v46 = vsub.f32 %v5818_v40, %v873_v42 }
 0x45f   :  { %v852_v47 = vpop.xlane.xlu0 %851 }
 0x460   :  { %5146 = vpow2.f32 %v922_v44  ;;  %v924_v48 = vmul.f32 1.442695, %v897_v46  ;;  %v890_v54 = vsub.f32 %v5815_v38, %v852_v47 }
 0x461   :  { %v5891_v27 = vpop.eup %5142  ;;  %v855_v55 = vpop.xlane.xlu1 %854 }
 0x462   :  { %5148 = vpow2.f32 %v924_v48  ;;  %v910_v30 = vmul.f32 1.442695, %v890_v54  ;;  %v891_v56 = vsub.f32 %v5823_v43, %v855_v55  ;;  %v952_v58 = vsel %vm593_vm0, %v5891_v27, 0.0 }
 0x463   :  { %v5896_v35 = vpop.eup %5144  ;;  %v864_v59 = vpop.xlane.xlu0 %863  ;;  %953 = vadd.xlane.f32.xlu0 %v952_v58 }
 0x464   :  { %5150 = vpow2.f32 %v910_v30  ;;  %v912_v40 = vmul.f32 1.442695, %v891_v56  ;;  %v894_v61 = vsub.f32 %v5827_v45, %v864_v59  ;;  %v955_v38 = vsel %vm593_vm0, %v5896_v35, 0.0 }
 0x465   :  { %v867_v62 = vpop.xlane.xlu1 %866  ;;  %956 = vadd.xlane.f32.xlu1 %v955_v38 }
 0x466   :  { %5152 = vpow2.f32 %v912_v40  ;;  %v918_v63 = vmul.f32 1.442695, %v894_v61  ;;  %v895_v43 = vsub.f32 %v5832_v51, %v867_v62 }
 0x467   :  { %v882_v0 = vpop.xlane.xlu0 %881 }
 0x468   :  { %5154 = vpow2.f32 %v918_v63  ;;  %v920_v1 = vmul.f32 1.442695, %v895_v43  ;;  %v900_v2 = vsub.f32 %v5836_v57, %v882_v0 }
 0x469   :  { %v4777_v3 = vpop.permute.xlu1 %4776 }
 0x46a   :  { %v5903_v6 = vpop.eup %5146  ;;  %5156 = vpow2.f32 %v920_v1  ;;  %v930_v49 = vmul.f32 1.442695, %v900_v2  ;;  %v4779_v25 = vunpack.i.h.bf16 %v4777_v3  ;;  %v4778_v26 = vunpack.i.l.bf16 %v4777_v3 }
 0x46b   :  { %v876_v45 = vpop.xlane.xlu0 %875  ;;  %v964_v9 = vsel %vm593_vm0, %v5903_v6, 0.0 }
 0x46c   :  { %v5907_v13 = vpop.eup %5148  ;;  %5158 = vpow2.f32 %v930_v49  ;;  %v898_v18 = vsub.f32 %v5842_v60, %v876_v45  ;;  %965 = vadd.xlane.f32.xlu0 %v964_v9  ;;  %v1025_v42 = vpack.c.bf16 %v4779_v25, %v4778_v26 }
 0x46d   :  { %v4782_v51 = vpop.permute.xlu1 %4781  ;;  %v967_v52 = vsel %vm593_vm0, %v5907_v13, 0.0 }
 0x46e   :  { %v5912_v57 = vpop.eup %5150  ;;  %v926_v20 = vmul.f32 1.442695, %v898_v18  ;;  %v4784_v22 = vunpack.i.h.bf16 %v4782_v51  ;;  %v4783_v24 = vunpack.i.l.bf16 %v4782_v51  ;;  %968 = vadd.xlane.f32.xlu1 %v967_v52 }
 0x46f   :  { %v4772_v29 = vpop.permute.xlu0 %4771  ;;  %v946_v53 = vsel %vm593_vm0, %v5912_v57, 0.0 }
 0x470   :  { %v5916_v23 = vpop.eup %5152  ;;  %5160 = vpow2.f32 %v926_v20  ;;  %v4774_v60 = vunpack.i.h.bf16 %v4772_v29  ;;  %v4773_v32 = vunpack.i.l.bf16 %v4772_v29  ;;  %947 = vadd.xlane.f32.xlu0 %v946_v53  ;;  %v5918_v21 = vpack.c.bf16 %v4784_v22, %v4783_v24 }
 0x471   :  { %v949_v33 = vsel %vm593_vm0, %v5916_v23, 0.0 }
 0x472   :  { %v5922_v34 = vpop.eup %5154  ;;  %950 = vadd.xlane.f32.xlu1 %v949_v33  ;;  %4502 = vmatprep.subr.bf16.mxu0 %v5918_v21  ;;  %v1024_v36 = vpack.c.bf16 %v4774_v60, %v4773_v32 }
 0x473   :  { %v958_v37 = vsel %vm593_vm0, %v5922_v34, 0.0 }
 0x474   :  { %v5927_v41 = vpop.eup %5156  ;;  %959 = vadd.xlane.f32.xlu0 %v958_v37  ;;  %4494 = vmatprep.subr.bf16.mxu1 %v1024_v36 }
 0x475   :  { %4495 = vmatpush3.bf16.msra.mxu1 %v1024_v36  ;;  %v961_v44 = vsel %vm593_vm0, %v5927_v41, 0.0 }
 0x476   :  { %v5931_v46 = vpop.eup %5158  ;;  %962 = vadd.xlane.f32.xlu1 %v961_v44  ;;  %4496 = vmatprep.subr.bf16.mxu1 %v1025_v42 }
 0x477   :  { %v976_v47 = vsel %vm593_vm0, %v5931_v46, 0.0 }
 0x478   :  { %977 = vadd.xlane.f32.xlu0 %v976_v47 }
 0x479   :  { %4497 = vmatpush3.bf16.msra.mxu1 %v1025_v42 }
 0x47a   :  { %v5935_v48 = vpop.eup %5160 }
 0x47b   :  { %v970_v54 = vsel %vm593_vm0, %v5935_v48, 0.0 }
 0x47c   :  { %971 = vadd.xlane.f32.xlu0 %v970_v54 }
 0x492   :  { %4791 = vrot.lane.b32.xlu0 %v5728_v50, %s5447_s23 }
 0x49e   :  { %v885_v55 = vpop.xlane.xlu1 %884 }
 0x49f   :  { %v901_v30 = vsub.f32 %v5857_v7, %v885_v55 }
 0x4a0   :  { %v942_v1 = vpop.xlane.xlu0 %941 }
 0x4a1   :  { %v932_v56 = vmul.f32 1.442695, %v901_v30 }
 0x4a2   :  { %v879_v58 = vpop.xlane.xlu1 %878 }
 0x4a3   :  { %5162 = vpow2.f32 %v932_v56  ;;  %v899_v59 = vsub.f32 %v5862_v12, %v879_v58 }
 0x4a4   :  { %v936_v2 = vpop.xlane.xlu0 %935 }
 0x4a5   :  { %v928_v40 = vmul.f32 1.442695, %v899_v59 }
 0x4a6   :  { %v4787_v61 = vpop.permute.xlu1 %4786 }
 0x4a7   :  { %5164 = vpow2.f32 %v928_v40  ;;  %v4789_v38 = vunpack.i.h.bf16 %v4787_v61  ;;  %v4788_v62 = vunpack.i.l.bf16 %v4787_v61 }
 0x4a9   :  { %v5943_v63 = vpack.c.bf16 %v4789_v38, %v4788_v62 }
 0x4ab   :  { %4510 = vmatprep.subr.bf16.mxu1 %v5943_v63 }
 0x4ad   :  { %v5946_v43 = vpop.eup %5162 }
 0x4ae   :  { %v979_v0 = vsel %vm593_vm0, %v5946_v43, 0.0 }
 0x4af   :  { %980 = vadd.xlane.f32.xlu1 %v979_v0 }
 0x4b1   :  { %v5950_v7 = vpop.eup %5164 }
 0x4b2   :  { %v973_v12 = vsel %vm593_vm0, %v5950_v7, 0.0 }
 0x4b3   :  { %974 = vadd.xlane.f32.xlu1 %v973_v12 }
 0x4c4   :  { %4796 = vrot.lane.b32.xlu1 %v5728_v50, %s5454_s15 }
 0x4d7   :  { %v945_v3 = vpop.xlane.xlu1 %944 }
 0x4d8   :  { %5166 = vrcp.f32 %v945_v3 }
 0x4d9   :  { %5168 = vrcp.f32 %v936_v2 }
 0x4da   :  { %5170 = vrcp.f32 %v942_v1 }
 0x4db   :  { %v939_v49 = vpop.xlane.xlu1 %938 }
 0x4dc   :  { %5172 = vrcp.f32 %v939_v49 }
 0x4e2   :  { %v5167_v45 = vpop.eup %5166 }
 0x4e3   :  { %v5169_v9 = vpop.eup %5168  ;;  %v1001_v52 = vmul.f32 %v5167_v45, %v5878_v28 }
 0x4e4   :  { %v5171_v18 = vpop.eup %5170  ;;  %v998_v20 = vmul.f32 %v5169_v9, %v5868_v16 }
 0x4e5   :  { %v1000_v50 = vmul.f32 %v5171_v18, %v5859_v8 }
 0x4e6   :  { %v5173_v51 = vpop.eup %5172 }
 0x4e7   :  { %v999_v22 = vmul.f32 %v5173_v51, %v5882_v31  ;;  %v1015_v25 = vpack.c.bf16 %v1001_v52, %v1000_v50 }
 0x4e9   :  { %v1014_v24 = vpack.c.bf16 %v999_v22, %v998_v20 }
 0x4eb   :  { %4490 = vmatprep.mubr.msk.bf16.mxu0 %vm593_vm0, %v1014_v24 }
 0x4ec   :  { %4491 = vmatmul.mubr.msk.bf16.vlgmr.msra.gmra.mrb[12].mxu0 %vm593_vm0, %v1015_v25 }
 0x4ed   :  { %4503 = vmatpush3.bf16.msra.mxu0 %v5918_v21 }
 0x4f0   :  { %v954_v26 = vpop.xlane.xlu0 %953 }
 0x4f2   :  { %v957_v29 = vpop.xlane.xlu1 %956 }
 0x4f3   :  { %5174 = vrcp.f32 %v957_v29 }
 0x4f9   :  { %v966_v53 = vpop.xlane.xlu0 %965 }
 0x4fb   :  { %v969_v60 = vpop.xlane.xlu1 %968 }
 0x4fd   :  { %v948_v28 = vpop.xlane.xlu0 %947  ;;  %v5175_v33 = vpop.eup %5174 }
 0x4fe   :  { %5176 = vrcp.f32 %v948_v28  ;;  %v1005_v44 = vmul.f32 %v5175_v33, %v5896_v35 }
 0x4ff   :  { %5178 = vrcp.f32 %v954_v26  ;;  %v951_v16 = vpop.xlane.xlu1 %950 }
 0x500   :  { %5180 = vrcp.f32 %v951_v16 }
 0x501   :  { %v960_v31 = vpop.xlane.xlu0 %959 }
 0x502   :  { %5182 = vrcp.f32 %v960_v31 }
 0x503   :  { %5184 = vrcp.f32 %v969_v60  ;;  %v963_v8 = vpop.xlane.xlu1 %962 }
 0x504   :  { %5186 = vrcp.f32 %v963_v8  ;;  %v4984_v8 = vld [vmem:[%s6814_s4 + $0x10] sm:$0xff]  }
 0x505   :  { %5188 = vrcp.f32 %v966_v53  ;;  %v978_v32 = vpop.xlane.xlu0 %977  ;;  %v4983_v53 = vld [vmem:[%s6814_s4 + $0x8] sm:$0xff]  }
 0x508   :  { %v5177_v36 = vpop.eup %5176 }
 0x509   :  { %v5179_v21 = vpop.eup %5178  ;;  %v972_v37 = vpop.xlane.xlu0 %971  ;;  %v1002_v47 = vmul.f32 %v5177_v36, %v5912_v57 }
 0x50a   :  { %v5181_v42 = vpop.eup %5180  ;;  %v1004_v30 = vmul.f32 %v5179_v21, %v5891_v27 }
 0x50b   :  { %v1003_v54 = vmul.f32 %v5181_v42, %v5916_v23  ;;  %v4985_v42 = vld [vmem:[%s6814_s4 + $0x18] sm:$0xff]  }
 0x50c   :  { %v5183_v55 = vpop.eup %5182  ;;  %v1017_v62 = vpack.c.bf16 %v1005_v44, %v1004_v30  ;;  %v4989_v30 = vld [vmem:[%s6814_s4 + $0x38] sm:$0xff]  }
 0x50d   :  { %v5185_v56 = vpop.eup %5184  ;;  %v4792_v58 = vpop.permute.xlu0 %4791  ;;  %v1016_v59 = vpack.c.bf16 %v1003_v54, %v1002_v47  ;;  %v1006_v12 = vmul.f32 %v5183_v55, %v5922_v34  ;;  %v4986_v47 = vld [vmem:[%s6814_s4 + $0x20] sm:$0xff]   ;;  %v4987_v54 = vld [vmem:[%s6814_s4 + $0x28] sm:$0xff]   ;;  %v4988_v55 = vld [vmem:[%s6814_s4 + $0x30] sm:$0xff]  }
 0x50e   :  { %v5187_v40 = vpop.eup %5186  ;;  %v4794_v61 = vunpack.i.h.bf16 %v4792_v58  ;;  %v4793_v38 = vunpack.i.l.bf16 %v4792_v58  ;;  %v1009_v57 = vmul.f32 %v5185_v56, %v5907_v13 }
 0x50f   :  { %v5189_v0 = vpop.eup %5188  ;;  %4498 = vmatprep.mubr.msk.bf16.mxu1 %vm593_vm0, %v1016_v59  ;;  %v1007_v35 = vmul.f32 %v5187_v40, %v5927_v41 }
 0x510   :  { %v1027_v23 = vpack.c.bf16 %v4794_v61, %v4793_v38  ;;  %4499 = vmatmul.mubr.msk.bf16.vlgmr.msra.gmra.mrb[16].mxu1 %vm593_vm0, %v1017_v62  ;;  %v1008_v1 = vmul.f32 %v5189_v0, %v5903_v6 }
 0x511   :  { %4511 = vmatpush3.bf16.msra.mxu1 %v5943_v63  ;;  %v1018_v27 = vpack.c.bf16 %v1007_v35, %v1006_v12 }
 0x512   :  { %4504 = vmatprep.subr.bf16.mxu0 %v1027_v23  ;;  %v1019_v2 = vpack.c.bf16 %v1009_v57, %v1008_v1 }
 0x513   :  { %4505 = vmatpush3.bf16.msra.mxu0 %v1027_v23  ;;  %4506 = vmatprep.mubr.msk.bf16.mxu0 %vm593_vm0, %v1018_v27 }
 0x516   :  { %4507 = vmatmul.mubr.msk.bf16.vlgmr.msra.gmra.mrb[16].mxu0 %vm593_vm0, %v1019_v2 }
 0x53c   :  { %v981_v34 = vpop.xlane.xlu1 %980 }
 0x53d   :  { %5190 = vrcp.f32 %v981_v34 }
 0x53e   :  { %5192 = vrcp.f32 %v972_v37 }
 0x53f   :  { %5194 = vrcp.f32 %v978_v32 }
 0x540   :  { %v975_v13 = vpop.xlane.xlu1 %974 }
 0x541   :  { %5196 = vrcp.f32 %v975_v13 }
 0x544   :  { %v4797_v41 = vpop.permute.xlu1 %4796 }
 0x545   :  { %v4799_v3 = vunpack.i.h.bf16 %v4797_v41  ;;  %v4798_v49 = vunpack.i.l.bf16 %v4797_v41 }
 0x547   :  { %v1029_v63 = vpack.c.bf16 %v4799_v3, %v4798_v49  ;;  %v5191_v45 = vpop.eup %5190 }
 0x548   :  { %v5193_v9 = vpop.eup %5192  ;;  %v1013_v51 = vmul.f32 %v5191_v45, %v5946_v43 }
 0x549   :  { %4512 = vmatprep.subr.bf16.mxu1 %v1029_v63  ;;  %v5195_v6 = vpop.eup %5194  ;;  %v1010_v52 = vmul.f32 %v5193_v9, %v5935_v48 }
 0x54a   :  { %4513 = vmatpush3.bf16.msra.mxu1 %v1029_v63  ;;  %v1012_v22 = vmul.f32 %v5195_v6, %v5931_v46  ;;  %v4982_v46 = vld [vmem:[%s6814_s4] sm:$0xff]  }
 0x54b   :  { %v5197_v18 = vpop.eup %5196  ;;  %4518 = vmatprep.subr.bf16.mxu0 %v4982_v46 }
 0x54c   :  { %v1011_v20 = vmul.f32 %v5197_v18, %v5950_v7  ;;  %v1021_v24 = vpack.c.bf16 %v1013_v51, %v1012_v22  ;;  %4519 = vmatpush3.bf16.msra.mxu0 %v4982_v46 }
 0x54d   :  { %4520 = vmatprep.subr.bf16.mxu0 %v4983_v53 }
 0x54e   :  { %v1020_v50 = vpack.c.bf16 %v1011_v20, %v1010_v52 }
 0x550   :  { %4514 = vmatprep.mubr.msk.bf16.mxu1 %vm593_vm0, %v1020_v50  ;;  %4521 = vmatpush3.bf16.msra.mxu0 %v4983_v53  ;;  %v6040_v53 = vld [vmem:[%s6819_s9] sm:$0x3f] }
 0x551   :  { %4515 = vmatmul.mubr.msk.bf16.vlgmr.msra.gmra.mrb[20].mxu1 %vm593_vm0, %v1021_v24  ;;  %4522 = vmatprep.subr.bf16.mxu0 %v4984_v8 }
 0x552   :  { %1637 = vmatprep.mubr.bf16.mxu1 %v5452_v39 }
 0x554   :  { %4523 = vmatpush3.bf16.msra.mxu0 %v4984_v8 }
 0x555   :  { %4524 = vmatprep.subr.bf16.mxu0 %v4985_v42 }
 0x558   :  { %4525 = vmatpush3.bf16.msra.mxu0 %v4985_v42 }
 0x559   :  { %4526 = vmatprep.subr.bf16.mxu0 %v4986_v47 }
 0x55c   :  { %4527 = vmatpush3.bf16.msra.mxu0 %v4986_v47 }
 0x55d   :  { %4528 = vmatprep.subr.bf16.mxu0 %v4987_v54 }
 0x560   :  { %4529 = vmatpush3.bf16.msra.mxu0 %v4987_v54  ;;  %v4990_v54 = vld [vmem:[%s6815_s5] ss:$8 sps:$4 sm:$0xff]  }
 0x561   :  { %4530 = vmatprep.subr.bf16.mxu0 %v4988_v55 }
 0x564   :  { %4531 = vmatpush3.bf16.msra.mxu0 %v4988_v55  ;;  %v4992_v55 = vld [vmem:[%s6815_s5 + $0x4] ss:$8 sps:$4 sm:$0xff]  }
 0x565   :  { %4532 = vmatprep.subr.bf16.mxu0 %v4989_v30  ;;  %1605 = vmatprep.subr.bf16.mxu1 %v4992_v55 }
 0x566   :  { %1606 = vmatpush1.bf16.msra.mxu1 %v4990_v54 }
 0x568   :  { %4533 = vmatpush3.bf16.msra.mxu0 %v4989_v30 }
 0x5bf   :  { %v5983_v25 = vpop.f32.mrb[12].mxu0 }
 0x5c0   :  { %v5985_v26 = vpop.f32.mrb[13].mxu0 }
 0x5c1   :  { %v5987_v29 = vpop.f32.mrb[14].mxu0 }
 0x5c2   :  { %v5989_v43 = vpop.f32.mrb[15].mxu0 }
 0x5e3   :  { %v4500_v48 = vpop.f32.mrb[16].mxu1 }
 0x5e4   :  { %v1125_v7 = vpop.f32.mrb[17].mxu1 }
 0x5e5   :  { %v4501_v60 = vpop.f32.mrb[18].mxu1 }
 0x5e6   :  { %v4800_v28 = vpack.i.bf16 %v4501_v60, %v4500_v48  ;;  %v1128_v16 = vpop.f32.mrb[19].mxu1  ;;  %v1333_v60 = vrot.slane %v6040_v53, %v5708_v15 }
 0x5e7   :  { %v4810_v31 = vpack.i.bf16 %v1128_v16, %v1125_v7 }
 0x5e8   :  { %4801 = vrot.lane.b32.xlu1 %v4800_v28, %s5454_s15 }
 0x5e9   :  { %v4508_v32 = vpop.f32.mrb[16].mxu0  ;;  %4811 = vrot.lane.b32.xlu0 %v4810_v31, %s5454_s15 }
 0x5ea   :  { %v1180_v33 = vpop.f32.mrb[17].mxu0 }
 0x5eb   :  { %v4509_v36 = vpop.f32.mrb[18].mxu0 }
 0x5ec   :  { %v4805_v21 = vpack.i.bf16 %v4509_v36, %v4508_v32  ;;  %v1183_v37 = vpop.f32.mrb[19].mxu0 }
 0x5ed   :  { %v4815_v44 = vpack.i.bf16 %v1183_v37, %v1180_v33 }
 0x5ee   :  { %4806 = vrot.lane.b32.xlu1 %v4805_v21, %s5447_s23 }
 0x5ef   :  { %4816 = vrot.lane.b32.xlu0 %v4815_v44, %s5447_s23 }
 0x624   :  { %v4516_v56 = vpop.f32.mrb[20].mxu1 }
 0x625   :  { %v1235_v58 = vpop.f32.mrb[21].mxu1 }
 0x626   :  { %v4517_v59 = vpop.f32.mrb[22].mxu1 }
 0x627   :  { %v4825_v40 = vpack.i.bf16 %v4517_v59, %v4516_v56  ;;  %v1238_v61 = vpop.f32.mrb[23].mxu1 }
 0x628   :  { %v4820_v38 = vpack.i.bf16 %v1238_v61, %v1235_v58 }
 0x629   :  { %4826 = vrot.lane.b32.xlu1 %v4825_v40, %s5453_s11 }
 0x62a   :  { %4821 = vrot.lane.b32.xlu0 %v4820_v38, %s5453_s11 }
 0x65a   :  { %v4802_v62 = vpop.permute.xlu1 %4801 }
 0x65b   :  { %v4812_v0 = vpop.permute.xlu0 %4811  ;;  %v4804_v35 = vunpack.i.h.bf16 %v4802_v62  ;;  %v4803_v57 = vunpack.i.l.bf16 %v4802_v62 }
 0x65c   :  { %v4814_v27 = vunpack.i.h.bf16 %v4812_v0  ;;  %v4813_v1 = vunpack.i.l.bf16 %v4812_v0 }
 0x65d   :  { %v1301_v3 = vsel %vm593_vm0, %v5987_v29, %v4804_v35  ;;  %v1300_v49 = vsel %vm593_vm0, %v5983_v25, %v4803_v57 }
 0x65e   :  { %v1299_v45 = vsel %vm593_vm0, %v5989_v43, %v4814_v27  ;;  %v1298_v9 = vsel %vm593_vm0, %v5985_v26, %v4813_v1  ;;  %v4998_v1 = vld [vmem:[%s6815_s5 + $0x24] ss:$8 sps:$4 sm:$0xff]  }
 0x660   :  { %v4807_v12 = vpop.permute.xlu1 %4806 }
 0x661   :  { %v4817_v23 = vpop.permute.xlu0 %4816  ;;  %v4809_v2 = vunpack.i.h.bf16 %v4807_v12  ;;  %v4808_v34 = vunpack.i.l.bf16 %v4807_v12 }
 0x662   :  { %v4819_v13 = vunpack.i.h.bf16 %v4817_v23  ;;  %v4818_v41 = vunpack.i.l.bf16 %v4817_v23 }
 0x663   :  { %v1305_v52 = vsel %vm1302_vm1, %v1300_v49, %v4808_v34  ;;  %v1306_v20 = vsel %vm1302_vm1, %v1301_v3, %v4809_v2  ;;  %v4996_v2 = vld [vmem:[%s6815_s5 + $0x20] ss:$8 sps:$4 sm:$0xff]   ;;  %v5001_v34 = vld [vmem:[%s6815_s5 + $0x34] ss:$8 sps:$4 sm:$0xff]  }
 0x664   :  { %v1303_v24 = vsel %vm1302_vm1, %v1298_v9, %v4818_v41  ;;  %v1304_v25 = vsel %vm1302_vm1, %v1299_v45, %v4819_v13  ;;  %v4999_v13 = vld [vmem:[%s6815_s5 + $0x30] ss:$8 sps:$4 sm:$0xff]   ;;  %v5004_v41 = vld [vmem:[%s6815_s5 + $0x44] ss:$8 sps:$4 sm:$0xff]   ;;  %v5002_v3 = vld [vmem:[%s6815_s5 + $0x40] ss:$8 sps:$4 sm:$0xff]  }
 0x665   :  { %v5007_v49 = vld [vmem:[%s6815_s5 + $0x54] ss:$8 sps:$4 sm:$0xff]   ;;  %v5008_v45 = vld [vmem:[%s6815_s5 + $0x60] ss:$8 sps:$4 sm:$0xff]   ;;  %v5010_v9 = vld [vmem:[%s6815_s5 + $0x64] ss:$8 sps:$4 sm:$0xff]  }
 0x69b   :  { %v4827_v63 = vpop.permute.xlu1 %4826 }
 0x69c   :  { %v4829_v6 = vunpack.i.h.bf16 %v4827_v63  ;;  %v4828_v18 = vunpack.i.l.bf16 %v4827_v63  ;;  %v4822_v51 = vpop.permute.xlu0 %4821  ;;  %v5005_v63 = vld [vmem:[%s6815_s5 + $0x50] ss:$8 sps:$4 sm:$0xff]  }
 0x69d   :  { %v4824_v22 = vunpack.i.h.bf16 %v4822_v51  ;;  %v4823_v50 = vunpack.i.l.bf16 %v4822_v51 }
 0x69e   :  { %v1311_v29 = vsel %vm1307_vm2, %v1306_v20, %v4829_v6  ;;  %v1310_v43 = vsel %vm1307_vm2, %v1305_v52, %v4828_v18  ;;  %v5013_v6 = vld [vmem:[%s6815_s5 + $0x74] ss:$8 sps:$4 sm:$0xff]   ;;  %v5011_v18 = vld [vmem:[%s6815_s5 + $0x70] ss:$8 sps:$4 sm:$0xff]  }
 0x69f   :  { %v1329_v48 = vpack.c.bf16 %v1311_v29, %v1310_v43  ;;  %v1308_v26 = vsel %vm1307_vm2, %v1303_v24, %v4823_v50  ;;  %v1309_v7 = vsel %vm1307_vm2, %v1304_v25, %v4824_v22 }
 0x6a0   :  { %v1328_v46 = vpack.c.bf16 %v1309_v7, %v1308_v26 }
 0x6a2   :  { %4534 = vmatprep.mubr.bf16.mxu0 %v1328_v46  ;;  %v1482_v46 = vrot.slane %v6040_v53, %v5714_v17 }
 0x6a3   :  { %4535 = vmatmul.mubr.bf16.vlgmr.msra.gmra.mrb[20].mxu0 %v1329_v48 }
 0x776   :  { %v4536_v28 = vpop.f32.mrb[20].mxu0 }
 0x777   :  { %v1416_v16 = vpop.f32.mrb[21].mxu0  ;;  %v1425_v33 = vadd.f32 %v4536_v28, %v1333_v60 }
 0x778   :  { %v1417_v31 = vadd.f32 %v1416_v16, %v1333_v60  ;;  %v4537_v8 = vpop.f32.mrb[22].mxu0 }
 0x779   :  { %v1419_v32 = vpop.f32.mrb[23].mxu0  ;;  %v1428_v42 = vadd.f32 %v4537_v8, %v1333_v60  ;;  %v1433_v44 = vadd.f32 %v1425_v33, %v5698_v10 }
 0x77a   :  { %v1420_v36 = vadd.f32 %v1419_v32, %v1333_v60  ;;  %v1431_v21 = vadd.f32 %v1417_v31, %v5691_v4  ;;  %v4995_v4 = vld [vmem:[%s6815_s5 + $0x14] ss:$8 sps:$4 sm:$0xff]   ;;  %v1490_v32 = vrot.slane %v6040_v53, %v5718_v19 }
 0x77b   :  { %v1434_v47 = vadd.f32 %v1428_v42, %v5700_v11  ;;  %1607 = vmatprep.subr.bf16.mxu1 %v4995_v4 }
 0x77c   :  { %1435 = vadd.xlane.f32.xlu0 %v1431_v21  ;;  %v1432_v37 = vadd.f32 %v1420_v36, %v5693_v5  ;;  %v4993_v5 = vld [vmem:[%s6815_s5 + $0x10] ss:$8 sps:$4 sm:$0xff]  }
 0x77d   :  { %1608 = vmatpush1.bf16.msra.mxu1 %v4993_v5 }
 0x77e   :  { %1437 = vadd.xlane.f32.xlu1 %v1432_v37  ;;  %1609 = vmatprep.subr.bf16.mxu1 %v4998_v1  ;;  %v5028_v1 = vld [vmem:[#allocation5 + $0x78] sm:$0xff]  }
 0x780   :  { %1439 = vadd.xlane.f32.xlu0 %v1433_v44 }
 0x781   :  { %1610 = vmatpush1.bf16.msra.mxu1 %v4996_v2  ;;  %v5029_v2 = vld [vmem:[#allocation5 + $0x38] sm:$0xff]  }
 0x782   :  { %1611 = vmatprep.subr.bf16.mxu1 %v5001_v34  ;;  %v1513_v34 = vld [vmem:[%s6818_s8] sm:$0x3] }
 0x784   :  { %1441 = vadd.xlane.f32.xlu0 %v1434_v47 }
 0x785   :  { %1612 = vmatpush1.bf16.msra.mxu1 %v4999_v13  ;;  %v1518_v13 = vrot.slane %v1513_v34, %v5708_v15 }
 0x786   :  { %1613 = vmatprep.subr.bf16.mxu1 %v5004_v41  ;;  %v1522_v41 = vrot.slane %v1513_v34, %v5714_v17 }
 0x789   :  { %1614 = vmatpush1.bf16.msra.mxu1 %v5002_v3 }
 0x78a   :  { %1615 = vmatprep.subr.bf16.mxu1 %v5007_v49 }
 0x78d   :  { %1616 = vmatpush1.bf16.msra.mxu1 %v5005_v63 }
 0x78e   :  { %1617 = vmatprep.subr.bf16.mxu1 %v5010_v9 }
 0x791   :  { %1618 = vmatpush1.bf16.msra.mxu1 %v5008_v45 }
 0x792   :  { %1619 = vmatprep.subr.bf16.mxu1 %v5013_v6 }
 0x795   :  { %1620 = vmatpush1.bf16.msra.mxu1 %v5011_v18 }
 0x809   :  { %v1436_v10 = vpop.xlane.xlu0 %1435 }
 0x80a   :  { %v1443_v11 = vmul.f32 0.0078125, %v1436_v10 }
 0x80b   :  { %v1438_v30 = vpop.xlane.xlu1 %1437 }
 0x80c   :  { %v1447_v56 = vsub.f32 %v1431_v21, %v1443_v11  ;;  %v1444_v58 = vmul.f32 0.0078125, %v1438_v30  ;;  %v5014_v30 = vld [vmem:[#allocation5 + $0x40] sm:$0xff]  }
 0x80d   :  { %v1440_v59 = vpop.xlane.xlu0 %1439  ;;  %4308 = vmatprep.subr.bf16.mxu0 %v5014_v30 }
 0x80e   :  { %v1448_v40 = vsub.f32 %v1432_v37, %v1444_v58  ;;  %v1445_v61 = vmul.f32 0.0078125, %v1440_v59  ;;  %v1451_v38 = vmul.f32 %v1447_v56, %v1447_v56  ;;  %v5016_v58 = vld [vmem:[#allocation5 + $0x48] sm:$0xff]  }
 0x80f   :  { %v5017_v59 = vld [vmem:[#allocation5 + $0x8] sm:$0xff]  }
 0x810   :  { %v1449_v62 = vsub.f32 %v1433_v44, %v1445_v61  ;;  %1455 = vadd.xlane.f32.xlu0 %v1451_v38  ;;  %v1452_v0 = vmul.f32 %v1448_v40, %v1448_v40  ;;  %v5019_v61 = vld [vmem:[#allocation5 + $0x10] sm:$0xff]   ;;  %v5020_v38 = vld [vmem:[#allocation5 + $0x58] sm:$0xff]  }
 0x811   :  { %v1442_v12 = vpop.xlane.xlu0 %1441 }
 0x812   :  { %v1446_v35 = vmul.f32 0.0078125, %v1442_v12  ;;  %1457 = vadd.xlane.f32.xlu1 %v1452_v0  ;;  %v1453_v57 = vmul.f32 %v1449_v62, %v1449_v62  ;;  %v5022_v0 = vld [vmem:[#allocation5 + $0x60] sm:$0xff]  }
 0x813   :  { %v5023_v12 = vld [vmem:[#allocation5 + $0x20] sm:$0xff]  }
 0x814   :  { %v1450_v23 = vsub.f32 %v1434_v47, %v1446_v35  ;;  %1459 = vadd.xlane.f32.xlu0 %v1453_v57  ;;  %v5024_v35 = vld [vmem:[#allocation5 + $0x68] sm:$0xff]  }
 0x815   :  { %v5025_v57 = vld [vmem:[#allocation5 + $0x28] sm:$0xff]  }
 0x816   :  { %v1454_v27 = vmul.f32 %v1450_v23, %v1450_v23 }
 0x818   :  { %1461 = vadd.xlane.f32.xlu1 %v1454_v27  ;;  %v5027_v27 = vld [vmem:[#allocation5 + $0x30] sm:$0xff]  }
 0x89d   :  { %v1456_v51 = vpop.xlane.xlu0 %1455 }
 0x89e   :  { %v1463_v52 = vmul.f32 0.0078125, %v1456_v51 }
 0x89f   :  { %v1458_v20 = vpop.xlane.xlu1 %1457 }
 0x8a0   :  { %v1467_v22 = vadd.f32 1e-12, %v1463_v52  ;;  %v1464_v50 = vmul.f32 0.0078125, %v1458_v20 }
 0x8a1   :  { %v1460_v24 = vpop.xlane.xlu0 %1459 }
 0x8a2   :  { %5198 = vrsqrt.f32 %v1467_v22  ;;  %v1468_v25 = vadd.f32 1e-12, %v1464_v50  ;;  %v1465_v29 = vmul.f32 0.0078125, %v1460_v24 }
 0x8a4   :  { %5200 = vrsqrt.f32 %v1468_v25  ;;  %v1469_v43 = vadd.f32 1e-12, %v1465_v29 }
 0x8a5   :  { %v1462_v48 = vpop.xlane.xlu1 %1461 }
 0x8a6   :  { %5202 = vrsqrt.f32 %v1469_v43  ;;  %v1466_v26 = vmul.f32 0.0078125, %v1462_v48 }
 0x8a8   :  { %v1470_v7 = vadd.f32 1e-12, %v1466_v26 }
 0x8aa   :  { %5204 = vrsqrt.f32 %v1470_v7 }
 0x8ac   :  { %v5199_v60 = vpop.eup %5198 }
 0x8ad   :  { %v1475_v28 = vmul.f32 %v5199_v60, %v1447_v56  ;;  %v5015_v56 = vld [vmem:[#allocation5] sm:$0xff]  }
 0x8ae   :  { %v5201_v16 = vpop.eup %5200  ;;  %4309 = vmatpush3.bf16.msra.mxu0 %v5015_v56 }
 0x8af   :  { %v1476_v31 = vmul.f32 %v5201_v16, %v1448_v40  ;;  %v1483_v8 = vmul.f32 %v1482_v46, %v1475_v28  ;;  %4310 = vmatprep.subr.bf16.mxu0 %v5016_v58  ;;  %v5018_v40 = vld [vmem:[#allocation5 + $0x50] sm:$0xff]  }
 0x8b0   :  { %v5203_v33 = vpop.eup %5202 }
 0x8b1   :  { %v1484_v36 = vmul.f32 %v1482_v46, %v1476_v31  ;;  %v6100_v21 = vadd.f32 %v1490_v32, %v1483_v8  ;;  %v1477_v42 = vmul.f32 %v5203_v33, %v1449_v62  ;;  %v5021_v62 = vld [vmem:[#allocation5 + $0x18] sm:$0xff]  }
 0x8b2   :  { %4311 = vmatpush3.bf16.msra.mxu0 %v5017_v59 }
 0x8b3   :  { %v6102_v37 = vadd.f32 %v1490_v32, %v1484_v36  ;;  %v1485_v55 = vmul.f32 %v1482_v46, %v1477_v42  ;;  %4312 = vmatprep.subr.bf16.mxu0 %v5018_v40 }
 0x8b4   :  { %v5205_v44 = vpop.eup %5204 }
 0x8b5   :  { %v1511_v47 = vpack.c.bf16 %v6102_v37, %v6100_v21  ;;  %v1478_v54 = vmul.f32 %v5205_v44, %v1450_v23  ;;  %v6109_v10 = vadd.f32 %v1490_v32, %v1485_v55  ;;  %v5026_v23 = vld [vmem:[#allocation5 + $0x70] sm:$0xff]  }
 0x8b6   :  { %4313 = vmatpush3.bf16.msra.mxu0 %v5019_v61 }
 0x8b7   :  { %1638 = vmatmul.mubr.bf16.vlgmr.msra.gmra.mrb[24].mxu1 %v1511_v47  ;;  %v1486_v4 = vmul.f32 %v1482_v46, %v1478_v54  ;;  %4314 = vmatprep.subr.bf16.mxu0 %v5020_v38 }
 0x8b8   :  { %1647 = vmatprep.mubr.bf16.mxu1 %v5452_v39 }
 0x8b9   :  { %v6107_v5 = vadd.f32 %v1490_v32, %v1486_v4 }
 0x8ba   :  { %4315 = vmatpush3.bf16.msra.mxu0 %v5021_v62 }
 0x8bb   :  { %v1512_v11 = vpack.c.bf16 %v6107_v5, %v6109_v10  ;;  %4316 = vmatprep.subr.bf16.mxu0 %v5022_v0 }
 0x8be   :  { %4317 = vmatpush3.bf16.msra.mxu0 %v5023_v12 }
 0x8bf   :  { %1648 = vmatmul.mubr.bf16.gmra.mrb[28].mxu1 %v1512_v11  ;;  %4318 = vmatprep.subr.bf16.mxu0 %v5024_v35 }
 0x8c0   :  { %2194 = vmatprep.mubr.bf16.mxu1 %v5452_v39 }
 0x8c2   :  { %4319 = vmatpush3.bf16.msra.mxu0 %v5025_v57 }
 0x8c3   :  { %4320 = vmatprep.subr.bf16.mxu0 %v5026_v23 }
 0x8c6   :  { %4321 = vmatpush3.bf16.msra.mxu0 %v5027_v27 }
 0x8c7   :  { %4322 = vmatprep.subr.bf16.mxu0 %v5028_v1 }
 0x8ca   :  { %4323 = vmatpush3.bf16.msra.mxu0 %v5029_v2 }
 0x98a   :  { %v1639_v3 = vpop.f32.mrb[24].mxu1 }
 0x98b   :  { %v6119_v49 = vadd.f32 %v1639_v3, %v1518_v13  ;;  %v1641_v63 = vpop.f32.mrb[25].mxu1 }
 0x98c   :  { %v6121_v45 = vadd.f32 %v1641_v63, %v1522_v41  ;;  %v1643_v9 = vpop.f32.mrb[26].mxu1 }
 0x98d   :  { %v1658_v6 = vmul.f32 %v6119_v49, %v6119_v49  ;;  %v6125_v18 = vadd.f32 %v1643_v9, %v1518_v13  ;;  %v1645_v51 = vpop.f32.mrb[27].mxu1 }
 0x98e   :  { %v1659_v52 = vmul.f32 %v6121_v45, %v6121_v45  ;;  %v6129_v20 = vadd.f32 %v1645_v51, %v1522_v41 }
 0x98f   :  { %v1666_v22 = vmul.f32 %v1658_v6, %v6119_v49  ;;  %v1660_v50 = vmul.f32 %v6125_v18, %v6125_v18 }
 0x990   :  { %v1667_v24 = vmul.f32 %v1659_v52, %v6121_v45  ;;  %v1661_v25 = vmul.f32 %v6129_v20, %v6129_v20 }
 0x991   :  { %v1674_v29 = vmul.f32 0.044715, %v1666_v22  ;;  %v1668_v43 = vmul.f32 %v1660_v50, %v6125_v18 }
 0x992   :  { %v1675_v48 = vmul.f32 0.044715, %v1667_v24  ;;  %v1669_v26 = vmul.f32 %v1661_v25, %v6129_v20  ;;  %v1649_v7 = vpop.f32.mrb[28].mxu1 }
 0x993   :  { %v1682_v46 = vadd.f32 %v1674_v29, %v6119_v49  ;;  %v1676_v60 = vmul.f32 0.044715, %v1668_v43  ;;  %v6140_v28 = vadd.f32 %v1649_v7, %v1518_v13  ;;  %v1651_v16 = vpop.f32.mrb[29].mxu1 }
 0x994   :  { %v1683_v31 = vadd.f32 %v1675_v48, %v6121_v45  ;;  %v1677_v8 = vmul.f32 0.044715, %v1669_v26  ;;  %v6143_v32 = vadd.f32 %v1651_v16, %v1522_v41  ;;  %v1653_v33 = vpop.f32.mrb[30].mxu1 }
 0x995   :  { %v1690_v36 = vmul.f32 0.7978846, %v1682_v46  ;;  %v1684_v42 = vadd.f32 %v1676_v60, %v6125_v18  ;;  %v1662_v44 = vmul.f32 %v6140_v28, %v6140_v28  ;;  %v6148_v47 = vadd.f32 %v1653_v33, %v1518_v13  ;;  %v1655_v54 = vpop.f32.mrb[31].mxu1 }
 0x996   :  { %v1691_v55 = vmul.f32 0.7978846, %v1683_v31  ;;  %v1685_v4 = vadd.f32 %v1677_v8, %v6129_v20  ;;  %v1663_v11 = vmul.f32 %v6143_v32, %v6143_v32  ;;  %v6153_v30 = vadd.f32 %v1655_v54, %v1522_v41 }
 0x997   :  { %5206 = vtanh.f32 %v1690_v36  ;;  %v1692_v56 = vmul.f32 0.7978846, %v1684_v42  ;;  %v1670_v58 = vmul.f32 %v1662_v44, %v6140_v28  ;;  %v1664_v59 = vmul.f32 %v6148_v47, %v6148_v47 }
 0x998   :  { %5208 = vtanh.f32 %v1691_v55  ;;  %v1693_v40 = vmul.f32 0.7978846, %v1685_v4  ;;  %v1671_v61 = vmul.f32 %v1663_v11, %v6143_v32  ;;  %v1665_v38 = vmul.f32 %v6153_v30, %v6153_v30 }
 0x999   :  { %5210 = vtanh.f32 %v1692_v56  ;;  %v1678_v62 = vmul.f32 0.044715, %v1670_v58  ;;  %v1672_v0 = vmul.f32 %v1664_v59, %v6148_v47 }
 0x99a   :  { %5212 = vtanh.f32 %v1693_v40  ;;  %v1679_v12 = vmul.f32 0.044715, %v1671_v61  ;;  %v1673_v35 = vmul.f32 %v1665_v38, %v6153_v30 }
 0x99b   :  { %v1686_v57 = vadd.f32 %v1678_v62, %v6140_v28  ;;  %v1680_v23 = vmul.f32 0.044715, %v1672_v0  ;;  %v1768_v62 = vsub.s32 3, %v5705_v14 }
 0x99c   :  { %v1687_v27 = vadd.f32 %v1679_v12, %v6143_v32  ;;  %v1681_v1 = vmul.f32 0.044715, %v1673_v35 }
 0x99d   :  { %v1694_v2 = vmul.f32 0.7978846, %v1686_v57  ;;  %v1688_v34 = vadd.f32 %v1680_v23, %v6148_v47  ;;  %v1769_v12 = vrot.slane %v6040_v53, %v1768_v62 }
 0x99e   :  { %v1695_v13 = vmul.f32 0.7978846, %v1687_v27  ;;  %v1689_v41 = vadd.f32 %v1681_v1, %v6153_v30 }
 0x99f   :  { %5214 = vtanh.f32 %v1694_v2  ;;  %v1696_v3 = vmul.f32 0.7978846, %v1688_v34 }
 0x9a0   :  { %5216 = vtanh.f32 %v1695_v13  ;;  %v1697_v63 = vmul.f32 0.7978846, %v1689_v41 }
 0x9a1   :  { %v5207_v9 = vpop.eup %5206  ;;  %5218 = vtanh.f32 %v1696_v3 }
 0x9a2   :  { %v5209_v6 = vpop.eup %5208  ;;  %v1706_v51 = vadd.f32 1.0, %v5207_v9  ;;  %5220 = vtanh.f32 %v1697_v63 }
 0x9a3   :  { %v5211_v52 = vpop.eup %5210  ;;  %v1707_v22 = vadd.f32 1.0, %v5209_v6 }
 0x9a4   :  { %v5213_v50 = vpop.eup %5212  ;;  %v1714_v24 = vmul.f32 0.5, %v1706_v51  ;;  %v1708_v25 = vadd.f32 1.0, %v5211_v52 }
 0x9a5   :  { %v1709_v29 = vadd.f32 1.0, %v5213_v50  ;;  %v1715_v43 = vmul.f32 0.5, %v1707_v22  ;;  %v5035_v22 = vld [vmem:[%s6813_s3 + $0xdc] ss:$12 sps:$4 sm:$0xff]  }
 0x9a6   :  { %v1716_v48 = vmul.f32 0.5, %v1708_v25  ;;  %v1722_v7 = vmul.f32 %v1714_v24, %v6119_v49 }
 0x9a7   :  { %v1717_v26 = vmul.f32 0.5, %v1709_v29  ;;  %v1723_v16 = vmul.f32 %v1715_v43, %v6121_v45 }
 0x9a8   :  { %v1724_v46 = vmul.f32 %v1716_v48, %v6125_v18 }
 0x9a9   :  { %v5215_v60 = vpop.eup %5214  ;;  %v1725_v31 = vmul.f32 %v1717_v26, %v6129_v20 }
 0x9aa   :  { %v5217_v8 = vpop.eup %5216  ;;  %v1762_v33 = vpack.c.bf16 %v1724_v46, %v1722_v7  ;;  %v1710_v36 = vadd.f32 1.0, %v5215_v60 }
 0x9ab   :  { %v5219_v42 = vpop.eup %5218  ;;  %v1763_v44 = vpack.c.bf16 %v1725_v31, %v1723_v16  ;;  %v1711_v54 = vadd.f32 1.0, %v5217_v8 }
 0x9ac   :  { %v5221_v55 = vpop.eup %5220  ;;  %v1712_v4 = vadd.f32 1.0, %v5219_v42  ;;  %v1718_v11 = vmul.f32 0.5, %v1710_v36  ;;  %v5038_v42 = vld [vmem:[%s6813_s3 + $0xf4] ss:$12 sps:$4 sm:$0xff]  }
 0x9ad   :  { %1898 = vmatprep.mubr.bf16.mxu0 %v1763_v44  ;;  %v1713_v56 = vadd.f32 1.0, %v5221_v55  ;;  %v1719_v58 = vmul.f32 0.5, %v1711_v54  ;;  %v5039_v44 = vld [vmem:[%s6813_s3 + $0xc8] ss:$12 sps:$4 sm:$0xff]   ;;  %v5036_v54 = vld [vmem:[%s6813_s3 + $0xf0] ss:$12 sps:$4 sm:$0xff]  }
 0x9ae   :  { %1899 = vmatmul.mubr.bf16.vlgmr.msra.gmra.mrb[24].mxu0 %v1762_v33  ;;  %v1720_v49 = vmul.f32 0.5, %v1712_v4  ;;  %v1726_v59 = vmul.f32 %v1718_v11, %v6140_v28  ;;  %4538 = vmatprep.subr.bf16.mxu0 %v5039_v44  ;;  %v5042_v55 = vld [vmem:[%s6813_s3 + $0x10c] ss:$12 sps:$4 sm:$0xff]   ;;  %v5040_v11 = vld [vmem:[%s6813_s3 + $0x108] ss:$12 sps:$4 sm:$0xff]  }
 0x9af   :  { %v1721_v18 = vmul.f32 0.5, %v1713_v56  ;;  %v1727_v20 = vmul.f32 %v1719_v58, %v6143_v32  ;;  %4539 = vmatpush3.bf16.msra.mxu0 %v5039_v44  ;;  %v5043_v4 = vld [vmem:[%s6813_s3 + $0xe0] ss:$12 sps:$4 sm:$0xff]   ;;  %v5046_v56 = vld [vmem:[%s6813_s3 + $0x124] ss:$12 sps:$4 sm:$0xff]  }
 0x9b0   :  { %v1728_v45 = vmul.f32 %v1720_v49, %v6148_v47  ;;  %4540 = vmatprep.subr.bf16.mxu0 %v5043_v4  ;;  %v5047_v58 = vld [vmem:[%s6813_s3 + $0xf8] ss:$12 sps:$4 sm:$0xff]   ;;  %v5044_v49 = vld [vmem:[%s6813_s3 + $0x120] ss:$12 sps:$4 sm:$0xff]  }
 0x9b1   :  { %v1729_v40 = vmul.f32 %v1721_v18, %v6153_v30  ;;  %v5050_v18 = vld [vmem:[%s6813_s3 + $0x13c] ss:$12 sps:$4 sm:$0xff]  }
 0x9b2   :  { %v1764_v61 = vpack.c.bf16 %v1728_v45, %v1726_v59  ;;  %v5051_v59 = vld [vmem:[%s6813_s3 + $0x110] ss:$12 sps:$4 sm:$0xff]   ;;  %v5048_v45 = vld [vmem:[%s6813_s3 + $0x138] ss:$12 sps:$4 sm:$0xff]  }
 0x9b3   :  { %v1765_v38 = vpack.c.bf16 %v1729_v40, %v1727_v20  ;;  %4541 = vmatpush3.bf16.msra.mxu0 %v5043_v4  ;;  %v5054_v20 = vld [vmem:[%s6813_s3 + $0x154] ss:$12 sps:$4 sm:$0xff]  }
 0x9b4   :  { %4542 = vmatprep.subr.bf16.mxu0 %v5047_v58  ;;  %v5055_v40 = vld [vmem:[%s6813_s3 + $0x128] ss:$12 sps:$4 sm:$0xff]  }
 0x9b5   :  { %1906 = vmatprep.mubr.bf16.mxu0 %v1765_v38  ;;  %v5058_v38 = vld [vmem:[%s6813_s3 + $0x16c] ss:$12 sps:$4 sm:$0xff]  }
 0x9b6   :  { %1907 = vmatmul.mubr.bf16.gmra.mrb[28].mxu0 %v1764_v61  ;;  %v5052_v61 = vld [vmem:[%s6813_s3 + $0x150] ss:$12 sps:$4 sm:$0xff]  }
 0x9b7   :  { %4543 = vmatpush3.bf16.msra.mxu0 %v5047_v58 }
 0x9b8   :  { %4544 = vmatprep.subr.bf16.mxu0 %v5051_v59 }
 0x9bb   :  { %4545 = vmatpush3.bf16.msra.mxu0 %v5051_v59 }
 0x9bc   :  { %4546 = vmatprep.subr.bf16.mxu0 %v5055_v40 }
 0x9bf   :  { %4547 = vmatpush3.bf16.msra.mxu0 %v5055_v40 }
 0xa81   :  { %v4324_v0 = vpop.f32.mrb[24].mxu0 }
 0xa82   :  { %v4325_v35 = vpop.f32.mrb[25].mxu0 }
 0xa83   :  { %v4326_v57 = vadd.f32 %v4325_v35, %v4324_v0  ;;  %v4327_v28 = vpop.f32.mrb[26].mxu0  ;;  %v5059_v0 = vld [vmem:[%s6813_s3 + $0x140] ss:$12 sps:$4 sm:$0xff]   ;;  %v5060_v35 = vld [vmem:[%s6813_s3 + $0x158] ss:$12 sps:$4 sm:$0xff]  }
 0xa84   :  { %v4328_v23 = vpop.f32.mrb[27].mxu0  ;;  %4548 = vmatprep.subr.bf16.mxu0 %v5059_v0 }
 0xa85   :  { %v1901_v47 = vadd.f32 %v4326_v57, %v1769_v12  ;;  %v4329_v27 = vadd.f32 %v4328_v23, %v4327_v28  ;;  %4549 = vmatpush3.bf16.msra.mxu0 %v5059_v0  ;;  %v5061_v57 = vld [vmem:[%s6813_s3 + $0x170] ss:$12 sps:$4 sm:$0xff]  }
 0xa86   :  { %4550 = vmatprep.subr.bf16.mxu0 %v5060_v35 }
 0xa87   :  { %v1904_v32 = vadd.f32 %v4329_v27, %v1769_v12  ;;  %v1915_v30 = vadd.f32 %v1901_v47, %v6100_v21  ;;  %v5030_v21 = vld [vmem:[%s6813_s3 + $0xc0] ss:$12 sps:$4 sm:$0xff]  }
 0xa89   :  { %1919 = vadd.xlane.f32.xlu0 %v1915_v30  ;;  %v4330_v1 = vpop.f32.mrb[28].mxu0  ;;  %v1916_v2 = vadd.f32 %v1904_v32, %v6102_v37  ;;  %v5032_v37 = vld [vmem:[%s6813_s3 + $0xc4] ss:$12 sps:$4 sm:$0xff]   ;;  %4551 = vmatpush3.bf16.msra.mxu0 %v5060_v35 }
 0xa8a   :  { %v4331_v34 = vpop.f32.mrb[29].mxu0  ;;  %2162 = vmatprep.subr.bf16.mxu1 %v5032_v37  ;;  %4552 = vmatprep.subr.bf16.mxu0 %v5061_v57 }
 0xa8b   :  { %v4332_v13 = vadd.f32 %v4331_v34, %v4330_v1  ;;  %1921 = vadd.xlane.f32.xlu1 %v1916_v2  ;;  %v4333_v41 = vpop.f32.mrb[30].mxu0  ;;  %2163 = vmatpush1.bf16.msra.mxu1 %v5030_v21  ;;  %v1965_v34 = vsub.s32 4, %v5705_v14 }
 0xa8c   :  { %v4334_v3 = vpop.f32.mrb[31].mxu0  ;;  %2164 = vmatprep.subr.bf16.mxu1 %v5035_v22 }
 0xa8d   :  { %v1909_v63 = vadd.f32 %v4332_v13, %v1769_v12  ;;  %v4335_v9 = vadd.f32 %v4334_v3, %v4333_v41  ;;  %4553 = vmatpush3.bf16.msra.mxu0 %v5061_v57 }
 0xa8f   :  { %v1912_v6 = vadd.f32 %v4335_v9, %v1769_v12  ;;  %v1917_v51 = vadd.f32 %v1909_v63, %v6109_v10  ;;  %v5033_v10 = vld [vmem:[%s6813_s3 + $0xd8] ss:$12 sps:$4 sm:$0xff]   ;;  %v5056_v12 = vld [vmem:[%s6813_s3 + $0x168] ss:$12 sps:$4 sm:$0xff]   ;;  %v1966_v9 = vrot.slane %v6040_v53, %v1965_v34 }
 0xa90   :  { %2165 = vmatpush1.bf16.msra.mxu1 %v5033_v10 }
 0xa91   :  { %1923 = vadd.xlane.f32.xlu0 %v1917_v51  ;;  %v1918_v52 = vadd.f32 %v1912_v6, %v6107_v5  ;;  %2166 = vmatprep.subr.bf16.mxu1 %v5038_v42  ;;  %v1973_v6 = vsub.s32 5, %v5705_v14  ;;  %v5124_v14 = vld [vmem:[#allocation8 + $0x30] sm:$0xff]  }
 0xa93   :  { %1925 = vadd.xlane.f32.xlu1 %v1918_v52  ;;  %v1974_v10 = vrot.slane %v6040_v53, %v1973_v6 }
 0xa94   :  { %2167 = vmatpush1.bf16.msra.mxu1 %v5036_v54 }
 0xa95   :  { %2168 = vmatprep.subr.bf16.mxu1 %v5042_v55 }
 0xa98   :  { %2169 = vmatpush1.bf16.msra.mxu1 %v5040_v11 }
 0xa99   :  { %2170 = vmatprep.subr.bf16.mxu1 %v5046_v56 }
 0xa9c   :  { %2171 = vmatpush1.bf16.msra.mxu1 %v5044_v49 }
 0xa9d   :  { %2172 = vmatprep.subr.bf16.mxu1 %v5050_v18 }
 0xaa0   :  { %2173 = vmatpush1.bf16.msra.mxu1 %v5048_v45 }
 0xaa1   :  { %2174 = vmatprep.subr.bf16.mxu1 %v5054_v20 }
 0xaa4   :  { %2175 = vmatpush1.bf16.msra.mxu1 %v5052_v61 }
 0xaa5   :  { %2176 = vmatprep.subr.bf16.mxu1 %v5058_v38 }
 0xaa8   :  { %2177 = vmatpush1.bf16.msra.mxu1 %v5056_v12 }
 0xb16   :  { %v1920_v5 = vpop.xlane.xlu0 %1919 }
 0xb17   :  { %v1927_v50 = vmul.f32 0.0078125, %v1920_v5 }
 0xb18   :  { %v1922_v24 = vpop.xlane.xlu1 %1921 }
 0xb19   :  { %v6195_v25 = vsub.f32 %v1915_v30, %v1927_v50  ;;  %v1928_v29 = vmul.f32 0.0078125, %v1922_v24 }
 0xb1b   :  { %v6197_v43 = vsub.f32 %v1916_v2, %v1928_v29  ;;  %v1935_v48 = vmul.f32 %v6195_v25, %v6195_v25 }
 0xb1d   :  { %1939 = vadd.xlane.f32.xlu0 %v1935_v48  ;;  %v1936_v26 = vmul.f32 %v6197_v43, %v6197_v43 }
 0xb1e   :  { %v1924_v7 = vpop.xlane.xlu0 %1923 }
 0xb1f   :  { %v1929_v46 = vmul.f32 0.0078125, %v1924_v7  ;;  %1941 = vadd.xlane.f32.xlu1 %v1936_v26 }
 0xb20   :  { %v1926_v60 = vpop.xlane.xlu1 %1925 }
 0xb21   :  { %v6203_v16 = vsub.f32 %v1917_v51, %v1929_v46  ;;  %v1930_v31 = vmul.f32 0.0078125, %v1926_v60 }
 0xb23   :  { %v6205_v8 = vsub.f32 %v1918_v52, %v1930_v31  ;;  %v1937_v33 = vmul.f32 %v6203_v16, %v6203_v16 }
 0xb25   :  { %1943 = vadd.xlane.f32.xlu0 %v1937_v33  ;;  %v1938_v36 = vmul.f32 %v6205_v8, %v6205_v8 }
 0xb27   :  { %1945 = vadd.xlane.f32.xlu1 %v1938_v36 }
 0xbaa   :  { %v1940_v28 = vpop.xlane.xlu0 %1939 }
 0xbab   :  { %v1947_v23 = vmul.f32 0.0078125, %v1940_v28 }
 0xbac   :  { %v1942_v47 = vpop.xlane.xlu1 %1941 }
 0xbad   :  { %v1951_v27 = vadd.f32 1e-12, %v1947_v23  ;;  %v1948_v32 = vmul.f32 0.0078125, %v1942_v47 }
 0xbaf   :  { %5222 = vrsqrt.f32 %v1951_v27  ;;  %v1952_v30 = vadd.f32 1e-12, %v1948_v32 }
 0xbb1   :  { %5224 = vrsqrt.f32 %v1952_v30 }
 0xbb2   :  { %v1944_v1 = vpop.xlane.xlu0 %1943 }
 0xbb3   :  { %v1949_v2 = vmul.f32 0.0078125, %v1944_v1 }
 0xbb4   :  { %v1946_v13 = vpop.xlane.xlu1 %1945 }
 0xbb5   :  { %v1953_v41 = vadd.f32 1e-12, %v1949_v2  ;;  %v1950_v3 = vmul.f32 0.0078125, %v1946_v13 }
 0xbb7   :  { %5226 = vrsqrt.f32 %v1953_v41  ;;  %v1954_v63 = vadd.f32 1e-12, %v1950_v3 }
 0xbb9   :  { %v5223_v51 = vpop.eup %5222  ;;  %5228 = vrsqrt.f32 %v1954_v63 }
 0xbba   :  { %v1959_v52 = vmul.f32 %v5223_v51, %v6195_v25 }
 0xbbb   :  { %v5225_v21 = vpop.eup %5224 }
 0xbbc   :  { %v1967_v37 = vmul.f32 %v1966_v9, %v1959_v52  ;;  %v1960_v22 = vmul.f32 %v5225_v21, %v6197_v43 }
 0xbbe   :  { %v1968_v5 = vmul.f32 %v1966_v9, %v1960_v22  ;;  %v6281_v50 = vadd.f32 %v1974_v10, %v1967_v37 }
 0xbc0   :  { %v6283_v24 = vadd.f32 %v1974_v10, %v1968_v5 }
 0xbc1   :  { %v5227_v29 = vpop.eup %5226 }
 0xbc2   :  { %v2014_v48 = vpack.c.bf16 %v6283_v24, %v6281_v50  ;;  %v1961_v26 = vmul.f32 %v5227_v29, %v6203_v16  ;;  %v4124_v16 = vld [vmem:[%s6817_s7 + $0x3] sm:$0x7]  ;;  %s5457_s7 = smov [#allocation10]  }
 0xbc3   :  { %v5229_v25 = vpop.eup %5228  ;;  %v2022_v33 = vrot.slane %v4124_v16, %v5708_v15  ;;  %v2026_v36 = vrot.slane %v4124_v16, %v5714_v17  ;;  %v2030_v18 = vrot.slane %v4124_v16, %v5718_v19 }
 0xbc4   :  { %2195 = vmatmul.mubr.bf16.vlgmr.msra.gmra.mrb[32].mxu1 %v2014_v48  ;;  %4554 = vmatprep.mubr.bf16.mxu0 %v2014_v48  ;;  %v1962_v43 = vmul.f32 %v5229_v25, %v6205_v8  ;;  %v1969_v7 = vmul.f32 %v1966_v9, %v1961_v26 }
 0xbc5   :  { %2204 = vmatprep.mubr.bf16.mxu1 %v5452_v39 }
 0xbc6   :  { %v1970_v53 = vmul.f32 %v1966_v9, %v1962_v43  ;;  %v6290_v46 = vadd.f32 %v1974_v10, %v1969_v7 }
 0xbc8   :  { %v6292_v60 = vadd.f32 %v1974_v10, %v1970_v53 }
 0xbca   :  { %v2015_v31 = vpack.c.bf16 %v6292_v60, %v6290_v46 }
 0xbcc   :  { %2205 = vmatmul.mubr.bf16.gmra.mrb[36].mxu1 %v2015_v31  ;;  %4555 = vmatmul.mubr.bf16.vlgmr.msra.gmra.mrb[32].mxu0 %v2015_v31 }
 0xc97   :  { %v2196_v8 = vpop.f32.mrb[32].mxu1 }
 0xc98   :  { %v2197_v42 = vadd.f32 %v2196_v8, %v2022_v33  ;;  %v2198_v44 = vpop.f32.mrb[33].mxu1 }
 0xc99   :  { %v2200_v54 = vpop.f32.mrb[34].mxu1  ;;  %v2199_v11 = vadd.f32 %v2198_v44, %v2026_v36 }
 0xc9a   :  { %v2201_v55 = vadd.f32 %v2200_v54, %v2022_v33  ;;  %v2202_v4 = vpop.f32.mrb[35].mxu1  ;;  %v2264_v58 = vmul.f32 0.17677669, %v2197_v42 }
 0xc9b   :  { %v2203_v56 = vadd.f32 %v2202_v4, %v2026_v36 }
 0xc9c   :  { %v2265_v49 = vmul.f32 0.17677669, %v2201_v55 }
 0xc9d   :  { %v4830_v59 = vpack.i.bf16 %v2203_v56, %v2199_v11  ;;  %v2396_v45 = vpack.c.bf16 %v2203_v56, %v2199_v11 }
 0xc9e   :  { %v2388_v20 = vpack.c.bf16 %v2265_v49, %v2264_v58  ;;  %v4870_v40 = vpack.i.bf16 %v2265_v49, %v2264_v58 }
 0xc9f   :  { %4831 = vrot.lane.b32.xlu0 %v4830_v59, %s5453_s11  ;;  %v2206_v61 = vpop.f32.mrb[36].mxu1  ;;  %v4556_v38 = vpop.f32.mrb[32].mxu0  ;;  %4690 = vmatprep.subr.msk.bf16.mxu1 %vm593_vm0, %v2396_v45  ;;  %v2411_v0 = vsel %vm593_vm0, %v2396_v45, 0 }
 0xca0   :  { %v2207_v12 = vadd.f32 %v2206_v61, %v2022_v33  ;;  %v2208_v35 = vpop.f32.mrb[37].mxu1  ;;  %v2249_v57 = vpop.f32.mrb[33].mxu0  ;;  %4559 = vmatpush3.bf16.xpose.msra.mxu1 %v2411_v0  ;;  %4562 = vmatprep.mubr.msk.bf16.mxu1 %vm593_vm0, %v2388_v20  ;;  %v2258_v47 = vadd.f32 %v4556_v38, %v2030_v18 }
 0xca1   :  { %v2210_v28 = vpop.f32.mrb[38].mxu1  ;;  %v4557_v23 = vpop.f32.mrb[34].mxu0  ;;  %v2209_v27 = vadd.f32 %v2208_v35, %v2026_v36  ;;  %v2250_v41 = vadd.f32 %v2249_v57, %v2030_v18 }
 0xca2   :  { %v2211_v32 = vadd.f32 %v2210_v28, %v2022_v33  ;;  %v2261_v30 = vadd.f32 %v4557_v23, %v2030_v18  ;;  %v2212_v1 = vpop.f32.mrb[39].mxu1  ;;  %v2252_v2 = vpop.f32.mrb[35].mxu0  ;;  %v2266_v13 = vmul.f32 0.17677669, %v2207_v12 }
 0xca3   :  { %v2213_v3 = vadd.f32 %v2212_v1, %v2026_v36  ;;  %v2253_v63 = vadd.f32 %v2252_v2, %v2030_v18  ;;  %4851 = vrot.lane.b32.xlu0 %v4830_v59, %s5454_s15 }
 0xca4   :  { %v2267_v9 = vmul.f32 0.17677669, %v2211_v32  ;;  %v6307_v51 = vpack.c.bf16 %v2261_v30, %v2258_v47  ;;  %v6309_v52 = vpack.i.bf16 %v2261_v30, %v2258_v47 }
 0xca5   :  { %v4860_v21 = vpack.i.bf16 %v2213_v3, %v2209_v27  ;;  %v2397_v37 = vpack.c.bf16 %v2213_v3, %v2209_v27  ;;  %v6314_v29 = vpack.c.bf16 %v2253_v63, %v2250_v41  ;;  %v6316_v48 = vpack.i.bf16 %v2253_v63, %v2250_v41 }
 0xca6   :  { %v2389_v22 = vpack.c.bf16 %v2267_v9, %v2266_v13  ;;  %v4855_v10 = vpack.i.bf16 %v2267_v9, %v2266_v13 }
 0xca7   :  { %4861 = vrot.lane.b32.xlu0 %v4860_v21, %s5447_s23  ;;  %4836 = vrot.lane.b32.xlu1 %v4860_v21, %s5453_s11  ;;  %v2414_v5 = vsel %vm593_vm0, %v2397_v37, 0 }
 0xca8   :  { %4691 = vmatprep.subr.msk.bf16.mxu1 %vm593_vm0, %v2397_v37 }
 0xca9   :  { %4561 = vmatpush3.bf16.xpose.msra.mxu1 %v2414_v5 }
 0xcab   :  { %4871 = vrot.lane.b32.xlu0 %v4870_v40, %s5447_s23  ;;  %4841 = vrot.lane.b32.xlu1 %v4830_v59, %s5447_s23 }
 0xcaf   :  { %4876 = vrot.lane.b32.xlu0 %v4870_v40, %s5454_s15  ;;  %4846 = vrot.lane.b32.xlu1 %v4870_v40, %s5453_s11 }
 0xcb0   :  { %4563 = vmatmul.mubr.msk.bf16.vlgmr.msra.gmra.mrb[40].mxu1 %vm593_vm0, %v2389_v22 }
 0xcb3   :  { %4856 = vrot.lane.b32.xlu1 %v4855_v10, %s5453_s11 }
 0xcb7   :  { %4866 = vrot.lane.b32.xlu1 %v4860_v21, %s5454_s15 }
 0xcbb   :  { %4881 = vrot.lane.b32.xlu1 %v4855_v10, %s5447_s23 }
 0xcbf   :  { %4886 = vrot.lane.b32.xlu1 %v4855_v10, %s5454_s15 }
 0xd11   :  { %v4832_v26 = vpop.permute.xlu0 %4831 }
 0xd12   :  { %v4834_v25 = vunpack.i.h.bf16 %v4832_v26  ;;  %v4833_v43 = vunpack.i.l.bf16 %v4832_v26 }
 0xd14   :  { %v2398_v7 = vpack.c.bf16 %v4834_v25, %v4833_v43 }
 0xd15   :  { %v4852_v53 = vpop.permute.xlu0 %4851 }
 0xd16   :  { %4692 = vmatprep.subr.msk.bf16.mxu1 %vm593_vm0, %v2398_v7  ;;  %v2472_v31 = vsel %vm593_vm0, %v2398_v7, 0  ;;  %v4854_v42 = vunpack.i.h.bf16 %v4852_v53  ;;  %v4853_v44 = vunpack.i.l.bf16 %v4852_v53 }
 0xd17   :  { %4567 = vmatpush3.bf16.xpose.msra.mxu1 %v2472_v31 }
 0xd18   :  { %v2402_v18 = vpack.c.bf16 %v4854_v42, %v4853_v44 }
 0xd19   :  { %v4837_v16 = vpop.permute.xlu1 %4836  ;;  %v4862_v33 = vpop.permute.xlu0 %4861 }
 0xd1a   :  { %v4839_v8 = vunpack.i.h.bf16 %v4837_v16  ;;  %v4838_v36 = vunpack.i.l.bf16 %v4837_v16  ;;  %v4864_v59 = vunpack.i.h.bf16 %v4862_v33  ;;  %v4863_v45 = vunpack.i.l.bf16 %v4862_v33  ;;  %v5324_v33 = vld [vmem:[%s6811_s1 + $0x10] sm:$0xff] }
 0xd1b   :  { %v2594_v9 = vsel %vm593_vm0, %v2402_v18, 0 }
 0xd1c   :  { %v2399_v54 = vpack.c.bf16 %v4839_v8, %v4838_v36  ;;  %v2401_v57 = vpack.c.bf16 %v4864_v59, %v4863_v45 }
 0xd1d   :  { %v4842_v55 = vpop.permute.xlu1 %4841  ;;  %v4872_v4 = vpop.permute.xlu0 %4871 }
 0xd1e   :  { %v4844_v11 = vunpack.i.h.bf16 %v4842_v55  ;;  %v4843_v56 = vunpack.i.l.bf16 %v4842_v55  ;;  %v4874_v58 = vunpack.i.h.bf16 %v4872_v4  ;;  %v4873_v49 = vunpack.i.l.bf16 %v4872_v4  ;;  %4693 = vmatprep.subr.msk.bf16.mxu1 %vm593_vm0, %v2399_v54  ;;  %v6365_v55 = vld [vmem:[%s6811_s1 + $0x8] sm:$0xff] }
 0xd1f   :  { %v2475_v20 = vsel %vm593_vm0, %v2399_v54, 0  ;;  %v2536_v21 = vsel %vm593_vm0, %v2401_v57, 0 }
 0xd20   :  { %v2400_v40 = vpack.c.bf16 %v4844_v11, %v4843_v56  ;;  %v2392_v61 = vpack.c.bf16 %v4874_v58, %v4873_v49  ;;  %4569 = vmatpush3.bf16.xpose.msra.mxu1 %v2475_v20  ;;  %v5327_v56 = vld [vmem:[%s6811_s1 + $0x18] sm:$0xff] }
 0xd21   :  { %4696 = vmatprep.subr.msk.bf16.mxu1 %vm593_vm0, %v2402_v18  ;;  %v4847_v38 = vpop.permute.xlu1 %4846  ;;  %v4877_v35 = vpop.permute.xlu0 %4876 }
 0xd22   :  { %v4849_v0 = vunpack.i.h.bf16 %v4847_v38  ;;  %v4848_v12 = vunpack.i.l.bf16 %v4847_v38  ;;  %4694 = vmatprep.subr.msk.bf16.mxu0 %vm593_vm0, %v2400_v40  ;;  %4578 = vmatprep.mubr.msk.bf16.mxu0 %vm593_vm0, %v2392_v61  ;;  %v2533_v28 = vsel %vm593_vm0, %v2400_v40, 0  ;;  %v4879_v47 = vunpack.i.h.bf16 %v4877_v35 }
 0xd23   :  { %4575 = vmatpush3.bf16.xpose.msra.mxu0 %v2533_v28  ;;  %v4878_v27 = vunpack.i.l.bf16 %v4877_v35 }
 0xd24   :  { %v2390_v23 = vpack.c.bf16 %v4849_v0, %v4848_v12  ;;  %4695 = vmatprep.subr.msk.bf16.mxu0 %vm593_vm0, %v2401_v57 }
 0xd25   :  { %v4857_v32 = vpop.permute.xlu1 %4856  ;;  %v2394_v13 = vpack.c.bf16 %v4879_v47, %v4878_v27 }
 0xd26   :  { %v4859_v30 = vunpack.i.h.bf16 %v4857_v32  ;;  %v4858_v1 = vunpack.i.l.bf16 %v4857_v32  ;;  %4570 = vmatprep.mubr.msk.bf16.mxu1 %vm593_vm0, %v2390_v23 }
 0xd28   :  { %v2391_v2 = vpack.c.bf16 %v4859_v30, %v4858_v1 }
 0xd29   :  { %v4867_v41 = vpop.permute.xlu1 %4866 }
 0xd2a   :  { %v4869_v3 = vunpack.i.h.bf16 %v4867_v41  ;;  %v4868_v63 = vunpack.i.l.bf16 %v4867_v41  ;;  %4571 = vmatmul.mubr.msk.bf16.vlgmr.msra.gmra.mrb[44].mxu1 %vm593_vm0, %v2391_v2 }
 0xd2b   :  { %4583 = vmatpush3.bf16.xpose.msra.mxu1 %v2594_v9  ;;  %4586 = vmatprep.mubr.msk.bf16.mxu1 %vm593_vm0, %v2394_v13 }
 0xd2c   :  { %v2403_v37 = vpack.c.bf16 %v4869_v3, %v4868_v63  ;;  %4577 = vmatpush3.bf16.xpose.msra.mxu0 %v2536_v21 }
 0xd2d   :  { %4590 = vmatprep.subr.bf16.mxu0 %v6314_v29  ;;  %v4882_v22 = vpop.permute.xlu1 %4881 }
 0xd2e   :  { %v4884_v10 = vunpack.i.h.bf16 %v4882_v22  ;;  %v4883_v5 = vunpack.i.l.bf16 %v4882_v22  ;;  %4697 = vmatprep.subr.msk.bf16.mxu1 %vm593_vm0, %v2403_v37  ;;  %v2597_v43 = vsel %vm593_vm0, %v2403_v37, 0 }
 0xd30   :  { %v2393_v26 = vpack.c.bf16 %v4884_v10, %v4883_v5 }
 0xd31   :  { %v4887_v25 = vpop.permute.xlu1 %4886 }
 0xd32   :  { %v4889_v7 = vunpack.i.h.bf16 %v4887_v25  ;;  %v4888_v53 = vunpack.i.l.bf16 %v4887_v25 }
 0xd33   :  { %4579 = vmatmul.mubr.msk.bf16.vlgmr.msra.gmra.mrb[36].mxu0 %vm593_vm0, %v2393_v26  ;;  %4585 = vmatpush3.bf16.xpose.msra.mxu1 %v2597_v43 }
 0xd34   :  { %4591 = vmatpush3.bf16.msra.mxu0 %v6314_v29  ;;  %v2395_v31 = vpack.c.bf16 %v4889_v7, %v4888_v53  ;;  %v5325_v29 = vld [vmem:[%s6811_s1] sm:$0xff] }
 0xd35   :  { %4592 = vmatprep.subr.bf16.mxu0 %v6307_v51 }
 0xd38   :  { %4593 = vmatpush3.bf16.msra.mxu0 %v6307_v51 }
 0xd3a   :  { %4587 = vmatmul.mubr.msk.bf16.vlgmr.msra.gmra.mrb[48].mxu1 %vm593_vm0, %v2395_v31 }
 0xd83   :  { %v4564_v16 = vpop.f32.mrb[40].mxu1 }
 0xd84   :  { %v6353_v8 = vadd.f32 %v5324_v33, %v4564_v16  ;;  %v2450_v36 = vpop.f32.mrb[41].mxu1 }
 0xd85   :  { %v4565_v42 = vpop.f32.mrb[42].mxu1  ;;  %v6358_v44 = vadd.f32 %v5325_v29, %v2450_v36 }
 0xd86   :  { %v2453_v54 = vpop.f32.mrb[43].mxu1  ;;  %v2654_v51 = vsel %vm593_vm0, %v6353_v8, -inf  ;;  %v6375_v58 = vadd.f32 %v5327_v56, %v4565_v42 }
 0xd87   :  { %v6368_v4 = vadd.f32 %v6365_v55, %v2453_v54  ;;  %2655 = vmax.xlane.f32.xlu0 %v2654_v51  ;;  %v2648_v49 = vsel %vm593_vm0, %v6358_v44, -inf }
 0xd88   :  { %v2657_v18 = vsel %vm593_vm0, %v6375_v58, -inf }
 0xd89   :  { %v2651_v11 = vsel %vm593_vm0, %v6368_v4, -inf }
 0xd8a   :  { %2652 = vmax.xlane.f32.xlu1 %v2651_v11 }
 0xd8b   :  { %2649 = vmax.xlane.f32.xlu0 %v2648_v49 }
 0xd8f   :  { %2658 = vmax.xlane.f32.xlu0 %v2657_v18 }
 0xdfd   :  { %v4572_v59 = vpop.f32.mrb[44].mxu1 }
 0xdfe   :  { %v6381_v45 = vadd.f32 %v5324_v33, %v4572_v59  ;;  %v2511_v20 = vpop.f32.mrb[45].mxu1 }
 0xdff   :  { %v4573_v40 = vpop.f32.mrb[46].mxu1  ;;  %v6391_v47 = vadd.f32 %v5325_v29, %v2511_v20 }
 0xe00   :  { %v6383_v61 = vadd.f32 %v5327_v56, %v4573_v40  ;;  %v2514_v38 = vpop.f32.mrb[47].mxu1  ;;  %v2666_v0 = vsel %vm593_vm0, %v6381_v45, -inf }
 0xe01   :  { %2667 = vmax.xlane.f32.xlu0 %v2666_v0  ;;  %v6398_v1 = vadd.f32 %v6365_v55, %v2514_v38  ;;  %v2660_v3 = vsel %vm593_vm0, %v6391_v47, -inf }
 0xe02   :  { %v2669_v12 = vsel %vm593_vm0, %v6383_v61, -inf }
 0xe03   :  { %2670 = vmax.xlane.f32.xlu1 %v2669_v12  ;;  %v2663_v37 = vsel %vm593_vm0, %v6398_v1, -inf }
 0xe06   :  { %v4580_v35 = vpop.f32.mrb[36].mxu0 }
 0xe07   :  { %v6389_v57 = vadd.f32 %v5324_v33, %v4580_v35  ;;  %v2572_v28 = vpop.f32.mrb[37].mxu0 }
 0xe08   :  { %v4581_v23 = vpop.f32.mrb[38].mxu0  ;;  %v6402_v13 = vadd.f32 %v5325_v29, %v2572_v28 }
 0xe09   :  { %v6393_v27 = vadd.f32 %v5327_v56, %v4581_v23  ;;  %v2575_v32 = vpop.f32.mrb[39].mxu0  ;;  %v2678_v30 = vsel %vm593_vm0, %v6389_v57, -inf }
 0xe0a   :  { %2679 = vmax.xlane.f32.xlu0 %v2678_v30  ;;  %v6407_v9 = vadd.f32 %v6365_v55, %v2575_v32  ;;  %v2672_v5 = vsel %vm593_vm0, %v6402_v13, -inf }
 0xe0b   :  { %v2681_v2 = vsel %vm593_vm0, %v6393_v27, -inf }
 0xe0c   :  { %2682 = vmax.xlane.f32.xlu1 %v2681_v2  ;;  %v2675_v26 = vsel %vm593_vm0, %v6407_v9, -inf }
 0xe0d   :  { %v4588_v41 = vpop.f32.mrb[48].mxu1 }
 0xe0e   :  { %v2633_v63 = vpop.f32.mrb[49].mxu1  ;;  %2661 = vmax.xlane.f32.xlu0 %v2660_v3  ;;  %v6411_v10 = vadd.f32 %v5324_v33, %v4588_v41 }
 0xe0f   :  { %v4589_v21 = vpop.f32.mrb[50].mxu1  ;;  %v6417_v25 = vadd.f32 %v5325_v29, %v2633_v63 }
 0xe10   :  { %v2636_v22 = vpop.f32.mrb[51].mxu1  ;;  %2664 = vmax.xlane.f32.xlu1 %v2663_v37  ;;  %v2690_v43 = vsel %vm593_vm0, %v6411_v10, -inf  ;;  %v6431_v29 = vadd.f32 %v5327_v56, %v4589_v21 }
 0xe11   :  { %v2684_v7 = vsel %vm593_vm0, %v6417_v25, -inf  ;;  %v6436_v51 = vadd.f32 %v6365_v55, %v2636_v22 }
 0xe12   :  { %2673 = vmax.xlane.f32.xlu0 %v2672_v5  ;;  %v2693_v11 = vsel %vm593_vm0, %v6431_v29, -inf }
 0xe14   :  { %2676 = vmax.xlane.f32.xlu1 %v2675_v26  ;;  %v2656_v53 = vpop.xlane.xlu0 %2655 }
 0xe15   :  { %v2698_v31 = vsub.f32 %v6353_v8, %v2656_v53 }
 0xe16   :  { %2691 = vmax.xlane.f32.xlu0 %v2690_v43 }
 0xe17   :  { %v2716_v33 = vmul.f32 1.442695, %v2698_v31  ;;  %v2653_v59 = vpop.xlane.xlu1 %2652 }
 0xe18   :  { %v2650_v16 = vpop.xlane.xlu0 %2649  ;;  %v2697_v20 = vsub.f32 %v6368_v4, %v2653_v59 }
 0xe19   :  { %v2696_v36 = vsub.f32 %v6358_v44, %v2650_v16  ;;  %5230 = vpow2.f32 %v2716_v33  ;;  %v2687_v44 = vsel %vm593_vm0, %v6436_v51, -inf }
 0xe1a   :  { %2685 = vmax.xlane.f32.xlu0 %v2684_v7  ;;  %v2714_v38 = vmul.f32 1.442695, %v2697_v20 }
 0xe1b   :  { %v2712_v42 = vmul.f32 1.442695, %v2696_v36 }
 0xe1c   :  { %v2659_v55 = vpop.xlane.xlu0 %2658 }
 0xe1d   :  { %5232 = vpow2.f32 %v2712_v42  ;;  %v2699_v18 = vsub.f32 %v6375_v58, %v2659_v55 }
 0xe1f   :  { %v2718_v40 = vmul.f32 1.442695, %v2699_v18 }
 0xe21   :  { %5234 = vpow2.f32 %v2718_v40 }
 0xe22   :  { %5236 = vpow2.f32 %v2714_v38 }
 0xe23   :  { %v6433_v54 = vpop.eup %5230 }
 0xe24   :  { %v2750_v8 = vsel %vm593_vm0, %v6433_v54, 0.0 }
 0xe25   :  { %4896 = vrot.lane.b32.xlu1 %v6309_v52, %s5453_s11 }
 0xe27   :  { %v6442_v49 = vpop.eup %5232 }
 0xe28   :  { %v2744_v56 = vsel %vm593_vm0, %v6442_v49, 0.0 }
 0xe29   :  { %4901 = vrot.lane.b32.xlu1 %v6316_v48, %s5447_s23 }
 0xe2b   :  { %v6452_v0 = vpop.eup %5234 }
 0xe2c   :  { %v2753_v12 = vsel %vm593_vm0, %v6452_v0, 0.0  ;;  %v6456_v35 = vpop.eup %5236 }
 0xe30   :  { %4891 = vrot.lane.b32.xlu0 %v6316_v48, %s5453_s11 }
 0xe4d   :  { %2694 = vmax.xlane.f32.xlu1 %v2693_v11 }
 0xe4f   :  { %2751 = vadd.xlane.f32.xlu0 %v2750_v8 }
 0xe51   :  { %2688 = vmax.xlane.f32.xlu1 %v2687_v44 }
 0xe53   :  { %2745 = vadd.xlane.f32.xlu0 %v2744_v56 }
 0xe62   :  { %4906 = vrot.lane.b32.xlu1 %v6316_v48, %s5454_s15  ;;  %v2747_v48 = vsel %vm593_vm0, %v6456_v35, 0.0 }
 0xe86   :  { %2754 = vadd.xlane.f32.xlu1 %v2753_v12 }
 0xe8a   :  { %2748 = vadd.xlane.f32.xlu1 %v2747_v48 }
 0xe8e   :  { %v2668_v58 = vpop.xlane.xlu0 %2667 }
 0xe8f   :  { %v2702_v28 = vsub.f32 %v6381_v45, %v2668_v58 }
 0xe90   :  { %v2671_v4 = vpop.xlane.xlu1 %2670 }
 0xe91   :  { %v2724_v23 = vmul.f32 1.442695, %v2702_v28  ;;  %v2703_v32 = vsub.f32 %v6383_v61, %v2671_v4 }
 0xe93   :  { %5238 = vpow2.f32 %v2724_v23  ;;  %v2726_v30 = vmul.f32 1.442695, %v2703_v32 }
 0xe95   :  { %5240 = vpow2.f32 %v2726_v30 }
 0xe97   :  { %v2680_v2 = vpop.xlane.xlu0 %2679 }
 0xe98   :  { %v2706_v41 = vsub.f32 %v6389_v57, %v2680_v2 }
 0xe99   :  { %v2683_v3 = vpop.xlane.xlu1 %2682 }
 0xe9a   :  { %v2732_v63 = vmul.f32 1.442695, %v2706_v41  ;;  %v2707_v21 = vsub.f32 %v6393_v27, %v2683_v3 }
 0xe9b   :  { %v2662_v37 = vpop.xlane.xlu0 %2661 }
 0xe9c   :  { %5242 = vpow2.f32 %v2732_v63  ;;  %v2734_v22 = vmul.f32 1.442695, %v2707_v21  ;;  %v2700_v5 = vsub.f32 %v6391_v47, %v2662_v37 }
 0xe9d   :  { %v6465_v45 = vpop.eup %5238  ;;  %v2665_v26 = vpop.xlane.xlu1 %2664 }
 0xe9e   :  { %5244 = vpow2.f32 %v2734_v22  ;;  %v2720_v61 = vmul.f32 1.442695, %v2700_v5  ;;  %v2701_v43 = vsub.f32 %v6398_v1, %v2665_v26  ;;  %v2762_v7 = vsel %vm593_vm0, %v6465_v45, 0.0 }
 0xe9f   :  { %v6470_v57 = vpop.eup %5240  ;;  %v2674_v53 = vpop.xlane.xlu0 %2673  ;;  %2763 = vadd.xlane.f32.xlu0 %v2762_v7 }
 0xea0   :  { %5246 = vpow2.f32 %v2720_v61  ;;  %v2722_v27 = vmul.f32 1.442695, %v2701_v43  ;;  %v2704_v31 = vsub.f32 %v6402_v13, %v2674_v53  ;;  %v2765_v47 = vsel %vm593_vm0, %v6470_v57, 0.0 }
 0xea1   :  { %v2677_v16 = vpop.xlane.xlu1 %2676  ;;  %2766 = vadd.xlane.f32.xlu1 %v2765_v47 }
 0xea2   :  { %5248 = vpow2.f32 %v2722_v27  ;;  %v2728_v33 = vmul.f32 1.442695, %v2704_v31  ;;  %v2705_v1 = vsub.f32 %v6407_v9, %v2677_v16 }
 0xea3   :  { %v2692_v36 = vpop.xlane.xlu0 %2691 }
 0xea4   :  { %5250 = vpow2.f32 %v2728_v33  ;;  %v2730_v42 = vmul.f32 1.442695, %v2705_v1  ;;  %v2710_v11 = vsub.f32 %v6411_v10, %v2692_v36 }
 0xea5   :  { %v4897_v8 = vpop.permute.xlu1 %4896 }
 0xea6   :  { %v6477_v44 = vpop.eup %5242  ;;  %5252 = vpow2.f32 %v2730_v42  ;;  %v2740_v56 = vmul.f32 1.442695, %v2710_v11  ;;  %v4899_v48 = vunpack.i.h.bf16 %v4897_v8  ;;  %v4898_v58 = vunpack.i.l.bf16 %v4897_v8 }
 0xea7   :  { %v2686_v13 = vpop.xlane.xlu0 %2685  ;;  %v2774_v55 = vsel %vm593_vm0, %v6477_v44, 0.0 }
 0xea8   :  { %v6481_v18 = vpop.eup %5244  ;;  %5254 = vpow2.f32 %v2740_v56  ;;  %v2708_v59 = vsub.f32 %v6417_v25, %v2686_v13  ;;  %2775 = vadd.xlane.f32.xlu0 %v2774_v55  ;;  %v2835_v37 = vpack.c.bf16 %v4899_v48, %v4898_v58 }
 0xea9   :  { %v4902_v9 = vpop.permute.xlu1 %4901  ;;  %v2777_v20 = vsel %vm593_vm0, %v6481_v18, 0.0 }
 0xeaa   :  { %v6486_v10 = vpop.eup %5246  ;;  %v2736_v40 = vmul.f32 1.442695, %v2708_v59  ;;  %v4904_v38 = vunpack.i.h.bf16 %v4902_v9  ;;  %v4903_v12 = vunpack.i.l.bf16 %v4902_v9  ;;  %2778 = vadd.xlane.f32.xlu1 %v2777_v20 }
 0xeab   :  { %v4892_v28 = vpop.permute.xlu0 %4891  ;;  %v2756_v4 = vsel %vm593_vm0, %v6486_v10, 0.0 }
 0xeac   :  { %v6490_v23 = vpop.eup %5248  ;;  %5256 = vpow2.f32 %v2736_v40  ;;  %v6492_v25 = vpack.c.bf16 %v4904_v38, %v4903_v12  ;;  %v4894_v32 = vunpack.i.h.bf16 %v4892_v28  ;;  %v4893_v30 = vunpack.i.l.bf16 %v4892_v28  ;;  %2757 = vadd.xlane.f32.xlu0 %v2756_v4 }
 0xead   :  { %v2759_v2 = vsel %vm593_vm0, %v6490_v23, 0.0 }
 0xeae   :  { %v6496_v41 = vpop.eup %5250  ;;  %v2834_v3 = vpack.c.bf16 %v4894_v32, %v4893_v30  ;;  %2760 = vadd.xlane.f32.xlu1 %v2759_v2  ;;  %4606 = vmatprep.subr.bf16.mxu0 %v6492_v25 }
 0xeaf   :  { %v2768_v63 = vsel %vm593_vm0, %v6496_v41, 0.0 }
 0xeb0   :  { %v6501_v21 = vpop.eup %5252  ;;  %2769 = vadd.xlane.f32.xlu0 %v2768_v63  ;;  %4598 = vmatprep.subr.bf16.mxu1 %v2834_v3 }
 0xeb1   :  { %4599 = vmatpush3.bf16.msra.mxu1 %v2834_v3  ;;  %v2771_v22 = vsel %vm593_vm0, %v6501_v21, 0.0 }
 0xeb2   :  { %v6505_v5 = vpop.eup %5254  ;;  %2772 = vadd.xlane.f32.xlu1 %v2771_v22  ;;  %4600 = vmatprep.subr.bf16.mxu1 %v2835_v37 }
 0xeb3   :  { %v2786_v26 = vsel %vm593_vm0, %v6505_v5, 0.0 }
 0xeb4   :  { %2787 = vadd.xlane.f32.xlu0 %v2786_v26 }
 0xeb5   :  { %4601 = vmatpush3.bf16.msra.mxu1 %v2835_v37 }
 0xeb6   :  { %v6509_v61 = vpop.eup %5256 }
 0xeb7   :  { %v2780_v43 = vsel %vm593_vm0, %v6509_v61, 0.0 }
 0xeb8   :  { %2781 = vadd.xlane.f32.xlu0 %v2780_v43 }
 0xece   :  { %4911 = vrot.lane.b32.xlu0 %v6309_v52, %s5447_s23 }
 0xeda   :  { %v2695_v7 = vpop.xlane.xlu1 %2694 }
 0xedb   :  { %v2711_v53 = vsub.f32 %v6431_v29, %v2695_v7 }
 0xedc   :  { %v2752_v56 = vpop.xlane.xlu0 %2751 }
 0xedd   :  { %v2742_v27 = vmul.f32 1.442695, %v2711_v53 }
 0xede   :  { %v2689_v31 = vpop.xlane.xlu1 %2688 }
 0xedf   :  { %5258 = vpow2.f32 %v2742_v27  ;;  %v2709_v47 = vsub.f32 %v6436_v51, %v2689_v31 }
 0xee0   :  { %v2746_v13 = vpop.xlane.xlu0 %2745 }
 0xee1   :  { %v2738_v16 = vmul.f32 1.442695, %v2709_v47 }
 0xee2   :  { %v4907_v33 = vpop.permute.xlu1 %4906 }
 0xee3   :  { %5260 = vpow2.f32 %v2738_v16  ;;  %v4909_v1 = vunpack.i.h.bf16 %v4907_v33  ;;  %v4908_v36 = vunpack.i.l.bf16 %v4907_v33 }
 0xee5   :  { %v6517_v42 = vpack.c.bf16 %v4909_v1, %v4908_v36 }
 0xee7   :  { %4614 = vmatprep.subr.bf16.mxu1 %v6517_v42 }
 0xee9   :  { %v6520_v11 = vpop.eup %5258 }
 0xeea   :  { %v2789_v8 = vsel %vm593_vm0, %v6520_v11, 0.0 }
 0xeeb   :  { %2790 = vadd.xlane.f32.xlu1 %v2789_v8 }
 0xeed   :  { %v6524_v29 = vpop.eup %5260 }
 0xeee   :  { %v2783_v51 = vsel %vm593_vm0, %v6524_v29, 0.0 }
 0xeef   :  { %2784 = vadd.xlane.f32.xlu1 %v2783_v51 }
 0xf00   :  { %4916 = vrot.lane.b32.xlu1 %v6309_v52, %s5454_s15 }
 0xf13   :  { %v2755_v55 = vpop.xlane.xlu1 %2754 }
 0xf14   :  { %5262 = vrcp.f32 %v2755_v55 }
 0xf15   :  { %5264 = vrcp.f32 %v2746_v13 }
 0xf16   :  { %5266 = vrcp.f32 %v2752_v56 }
 0xf17   :  { %v2749_v59 = vpop.xlane.xlu1 %2748 }
 0xf18   :  { %5268 = vrcp.f32 %v2749_v59 }
 0xf1e   :  { %v5263_v9 = vpop.eup %5262 }
 0xf1f   :  { %v5265_v20 = vpop.eup %5264  ;;  %v2811_v12 = vmul.f32 %v5263_v9, %v6452_v0 }
 0xf20   :  { %v5267_v40 = vpop.eup %5266  ;;  %v2808_v48 = vmul.f32 %v5265_v20, %v6442_v49 }
 0xf21   :  { %v2810_v52 = vmul.f32 %v5267_v40, %v6433_v54 }
 0xf22   :  { %v5269_v38 = vpop.eup %5268 }
 0xf23   :  { %v2809_v58 = vmul.f32 %v5269_v38, %v6456_v35  ;;  %v2825_v4 = vpack.c.bf16 %v2811_v12, %v2810_v52 }
 0xf25   :  { %v2824_v28 = vpack.c.bf16 %v2809_v58, %v2808_v48 }
 0xf27   :  { %4594 = vmatprep.mubr.msk.bf16.mxu0 %vm593_vm0, %v2824_v28 }
 0xf28   :  { %4595 = vmatmul.mubr.msk.bf16.vlgmr.msra.gmra.mrb[40].mxu0 %vm593_vm0, %v2825_v4 }
 0xf29   :  { %4607 = vmatpush3.bf16.msra.mxu0 %v6492_v25 }
 0xf2c   :  { %v2764_v32 = vpop.xlane.xlu0 %2763 }
 0xf2e   :  { %v2767_v30 = vpop.xlane.xlu1 %2766 }
 0xf2f   :  { %5270 = vrcp.f32 %v2767_v30 }
 0xf35   :  { %v2776_v2 = vpop.xlane.xlu0 %2775 }
 0xf37   :  { %v2779_v3 = vpop.xlane.xlu1 %2778 }
 0xf39   :  { %v2758_v0 = vpop.xlane.xlu0 %2757  ;;  %v5271_v37 = vpop.eup %5270 }
 0xf3a   :  { %5272 = vrcp.f32 %v2758_v0  ;;  %v2815_v7 = vmul.f32 %v5271_v37, %v6470_v57 }
 0xf3b   :  { %5274 = vrcp.f32 %v2764_v32  ;;  %v2761_v49 = vpop.xlane.xlu1 %2760 }
 0xf3c   :  { %5276 = vrcp.f32 %v2761_v49  ;;  %v5063_v49 = vld [vmem:[%s6814_s4 + $0x48] sm:$0xff]  }
 0xf3d   :  { %v2770_v35 = vpop.xlane.xlu0 %2769 }
 0xf3e   :  { %5278 = vrcp.f32 %v2770_v35 }
 0xf3f   :  { %5280 = vrcp.f32 %v2779_v3  ;;  %v2773_v54 = vpop.xlane.xlu1 %2772 }
 0xf40   :  { %5282 = vrcp.f32 %v2773_v54 }
 0xf41   :  { %5284 = vrcp.f32 %v2776_v2  ;;  %v2788_v63 = vpop.xlane.xlu0 %2787 }
 0xf44   :  { %v5273_v22 = vpop.eup %5272 }
 0xf45   :  { %v5275_v25 = vpop.eup %5274  ;;  %v2782_v26 = vpop.xlane.xlu0 %2781  ;;  %v2812_v53 = vmul.f32 %v5273_v22, %v6486_v10  ;;  %v5064_v22 = vld [vmem:[%s6814_s4 + $0x50] sm:$0xff]  }
 0xf46   :  { %v5277_v43 = vpop.eup %5276  ;;  %v2814_v47 = vmul.f32 %v5275_v25, %v6465_v45 }
 0xf47   :  { %v2813_v27 = vmul.f32 %v5277_v43, %v6490_v23 }
 0xf48   :  { %v5279_v31 = vpop.eup %5278  ;;  %v2827_v56 = vpack.c.bf16 %v2815_v7, %v2814_v47  ;;  %v5066_v47 = vld [vmem:[%s6814_s4 + $0x60] sm:$0xff]  }
 0xf49   :  { %v5281_v16 = vpop.eup %5280  ;;  %v4912_v33 = vpop.permute.xlu0 %4911  ;;  %v2826_v1 = vpack.c.bf16 %v2813_v27, %v2812_v53  ;;  %v2816_v55 = vmul.f32 %v5279_v31, %v6496_v41  ;;  %v5065_v27 = vld [vmem:[%s6814_s4 + $0x58] sm:$0xff]  }
 0xf4a   :  { %v5283_v36 = vpop.eup %5282  ;;  %v4914_v8 = vunpack.i.h.bf16 %v4912_v33  ;;  %v4913_v51 = vunpack.i.l.bf16 %v4912_v33  ;;  %v2819_v10 = vmul.f32 %v5281_v16, %v6481_v18  ;;  %v5067_v16 = vld [vmem:[%s6814_s4 + $0x68] sm:$0xff]   ;;  %v5068_v33 = vld [vmem:[%s6814_s4 + $0x70] sm:$0xff]  }
 0xf4b   :  { %v5285_v13 = vpop.eup %5284  ;;  %4602 = vmatprep.mubr.msk.bf16.mxu1 %vm593_vm0, %v2826_v1  ;;  %v2817_v57 = vmul.f32 %v5283_v36, %v6501_v21  ;;  %v5069_v1 = vld [vmem:[%s6814_s4 + $0x78] sm:$0xff]  }
 0xf4c   :  { %v2837_v23 = vpack.c.bf16 %v4914_v8, %v4913_v51  ;;  %4603 = vmatmul.mubr.msk.bf16.vlgmr.msra.gmra.mrb[52].mxu1 %vm593_vm0, %v2827_v56  ;;  %v2818_v59 = vmul.f32 %v5285_v13, %v6477_v44 }
 0xf4d   :  { %4615 = vmatpush3.bf16.msra.mxu1 %v6517_v42  ;;  %v2828_v45 = vpack.c.bf16 %v2817_v57, %v2816_v55 }
 0xf4e   :  { %4608 = vmatprep.subr.bf16.mxu0 %v2837_v23  ;;  %v2829_v9 = vpack.c.bf16 %v2819_v10, %v2818_v59 }
 0xf4f   :  { %4609 = vmatpush3.bf16.msra.mxu0 %v2837_v23  ;;  %4610 = vmatprep.mubr.msk.bf16.mxu0 %vm593_vm0, %v2828_v45 }
 0xf52   :  { %4611 = vmatmul.mubr.msk.bf16.vlgmr.msra.gmra.mrb[44].mxu0 %vm593_vm0, %v2829_v9 }
 0xf78   :  { %v2791_v41 = vpop.xlane.xlu1 %2790 }
 0xf79   :  { %5286 = vrcp.f32 %v2791_v41 }
 0xf7a   :  { %5288 = vrcp.f32 %v2782_v26 }
 0xf7b   :  { %5290 = vrcp.f32 %v2788_v63 }
 0xf7c   :  { %v2785_v18 = vpop.xlane.xlu1 %2784 }
 0xf7d   :  { %5292 = vrcp.f32 %v2785_v18 }
 0xf80   :  { %v4917_v21 = vpop.permute.xlu1 %4916 }
 0xf81   :  { %v4919_v20 = vunpack.i.h.bf16 %v4917_v21  ;;  %v4918_v40 = vunpack.i.l.bf16 %v4917_v21 }
 0xf83   :  { %v2839_v42 = vpack.c.bf16 %v4919_v20, %v4918_v40  ;;  %v5287_v38 = vpop.eup %5286 }
 0xf84   :  { %v5289_v12 = vpop.eup %5288  ;;  %v2823_v58 = vmul.f32 %v5287_v38, %v6520_v11 }
 0xf85   :  { %4616 = vmatprep.subr.bf16.mxu1 %v2839_v42  ;;  %v5291_v44 = vpop.eup %5290  ;;  %v2820_v52 = vmul.f32 %v5289_v12, %v6509_v61 }
 0xf86   :  { %4617 = vmatpush3.bf16.msra.mxu1 %v2839_v42  ;;  %v2822_v4 = vmul.f32 %v5291_v44, %v6505_v5  ;;  %v5062_v5 = vld [vmem:[%s6814_s4 + $0x40] sm:$0xff]   ;;  %s3998_s4 = sshll.u32 %s5457_s7, 4  ;;  %s3999_s4 = int_to_ptr.vmem [resolvable:$true] %s3998_s4 }
 0xf87   :  { %v5293_v48 = vpop.eup %5292  ;;  %4622 = vmatprep.subr.bf16.mxu0 %v5062_v5  ;;  %p5421_p5 = scmp.lt.s32.totalorder %s3999_s4, %s3999_s4 }
 0xf88   :  { %v2821_v28 = vmul.f32 %v5293_v48, %v6524_v29  ;;  %v2831_v30 = vpack.c.bf16 %v2823_v58, %v2822_v4  ;;  %4623 = vmatpush3.bf16.msra.mxu0 %v5062_v5 }
 0xf89   :  { %4624 = vmatprep.subr.bf16.mxu0 %v5063_v49 }
 0xf8a   :  { %v2830_v32 = vpack.c.bf16 %v2821_v28, %v2820_v52 }
 0xf8c   :  { %4618 = vmatprep.mubr.msk.bf16.mxu1 %vm593_vm0, %v2830_v32  ;;  %4625 = vmatpush3.bf16.msra.mxu0 %v5063_v49 }
 0xf8d   :  { %4619 = vmatmul.mubr.msk.bf16.vlgmr.msra.gmra.mrb[56].mxu1 %vm593_vm0, %v2831_v30  ;;  %4626 = vmatprep.subr.bf16.mxu0 %v5064_v22 }
 0xf8e   :  { %3448 = vmatprep.mubr.bf16.mxu1 %v5452_v39 }
 0xf90   :  { %4627 = vmatpush3.bf16.msra.mxu0 %v5064_v22 }
 0xf91   :  { %4628 = vmatprep.subr.bf16.mxu0 %v5065_v27 }
 0xf94   :  { %4629 = vmatpush3.bf16.msra.mxu0 %v5065_v27 }
 0xf95   :  { %4630 = vmatprep.subr.bf16.mxu0 %v5066_v47 }
 0xf98   :  { %4631 = vmatpush3.bf16.msra.mxu0 %v5066_v47 }
 0xf99   :  { %4632 = vmatprep.subr.bf16.mxu0 %v5067_v16 }
 0xf9c   :  { %4633 = vmatpush3.bf16.msra.mxu0 %v5067_v16 }
 0xf9d   :  { %4634 = vmatprep.subr.bf16.mxu0 %v5068_v33 }
 0xfa0   :  { %4635 = vmatpush3.bf16.msra.mxu0 %v5068_v33 }
 0xfa1   :  { %4636 = vmatprep.subr.bf16.mxu0 %v5069_v1 }
 0xfa4   :  { %4637 = vmatpush3.bf16.msra.mxu0 %v5069_v1 }
 0xffb   :  { %v6557_v2 = vpop.f32.mrb[40].mxu0 }
 0xffc   :  { %v6559_v3 = vpop.f32.mrb[41].mxu0 }
 0xffd   :  { %v6561_v0 = vpop.f32.mrb[42].mxu0 }
 0xffe   :  { %v6563_v11 = vpop.f32.mrb[43].mxu0 }
0x101f   :  { %v4604_v61 = vpop.f32.mrb[52].mxu1 }
0x1020   :  { %v2935_v29 = vpop.f32.mrb[53].mxu1 }
0x1021   :  { %v4605_v35 = vpop.f32.mrb[54].mxu1 }
0x1022   :  { %v4920_v54 = vpack.i.bf16 %v4605_v35, %v4604_v61  ;;  %v2938_v63 = vpop.f32.mrb[55].mxu1 }
0x1023   :  { %v4930_v37 = vpack.i.bf16 %v2938_v63, %v2935_v29  ;;  %v6614_v63 = vld [vmem:[%s6819_s9 + $0x8] sm:$0x3f] }
0x1024   :  { %4921 = vrot.lane.b32.xlu1 %v4920_v54, %s5454_s15 }
0x1025   :  { %v4612_v25 = vpop.f32.mrb[44].mxu0  ;;  %4931 = vrot.lane.b32.xlu0 %v4930_v37, %s5454_s15  ;;  %v3142_v37 = vrot.slane %v6614_v63, %v5708_v15 }
0x1026   :  { %v2990_v26 = vpop.f32.mrb[45].mxu0 }
0x1027   :  { %v4613_v43 = vpop.f32.mrb[46].mxu0 }
0x1028   :  { %v4925_v7 = vpack.i.bf16 %v4613_v43, %v4612_v25  ;;  %v2993_v53 = vpop.f32.mrb[47].mxu0 }
0x1029   :  { %v4935_v31 = vpack.i.bf16 %v2993_v53, %v2990_v26 }
0x102a   :  { %4926 = vrot.lane.b32.xlu1 %v4925_v7, %s5447_s23 }
0x102b   :  { %4936 = vrot.lane.b32.xlu0 %v4935_v31, %s5447_s23 }
0x1060   :  { %v4620_v36 = vpop.f32.mrb[56].mxu1 }
0x1061   :  { %v3045_v8 = vpop.f32.mrb[57].mxu1 }
0x1062   :  { %v4621_v51 = vpop.f32.mrb[58].mxu1 }
0x1063   :  { %v4945_v56 = vpack.i.bf16 %v4621_v51, %v4620_v36  ;;  %v3048_v13 = vpop.f32.mrb[59].mxu1  ;;  %v5070_v36 = vld [vmem:[%s6815_s5 + $0x80] ss:$8 sps:$4 sm:$0xff]  }
0x1064   :  { %v4940_v55 = vpack.i.bf16 %v3048_v13, %v3045_v8 }
0x1065   :  { %4946 = vrot.lane.b32.xlu1 %v4945_v56, %s5453_s11 }
0x1066   :  { %4941 = vrot.lane.b32.xlu0 %v4940_v55, %s5453_s11  ;;  %s5416_s11 = scalar_lea.vmem %s3999_s4, 32 }
0x1067   :  { %p5417_p4 = scmp.ne.s32.totalorder %s3999_s4, %s5416_s11  ;;  %p5422_p6 = scmp.lt.s32.totalorder %s5416_s11, %s5416_s11 }
0x1069   :  { %p5423_p7 = por %p5422_p6, %p5421_p5 }
0x106b   :  { %p5424_p8 = pnand %p5423_p7, %p5417_p4 }
0x1096   :  { %v4922_v57 = vpop.permute.xlu1 %4921 }
0x1097   :  { %v4932_v10 = vpop.permute.xlu0 %4931  ;;  %v4924_v45 = vunpack.i.h.bf16 %v4922_v57  ;;  %v4923_v59 = vunpack.i.l.bf16 %v4922_v57 }
0x1098   :  { %v4934_v41 = vunpack.i.h.bf16 %v4932_v10  ;;  %v4933_v18 = vunpack.i.l.bf16 %v4932_v10 }
0x1099   :  { %v3111_v38 = vsel %vm593_vm0, %v6561_v0, %v4924_v45  ;;  %v3110_v12 = vsel %vm593_vm0, %v6557_v2, %v4923_v59 }
0x109a   :  { %v3109_v48 = vsel %vm593_vm0, %v6563_v11, %v4934_v41  ;;  %v3108_v58 = vsel %vm593_vm0, %v6559_v3, %v4933_v18 }
0x109c   :  { %v4927_v23 = vpop.permute.xlu1 %4926 }
0x109d   :  { %v4937_v9 = vpop.permute.xlu0 %4936  ;;  %v4929_v21 = vunpack.i.h.bf16 %v4927_v23  ;;  %v4928_v20 = vunpack.i.l.bf16 %v4927_v23 }
0x109e   :  { %v4939_v40 = vunpack.i.h.bf16 %v4937_v9  ;;  %v4938_v42 = vunpack.i.l.bf16 %v4937_v9 }
0x109f   :  { %v3114_v32 = vsel %vm1302_vm1, %v3110_v12, %v4928_v20  ;;  %v3115_v30 = vsel %vm1302_vm1, %v3111_v38, %v4929_v21  ;;  %v5081_v38 = vld [vmem:[%s6815_s5 + $0xb4] ss:$8 sps:$4 sm:$0xff]   ;;  %v5079_v12 = vld [vmem:[%s6815_s5 + $0xb0] ss:$8 sps:$4 sm:$0xff]  }
0x10a0   :  { %v3112_v0 = vsel %vm1302_vm1, %v3108_v58, %v4938_v42  ;;  %v3113_v2 = vsel %vm1302_vm1, %v3109_v48, %v4939_v40  ;;  %v5078_v40 = vld [vmem:[%s6815_s5 + $0xa4] ss:$8 sps:$4 sm:$0xff]   ;;  %v5076_v42 = vld [vmem:[%s6815_s5 + $0xa0] ss:$8 sps:$4 sm:$0xff]   ;;  %v5087_v58 = vld [vmem:[%s6815_s5 + $0xd4] ss:$8 sps:$4 sm:$0xff]  }
0x10a1   :  { %v5082_v48 = vld [vmem:[%s6815_s5 + $0xc0] ss:$8 sps:$4 sm:$0xff]  }
0x10d7   :  { %v4947_v44 = vpop.permute.xlu1 %4946 }
0x10d8   :  { %v4949_v52 = vunpack.i.h.bf16 %v4947_v44  ;;  %v4948_v28 = vunpack.i.l.bf16 %v4947_v44  ;;  %v4942_v4 = vpop.permute.xlu0 %4941  ;;  %v5084_v44 = vld [vmem:[%s6815_s5 + $0xc4] ss:$8 sps:$4 sm:$0xff]  }
0x10d9   :  { %v4944_v61 = vunpack.i.h.bf16 %v4942_v4  ;;  %v4943_v29 = vunpack.i.l.bf16 %v4942_v4  ;;  %v5090_v4 = vld [vmem:[%s6815_s5 + $0xe4] ss:$8 sps:$4 sm:$0xff]  }
0x10da   :  { %v3119_v5 = vsel %vm1307_vm2, %v3115_v30, %v4949_v52  ;;  %v3118_v11 = vsel %vm1307_vm2, %v3114_v32, %v4948_v28  ;;  %v5085_v52 = vld [vmem:[%s6815_s5 + $0xd0] ss:$8 sps:$4 sm:$0xff]   ;;  %v5088_v28 = vld [vmem:[%s6815_s5 + $0xe0] ss:$8 sps:$4 sm:$0xff]   ;;  %v5093_v32 = vld [vmem:[%s6815_s5 + $0xf4] ss:$8 sps:$4 sm:$0xff]  }
0x10db   :  { %v3138_v49 = vpack.c.bf16 %v3119_v5, %v3118_v11  ;;  %v3116_v3 = vsel %vm1307_vm2, %v3112_v0, %v4943_v29  ;;  %v3117_v35 = vsel %vm1307_vm2, %v3113_v2, %v4944_v61  ;;  %v5091_v30 = vld [vmem:[%s6815_s5 + $0xf0] ss:$8 sps:$4 sm:$0xff]  }
0x10dc   :  { %v3137_v54 = vpack.c.bf16 %v3117_v35, %v3116_v3 }
0x10de   :  { %4638 = vmatprep.mubr.bf16.mxu0 %v3137_v54 }
0x10df   :  { %4639 = vmatmul.mubr.bf16.vlgmr.msra.gmra.mrb[48].mxu0 %v3138_v49 }
0x11b2   :  { %v4640_v22 = vpop.f32.mrb[48].mxu0 }
0x11b3   :  { %v3225_v25 = vpop.f32.mrb[49].mxu0  ;;  %v3234_v53 = vadd.f32 %v4640_v22, %v3142_v37 }
0x11b4   :  { %v3226_v26 = vadd.f32 %v3225_v25, %v3142_v37  ;;  %v4641_v43 = vpop.f32.mrb[50].mxu0  ;;  %v3291_v25 = vrot.slane %v6614_v63, %v5714_v17 }
0x11b5   :  { %v3228_v7 = vpop.f32.mrb[51].mxu0  ;;  %v3242_v16 = vadd.f32 %v3234_v53, %v6290_v46  ;;  %v3237_v33 = vadd.f32 %v4641_v43, %v3142_v37  ;;  %v5073_v46 = vld [vmem:[%s6815_s5 + $0x90] ss:$8 sps:$4 sm:$0xff]  }
0x11b6   :  { %v3240_v27 = vadd.f32 %v3226_v26, %v6281_v50  ;;  %v3229_v31 = vadd.f32 %v3228_v7, %v3142_v37  ;;  %v5072_v50 = vld [vmem:[%s6815_s5 + $0x84] ss:$8 sps:$4 sm:$0xff]  }
0x11b7   :  { %v3243_v1 = vadd.f32 %v3237_v33, %v6292_v60  ;;  %3416 = vmatprep.subr.bf16.mxu1 %v5072_v50 }
0x11b8   :  { %v3241_v47 = vadd.f32 %v3229_v31, %v6283_v24  ;;  %3244 = vadd.xlane.f32.xlu0 %v3240_v27  ;;  %v5075_v24 = vld [vmem:[%s6815_s5 + $0x94] ss:$8 sps:$4 sm:$0xff]   ;;  %3417 = vmatpush1.bf16.msra.mxu1 %v5070_v36  ;;  %v3299_v31 = vrot.slane %v6614_v63, %v5718_v19 }
0x11b9   :  { %3418 = vmatprep.subr.bf16.mxu1 %v5075_v24 }
0x11ba   :  { %3246 = vadd.xlane.f32.xlu1 %v3241_v47 }
0x11bc   :  { %3248 = vadd.xlane.f32.xlu0 %v3242_v16  ;;  %3419 = vmatpush1.bf16.msra.mxu1 %v5073_v46 }
0x11bd   :  { %3420 = vmatprep.subr.bf16.mxu1 %v5078_v40  ;;  %v5107_v40 = vld [vmem:[#allocation5 + $0xb0] sm:$0xff]  }
0x11c0   :  { %3250 = vadd.xlane.f32.xlu0 %v3243_v1  ;;  %3421 = vmatpush1.bf16.msra.mxu1 %v5076_v42  ;;  %v5108_v42 = vld [vmem:[#allocation5 + $0xf8] sm:$0xff]  }
0x11c1   :  { %3422 = vmatprep.subr.bf16.mxu1 %v5081_v38  ;;  %v5109_v38 = vld [vmem:[#allocation5 + $0xb8] sm:$0xff]  }
0x11c4   :  { %3423 = vmatpush1.bf16.msra.mxu1 %v5079_v12  ;;  %v4205_v12 = vld [vmem:[%s6818_s8 + $0x2] sm:$0x3] }
0x11c5   :  { %3424 = vmatprep.subr.bf16.mxu1 %v5084_v44  ;;  %v3329_v44 = vrot.slane %v4205_v12, %v5708_v15 }
0x11c8   :  { %3425 = vmatpush1.bf16.msra.mxu1 %v5082_v48  ;;  %v3333_v48 = vrot.slane %v4205_v12, %v5714_v17 }
0x11c9   :  { %3426 = vmatprep.subr.bf16.mxu1 %v5087_v58 }
0x11cc   :  { %3427 = vmatpush1.bf16.msra.mxu1 %v5085_v52 }
0x11cd   :  { %3428 = vmatprep.subr.bf16.mxu1 %v5090_v4 }
0x11d0   :  { %3429 = vmatpush1.bf16.msra.mxu1 %v5088_v28 }
0x11d1   :  { %3430 = vmatprep.subr.bf16.mxu1 %v5093_v32 }
0x11d4   :  { %3431 = vmatpush1.bf16.msra.mxu1 %v5091_v30 }
0x1245   :  { %v3245_v60 = vpop.xlane.xlu0 %3244 }
0x1246   :  { %v3252_v8 = vmul.f32 0.0078125, %v3245_v60 }
0x1247   :  { %v3247_v51 = vpop.xlane.xlu1 %3246 }
0x1248   :  { %v3256_v56 = vsub.f32 %v3240_v27, %v3252_v8  ;;  %v3253_v13 = vmul.f32 0.0078125, %v3247_v51 }
0x1249   :  { %v3249_v55 = vpop.xlane.xlu0 %3248 }
0x124a   :  { %v3257_v57 = vsub.f32 %v3241_v47, %v3253_v13  ;;  %v3254_v10 = vmul.f32 0.0078125, %v3249_v55  ;;  %v3260_v23 = vmul.f32 %v3256_v56, %v3256_v56  ;;  %v5094_v13 = vld [vmem:[#allocation5 + $0xc0] sm:$0xff]  }
0x124b   :  { %v5095_v55 = vld [vmem:[#allocation5 + $0x80] sm:$0xff]   ;;  %4388 = vmatprep.subr.bf16.mxu0 %v5094_v13 }
0x124c   :  { %v3258_v45 = vsub.f32 %v3242_v16, %v3254_v10  ;;  %3264 = vadd.xlane.f32.xlu0 %v3260_v23  ;;  %v3261_v59 = vmul.f32 %v3257_v57, %v3257_v57  ;;  %4389 = vmatpush3.bf16.msra.mxu0 %v5095_v55  ;;  %v5097_v10 = vld [vmem:[#allocation5 + $0x88] sm:$0xff]   ;;  %v5098_v23 = vld [vmem:[#allocation5 + $0xd0] sm:$0xff]  }
0x124d   :  { %v3251_v9 = vpop.xlane.xlu0 %3250 }
0x124e   :  { %v3255_v41 = vmul.f32 0.0078125, %v3251_v9  ;;  %3266 = vadd.xlane.f32.xlu1 %v3261_v59  ;;  %v3262_v18 = vmul.f32 %v3258_v45, %v3258_v45  ;;  %v5100_v59 = vld [vmem:[#allocation5 + $0xd8] sm:$0xff]   ;;  %v5102_v9 = vld [vmem:[#allocation5 + $0xe0] sm:$0xff]  }
0x1250   :  { %v3259_v21 = vsub.f32 %v3243_v1, %v3255_v41  ;;  %3268 = vadd.xlane.f32.xlu0 %v3262_v18  ;;  %v5103_v41 = vld [vmem:[#allocation5 + $0xa0] sm:$0xff]   ;;  %v5104_v18 = vld [vmem:[#allocation5 + $0xe8] sm:$0xff]  }
0x1252   :  { %v3263_v20 = vmul.f32 %v3259_v21, %v3259_v21 }
0x1254   :  { %3270 = vadd.xlane.f32.xlu1 %v3263_v20  ;;  %v5106_v20 = vld [vmem:[#allocation5 + $0xf0] sm:$0xff]  }
0x12d9   :  { %v3265_v61 = vpop.xlane.xlu0 %3264 }
0x12da   :  { %v3272_v29 = vmul.f32 0.0078125, %v3265_v61 }
0x12db   :  { %v3267_v0 = vpop.xlane.xlu1 %3266 }
0x12dc   :  { %v3276_v2 = vadd.f32 1e-12, %v3272_v29  ;;  %v3273_v5 = vmul.f32 0.0078125, %v3267_v0 }
0x12dd   :  { %v3269_v11 = vpop.xlane.xlu0 %3268 }
0x12de   :  { %5294 = vrsqrt.f32 %v3276_v2  ;;  %v3277_v49 = vadd.f32 1e-12, %v3273_v5  ;;  %v3274_v3 = vmul.f32 0.0078125, %v3269_v11 }
0x12e0   :  { %5296 = vrsqrt.f32 %v3277_v49  ;;  %v3278_v35 = vadd.f32 1e-12, %v3274_v3 }
0x12e1   :  { %v3271_v54 = vpop.xlane.xlu1 %3270 }
0x12e2   :  { %5298 = vrsqrt.f32 %v3278_v35  ;;  %v3275_v37 = vmul.f32 0.0078125, %v3271_v54 }
0x12e4   :  { %v3279_v22 = vadd.f32 1e-12, %v3275_v37 }
0x12e6   :  { %5300 = vrsqrt.f32 %v3279_v22 }
0x12e8   :  { %v5295_v26 = vpop.eup %5294 }
0x12e9   :  { %v3284_v43 = vmul.f32 %v5295_v26, %v3256_v56 }
0x12ea   :  { %v5297_v7 = vpop.eup %5296 }
0x12eb   :  { %v3285_v53 = vmul.f32 %v5297_v7, %v3257_v57  ;;  %v3292_v27 = vmul.f32 %v3291_v25, %v3284_v43  ;;  %v5096_v57 = vld [vmem:[#allocation5 + $0xc8] sm:$0xff]  }
0x12ec   :  { %v5299_v47 = vpop.eup %5298  ;;  %4390 = vmatprep.subr.bf16.mxu0 %v5096_v57 }
0x12ed   :  { %v3293_v16 = vmul.f32 %v3291_v25, %v3285_v53  ;;  %v6674_v33 = vadd.f32 %v3299_v31, %v3292_v27  ;;  %v3286_v36 = vmul.f32 %v5299_v47, %v3258_v45  ;;  %4391 = vmatpush3.bf16.msra.mxu0 %v5097_v10  ;;  %v5099_v45 = vld [vmem:[#allocation5 + $0x90] sm:$0xff]  }
0x12ee   :  { %4392 = vmatprep.subr.bf16.mxu0 %v5098_v23 }
0x12ef   :  { %v3301_v1 = vadd.f32 %v3299_v31, %v3293_v16  ;;  %v3294_v60 = vmul.f32 %v3291_v25, %v3286_v36 }
0x12f0   :  { %v5301_v50 = vpop.eup %5300 }
0x12f1   :  { %v3321_v24 = vpack.c.bf16 %v3301_v1, %v6674_v33  ;;  %v3287_v46 = vmul.f32 %v5301_v50, %v3259_v21  ;;  %v6678_v56 = vadd.f32 %v3299_v31, %v3294_v60  ;;  %4393 = vmatpush3.bf16.msra.mxu0 %v5099_v45  ;;  %v5105_v21 = vld [vmem:[#allocation5 + $0xa8] sm:$0xff]  }
0x12f2   :  { %4394 = vmatprep.subr.bf16.mxu0 %v5100_v59 }
0x12f3   :  { %3449 = vmatmul.mubr.bf16.vlgmr.msra.gmra.mrb[60].mxu1 %v3321_v24  ;;  %v3295_v8 = vmul.f32 %v3291_v25, %v3287_v46 }
0x12f4   :  { %3458 = vmatprep.mubr.bf16.mxu1 %v5452_v39  ;;  %v5101_v39 = vld [vmem:[#allocation5 + $0x98] sm:$0xff]  }
0x12f5   :  { %v3303_v51 = vadd.f32 %v3299_v31, %v3295_v8  ;;  %4395 = vmatpush3.bf16.msra.mxu0 %v5101_v39 }
0x12f6   :  { %4396 = vmatprep.subr.bf16.mxu0 %v5102_v9 }
0x12f7   :  { %v3322_v19 = vpack.c.bf16 %v3303_v51, %v6678_v56 }
0x12f9   :  { %4397 = vmatpush3.bf16.msra.mxu0 %v5103_v41 }
0x12fa   :  { %4398 = vmatprep.subr.bf16.mxu0 %v5104_v18 }
0x12fb   :  { %3459 = vmatmul.mubr.bf16.gmra.mrb[64].mxu1 %v3322_v19 }
0x12fd   :  { %4399 = vmatpush3.bf16.msra.mxu0 %v5105_v21 }
0x12fe   :  { %4400 = vmatprep.subr.bf16.mxu0 %v5106_v20 }
0x1301   :  { %4401 = vmatpush3.bf16.msra.mxu0 %v5107_v40 }
0x1302   :  { %4402 = vmatprep.subr.bf16.mxu0 %v5108_v42 }
0x1305   :  { %4403 = vmatpush3.bf16.msra.mxu0 %v5109_v38 }
0x13c6   :  { %v3450_v58 = vpop.f32.mrb[60].mxu1 }
0x13c7   :  { %v6686_v52 = vadd.f32 %v3450_v58, %v3329_v44  ;;  %v3452_v28 = vpop.f32.mrb[61].mxu1 }
0x13c8   :  { %v6688_v4 = vadd.f32 %v3452_v28, %v3333_v48  ;;  %v3454_v32 = vpop.f32.mrb[62].mxu1 }
0x13c9   :  { %v3469_v30 = vmul.f32 %v6686_v52, %v6686_v52  ;;  %v6692_v61 = vadd.f32 %v3454_v32, %v3329_v44  ;;  %v3456_v29 = vpop.f32.mrb[63].mxu1 }
0x13ca   :  { %v3470_v0 = vmul.f32 %v6688_v4, %v6688_v4  ;;  %v6696_v2 = vadd.f32 %v3456_v29, %v3333_v48 }
0x13cb   :  { %v3477_v15 = vmul.f32 %v3469_v30, %v6686_v52  ;;  %v3471_v17 = vmul.f32 %v6692_v61, %v6692_v61 }
0x13cc   :  { %v3478_v5 = vmul.f32 %v3470_v0, %v6688_v4  ;;  %v3472_v11 = vmul.f32 %v6696_v2, %v6696_v2 }
0x13cd   :  { %v3485_v49 = vmul.f32 0.044715, %v3477_v15  ;;  %v3479_v3 = vmul.f32 %v3471_v17, %v6692_v61 }
0x13ce   :  { %v3486_v35 = vmul.f32 0.044715, %v3478_v5  ;;  %v3480_v54 = vmul.f32 %v3472_v11, %v6696_v2  ;;  %v3460_v37 = vpop.f32.mrb[64].mxu1 }
0x13cf   :  { %v3493_v22 = vadd.f32 %v3485_v49, %v6686_v52  ;;  %v3487_v25 = vmul.f32 0.044715, %v3479_v3  ;;  %v6707_v26 = vadd.f32 %v3460_v37, %v3329_v44  ;;  %v3462_v43 = vpop.f32.mrb[65].mxu1 }
0x13d0   :  { %v3494_v7 = vadd.f32 %v3486_v35, %v6688_v4  ;;  %v3488_v53 = vmul.f32 0.044715, %v3480_v54  ;;  %v6710_v27 = vadd.f32 %v3462_v43, %v3333_v48  ;;  %v3464_v31 = vpop.f32.mrb[66].mxu1 }
0x13d1   :  { %v3501_v47 = vmul.f32 0.7978846, %v3493_v22  ;;  %v3495_v16 = vadd.f32 %v3487_v25, %v6692_v61  ;;  %v3473_v1 = vmul.f32 %v6707_v26, %v6707_v26  ;;  %v6715_v36 = vadd.f32 %v3464_v31, %v3329_v44  ;;  %v3466_v50 = vpop.f32.mrb[67].mxu1 }
0x13d2   :  { %v3502_v24 = vmul.f32 0.7978846, %v3494_v7  ;;  %v3496_v46 = vadd.f32 %v3488_v53, %v6696_v2  ;;  %v3474_v60 = vmul.f32 %v6710_v27, %v6710_v27  ;;  %v6720_v8 = vadd.f32 %v3466_v50, %v3333_v48 }
0x13d3   :  { %5302 = vtanh.f32 %v3501_v47  ;;  %v3503_v51 = vmul.f32 0.7978846, %v3495_v16  ;;  %v3481_v19 = vmul.f32 %v3473_v1, %v6707_v26  ;;  %v3475_v13 = vmul.f32 %v6715_v36, %v6715_v36 }
0x13d4   :  { %5304 = vtanh.f32 %v3502_v24  ;;  %v3504_v55 = vmul.f32 0.7978846, %v3496_v46  ;;  %v3482_v57 = vmul.f32 %v3474_v60, %v6710_v27  ;;  %v3476_v10 = vmul.f32 %v6720_v8, %v6720_v8 }
0x13d5   :  { %5306 = vtanh.f32 %v3503_v51  ;;  %v3489_v23 = vmul.f32 0.044715, %v3481_v19  ;;  %v3483_v45 = vmul.f32 %v3475_v13, %v6715_v36 }
0x13d6   :  { %5308 = vtanh.f32 %v3504_v55  ;;  %v3490_v59 = vmul.f32 0.044715, %v3482_v57  ;;  %v3484_v39 = vmul.f32 %v3476_v10, %v6720_v8  ;;  %v3581_v57 = vrot.slane %v6614_v63, %v1768_v62 }
0x13d7   :  { %v3497_v9 = vadd.f32 %v3489_v23, %v6707_v26  ;;  %v3491_v41 = vmul.f32 0.044715, %v3483_v45 }
0x13d8   :  { %v3498_v18 = vadd.f32 %v3490_v59, %v6710_v27  ;;  %v3492_v21 = vmul.f32 0.044715, %v3484_v39 }
0x13d9   :  { %v3505_v20 = vmul.f32 0.7978846, %v3497_v9  ;;  %v3499_v40 = vadd.f32 %v3491_v41, %v6715_v36 }
0x13da   :  { %v3506_v42 = vmul.f32 0.7978846, %v3498_v18  ;;  %v3500_v38 = vadd.f32 %v3492_v21, %v6720_v8 }
0x13db   :  { %5310 = vtanh.f32 %v3505_v20  ;;  %v3507_v12 = vmul.f32 0.7978846, %v3499_v40 }
0x13dc   :  { %5312 = vtanh.f32 %v3506_v42  ;;  %v3508_v44 = vmul.f32 0.7978846, %v3500_v38 }
0x13dd   :  { %v5303_v48 = vpop.eup %5302  ;;  %5314 = vtanh.f32 %v3507_v12 }
0x13de   :  { %v5305_v58 = vpop.eup %5304  ;;  %v3517_v28 = vadd.f32 1.0, %v5303_v48  ;;  %5316 = vtanh.f32 %v3508_v44 }
0x13df   :  { %v5307_v32 = vpop.eup %5306  ;;  %v3518_v30 = vadd.f32 1.0, %v5305_v58  ;;  %v5455_v58 = vmov 0.0  }
0x13e0   :  { %v5309_v29 = vpop.eup %5308  ;;  %v3525_v0 = vmul.f32 0.5, %v3517_v28  ;;  %v3519_v15 = vadd.f32 1.0, %v5307_v32  ;;  %4642 = vmatprep.subr.bf16.mxu1 %v5455_v58  ;;  %4662 = vmatprep.subr.bf16.mxu0 %v5455_v58  ;;  %v5112_v28 = vld [vmem:[%s6820_s10 + $0x10] sm:$0xff]   ;;  %v5113_v32 = vld [vmem:[%s6820_s10 + $0x18] sm:$0xff]  }
0x13e1   :  { %v3520_v17 = vadd.f32 1.0, %v5309_v29  ;;  %v3526_v5 = vmul.f32 0.5, %v3518_v30  ;;  %v5114_v30 = vld [vmem:[%s6820_s10 + $0x20] sm:$0xff]   ;;  %v5115_v29 = vld [vmem:[%s6820_s10 + $0x28] sm:$0xff]   ;;  %4658 = vmatprep.mubr.msk.bf16.mxu1 %vm5456_vm3, %v5455_v58 }
0x13e2   :  { %v3527_v11 = vmul.f32 0.5, %v3519_v15  ;;  %v3533_v3 = vmul.f32 %v3525_v0, %v6686_v52  ;;  %v5116_v0 = vld [vmem:[%s6820_s10 + $0x30] sm:$0xff]   ;;  %v5117_v15 = vld [vmem:[%s6820_s10 + $0x38] sm:$0xff]  }
0x13e3   :  { %v3528_v49 = vmul.f32 0.5, %v3520_v17  ;;  %v3534_v37 = vmul.f32 %v3526_v5, %v6688_v4  ;;  %v5118_v17 = vld [vmem:[#allocation8] sm:$0xff]   ;;  %v5119_v5 = vld [vmem:[#allocation8 + $0x8] sm:$0xff]  }
0x13e4   :  { %v3535_v35 = vmul.f32 %v3527_v11, %v6692_v61  ;;  %v5120_v11 = vld [vmem:[#allocation8 + $0x10] sm:$0xff]  }
0x13e5   :  { %v5311_v54 = vpop.eup %5310  ;;  %v3536_v22 = vmul.f32 %v3528_v49, %v6696_v2  ;;  %v5121_v49 = vld [vmem:[#allocation8 + $0x18] sm:$0xff]  }
0x13e6   :  { %v5313_v25 = vpop.eup %5312  ;;  %v3574_v43 = vpack.c.bf16 %v3535_v35, %v3533_v3  ;;  %v3521_v7 = vadd.f32 1.0, %v5311_v54 }
0x13e7   :  { %v5315_v53 = vpop.eup %5314  ;;  %v3575_v31 = vpack.c.bf16 %v3536_v22, %v3534_v37  ;;  %v3522_v47 = vadd.f32 1.0, %v5313_v25 }
0x13e8   :  { %v5317_v16 = vpop.eup %5316  ;;  %v3523_v1 = vadd.f32 1.0, %v5315_v53  ;;  %v3529_v50 = vmul.f32 0.5, %v3521_v7  ;;  %v3752_v7 = vrot.slane %v6614_v63, %v1965_v34  ;;  %v5123_v34 = vld [vmem:[#allocation8 + $0x28] sm:$0xff]  }
0x13e9   :  { %3710 = vmatprep.mubr.bf16.mxu0 %v3575_v31  ;;  %v3524_v24 = vadd.f32 1.0, %v5317_v16  ;;  %v3530_v46 = vmul.f32 0.5, %v3522_v47  ;;  %v3758_v16 = vrot.slane %v6614_v63, %v1973_v6  ;;  %v5125_v6 = vld [vmem:[#allocation8 + $0x38] sm:$0xff]  }
0x13ea   :  { %3711 = vmatmul.mubr.bf16.vlgmr.msra.gmra.mrb[52].mxu0 %v3574_v43  ;;  %v3531_v52 = vmul.f32 0.5, %v3523_v1  ;;  %v3537_v60 = vmul.f32 %v3529_v50, %v6707_v26  ;;  %v4238_v63 = vld [vmem:[#allocation7] ss:$0 sm:$0xff] }
0x13eb   :  { %v3532_v61 = vmul.f32 0.5, %v3524_v24  ;;  %v3538_v2 = vmul.f32 %v3530_v46, %v6710_v27  ;;  %4663 = vmatpush3.bf16.msra.mxu0 %v5118_v17 }
0x13ec   :  { %v3539_v4 = vmul.f32 %v3531_v52, %v6715_v36  ;;  %4664 = vmatprep.subr.bf16.mxu0 %v5455_v58 }
0x13ed   :  { %v3540_v51 = vmul.f32 %v3532_v61, %v6720_v8 }
0x13ee   :  { %v3576_v19 = vpack.c.bf16 %v3539_v4, %v3537_v60  ;;  %v5122_v4 = vld [vmem:[#allocation8 + $0x20] sm:$0xff]  }
0x13ef   :  { %v3577_v13 = vpack.c.bf16 %v3540_v51, %v3538_v2  ;;  %4665 = vmatpush3.bf16.msra.mxu0 %v5119_v5 }
0x13f0   :  { %4666 = vmatprep.subr.bf16.mxu0 %v5455_v58 }
0x13f1   :  { %3717 = vmatprep.mubr.bf16.mxu0 %v3577_v13 }
0x13f2   :  { %3718 = vmatmul.mubr.bf16.gmra.mrb[56].mxu0 %v3576_v19 }
0x13f3   :  { %4678 = vmatprep.mubr.msk.bf16.mxu0 %vm5456_vm3, %v5455_v58  ;;  %4667 = vmatpush3.bf16.msra.mxu0 %v5120_v11 }
0x13f4   :  { %4668 = vmatprep.subr.bf16.mxu0 %v5455_v58 }
0x13f7   :  { %4669 = vmatpush3.bf16.msra.mxu0 %v5121_v49 }
0x13f8   :  { %4670 = vmatprep.subr.bf16.mxu0 %v5455_v58 }
0x13fb   :  { %4671 = vmatpush3.bf16.msra.mxu0 %v5122_v4 }
0x13fc   :  { %4672 = vmatprep.subr.bf16.mxu0 %v5455_v58 }
0x13ff   :  { %4673 = vmatpush3.bf16.msra.mxu0 %v5123_v34 }
0x1400   :  { %4674 = vmatprep.subr.bf16.mxu0 %v5455_v58 }
0x1403   :  { %4675 = vmatpush3.bf16.msra.mxu0 %v5124_v14 }
0x1404   :  { %4676 = vmatprep.subr.bf16.mxu0 %v5455_v58 }
0x1407   :  { %4677 = vmatpush3.bf16.msra.mxu0 %v5125_v6 }
0x14bd   :  { %v4404_v55 = vpop.f32.mrb[52].mxu0 }
0x14be   :  { %v4405_v10 = vpop.f32.mrb[53].mxu0 }
0x14bf   :  { %v4406_v23 = vadd.f32 %v4405_v10, %v4404_v55  ;;  %v4407_v45 = vpop.f32.mrb[54].mxu0 }
0x14c0   :  { %v4408_v59 = vpop.f32.mrb[55].mxu0 }
0x14c1   :  { %v3713_v26 = vadd.f32 %v4406_v23, %v3581_v57  ;;  %v4247_v23 = vld [vmem:[%s6823_s13] ss:$0 sm:$0xff] }
0x14c3   :  { %v3725_v36 = vadd.f32 %v3713_v26, %v6674_v33  ;;  %v5110_v33 = vld [vmem:[%s6820_s10] sm:$0xff]  }
0x14c4   :  { %4643 = vmatpush3.bf16.msra.mxu1 %v5110_v33 }
0x14c5   :  { %3727 = vadd.xlane.f32.xlu1 %v3725_v36  ;;  %v4410_v27 = vpop.f32.mrb[56].mxu0  ;;  %4644 = vmatprep.subr.bf16.mxu1 %v5455_v58 }
0x14c6   :  { %v4411_v39 = vpop.f32.mrb[57].mxu0 }
0x14c7   :  { %v4412_v8 = vadd.f32 %v4411_v39, %v4410_v27  ;;  %v4413_v9 = vpop.f32.mrb[58].mxu0 }
0x14c8   :  { %v4414_v41 = vpop.f32.mrb[59].mxu0 }
0x14c9   :  { %v3720_v18 = vadd.f32 %v4412_v8, %v3581_v57 }
0x14cb   :  { %v3726_v21 = vadd.f32 %v3720_v18, %v6678_v56  ;;  %v5111_v56 = vld [vmem:[%s6820_s10 + $0x8] sm:$0xff]  }
0x14cc   :  { %4645 = vmatpush3.bf16.msra.mxu1 %v5111_v56 }
0x14cd   :  { %3729 = vadd.xlane.f32.xlu0 %v3726_v21  ;;  %4646 = vmatprep.subr.bf16.mxu1 %v5455_v58 }
0x14d0   :  { %4647 = vmatpush3.bf16.msra.mxu1 %v5112_v28 }
0x14d1   :  { %4648 = vmatprep.subr.bf16.mxu1 %v5455_v58 }
0x14d4   :  { %4649 = vmatpush3.bf16.msra.mxu1 %v5113_v32 }
0x14d5   :  { %4650 = vmatprep.subr.bf16.mxu1 %v5455_v58 }
0x14d8   :  { %4651 = vmatpush3.bf16.msra.mxu1 %v5114_v30 }
0x14d9   :  { %4652 = vmatprep.subr.bf16.mxu1 %v5455_v58 }
0x14dc   :  { %4653 = vmatpush3.bf16.msra.mxu1 %v5115_v29 }
0x14dd   :  { %4654 = vmatprep.subr.bf16.mxu1 %v5455_v58 }
0x14e0   :  { %4655 = vmatpush3.bf16.msra.mxu1 %v5116_v0 }
0x14e1   :  { %4656 = vmatprep.subr.bf16.mxu1 %v5455_v58 }
0x14e4   :  { %4657 = vmatpush3.bf16.msra.mxu1 %v5117_v15 }
0x1552   :  { %v3728_v20 = vpop.xlane.xlu1 %3727 }
0x1553   :  { %v3731_v40 = vmul.f32 0.0078125, %v3728_v20 }
0x1555   :  { %v3733_v62 = vsub.f32 %v3725_v36, %v3731_v40 }
0x1557   :  { %v3735_v42 = vmul.f32 %v3733_v62, %v3733_v62 }
0x1559   :  { %3737 = vadd.xlane.f32.xlu1 %v3735_v42 }
0x155a   :  { %v3730_v38 = vpop.xlane.xlu0 %3729 }
0x155b   :  { %v3732_v12 = vmul.f32 0.0078125, %v3730_v38 }
0x155d   :  { %v3734_v44 = vsub.f32 %v3726_v21, %v3732_v12 }
0x155f   :  { %v3736_v48 = vmul.f32 %v3734_v44, %v3734_v44 }
0x1561   :  { %3739 = vadd.xlane.f32.xlu0 %v3736_v48 }
0x15e6   :  { %v3738_v3 = vpop.xlane.xlu1 %3737 }
0x15e7   :  { %v3741_v35 = vmul.f32 0.0078125, %v3738_v3 }
0x15e9   :  { %v3743_v54 = vadd.f32 1e-12, %v3741_v35 }
0x15eb   :  { %5318 = vrsqrt.f32 %v3743_v54 }
0x15ee   :  { %v3740_v37 = vpop.xlane.xlu0 %3739 }
0x15ef   :  { %v3742_v22 = vmul.f32 0.0078125, %v3740_v37 }
0x15f1   :  { %v3744_v25 = vadd.f32 1e-12, %v3742_v22 }
0x15f3   :  { %5320 = vrsqrt.f32 %v3744_v25 }
0x15f5   :  { %v5319_v43 = vpop.eup %5318 }
0x15f6   :  { %v3747_v53 = vmul.f32 %v5319_v43, %v3733_v62 }
0x15f8   :  { %v3753_v1 = vmul.f32 %v3752_v7, %v3747_v53 }
0x15fa   :  { %v3759_v46 = vadd.f32 %v3758_v16, %v3753_v1 }
0x15fd   :  { %v5321_v31 = vpop.eup %5320 }
0x15fe   :  { %v3748_v47 = vmul.f32 %v5321_v31, %v3734_v44 }
0x1600   :  { %v3754_v50 = vmul.f32 %v3752_v7, %v3748_v47 }
0x1602   :  { %v3760_v24 = vadd.f32 %v3758_v16, %v3754_v50 }
0x1604   :  { %v3762_v52 = vrot.slane %v3760_v24, 7 }
0x1606   :  { %v3765_v61 = vsel %vm3764_vm4, %v3759_v46, %v3762_v52 }
0x1607   :  { %v3782_v60 = vpack.c.bf16 %v3765_v61, %v3765_v61 }
0x1609   :  { %4659 = vmatmul.mubr.bf16.vlgmr.msra.gmra.mrb[68].mxu1 %v3782_v60 }
0x16dc   :  { %v3872_v2 = vpop.f32.mrb[68].mxu1 }
0x16dd   :  { %v3873_v51 = vadd.f32 %v4238_v63, %v3872_v2  ;;  %v4660_v19 = vpop.f32.mrb[69].mxu1 }
0x16de   :  { %v3875_v13 = vpop.f32.mrb[70].mxu1 }
0x16df   :  { %5322 = vtanh.f32 %v3873_v51  ;;  %v4661_v55 = vpop.f32.mrb[71].mxu1 }
0x16e9   :  { %v5323_v57 = vpop.eup %5322 }
0x16ea   :  { %v3895_v10 = vpack.c.bf16 %v5323_v57, %v5323_v57 }
0x16ec   :  { %4679 = vmatmul.mubr.bf16.vlgmr.msra.gmra.mrb[60].mxu0 %v3895_v10 }
0x17bf   :  { %v3985_v45 = vpop.f32.mrb[60].mxu0 }
0x17c0   :  { %v3986_v59 = vadd.f32 %v4247_v23, %v3985_v45  ;;  %v4680_v26 = vpop.f32.mrb[61].mxu0 }
0x17c1   :  { %v3988_v36 = vpop.f32.mrb[62].mxu0 }
0x17c2   :  { %3991 = vst [vmem:[#allocation10] sm:$0x3] %v3986_v59  ;;  %v4681_v27 = vpop.f32.mrb[63].mxu0 }
0x17c3   :  { %5427 = shalt.err (!%p5424_p8)
}
0x17c4   :  { %s5428_s13 = scalar_lea.hbm %s6824_s14, 32 }
0x17c5   :  { %p5429_p9 = scmp.ne.s32.totalorder %s6824_s14, %s5428_s13  ;;  %p5432_p10 = scmp.lt.u32.totalorder %s5428_s13, %s6824_s14 }
0x17c7   :  { %p5434_p11 = pnand %p5432_p10, %p5429_p9 }
0x17c9   :  { %5437 = shalt.err (!%p5434_p11)
}
0x17ca   :  { %4001 = dma.vmem_to_hbm [thread:$0]  %s3999_s4, 32, %s6824_s14, [#allocation4]  }
0x17cb   :  { %5444 = dma.done.wait [#allocation4], 32  }
0x17cc   :  { %5445 = vsyncadd [#allocation4], 4294967264 }
0x17cd   :  { %4005 = vsyncpa [#allocation3], 1 }
0x17ce   :  { %4006 = vsyncpa [#allocation6], 1 }
0x17cf   :  { %4007 = vsyncpa [#allocation9], 1 }
0x17d0   :  { %4008 = vsyncpa [#allocation4], 1 }

</bundles_post_ra>
